<compile_context>
chip_gen: v7x
topology: tpu7x:2x2x1
jax: 0.10.0
libtpu: 0.0.40
codegen_flags: <defaults>
</compile_context>

<pallas_src>
import math
import functools

import jax
import jax.numpy as jnp
from jax.experimental import pallas as pl
from jax.experimental.pallas import tpu as pltpu

EPS = 1e-5
LANE = 128
M_PAD = 512                          # pad the GEMM M dim to this multiple (stats-safe zeros)
VMEM_LIMIT = 32 * 1024 * 1024        # explicit scoped-VMEM budget; fits tiles below on v5e/v6e/v7x


# ------------------------------- helpers ----------------------------------- #

def _round_up(x, m):
    return (x + m - 1) // m * m


def _pick_div_tile(n, cap, mult):
    """Largest multiple of `mult` <= min(cap, n) that divides n (requires n % mult == 0)."""
    t = min(cap, n) // mult * mult
    while t > mult and n % t:
        t -= mult
    return t


def _matmul_tiles(M, C, cin_p):
    """Tile sizes for the conv GEMMs.  tk always divides cin_p so 3x3 tap boundaries
    align with k tiles (needed for the fused 1x1 shortcut)."""
    tm = _pick_div_tile(M, 1024, 16)            # bf16 A: sublane packing is 16
    tn = _pick_div_tile(C, 512, LANE)           # full Cout when <= 512 -> A streamed once
    if cin_p % 256 == 0:                        # 256-aligned k pushes for v6e/v7x MXU
        tk = _pick_div_tile(cin_p, 512, 256)
    else:
        tk = _pick_div_tile(cin_p, 512, LANE)
    # keep >= 2 parallel blocks when possible so both v7x TensorCores get work
    if (M // tm) * (C // tn) == 1 and tm >= 32:
        tm //= 2
    return tm, tn, tk


def _ew_tiles(M, C):
    tm = _pick_div_tile(M, 1024, 16)
    tn = _pick_div_tile(C, 512, LANE)
    if (M // tm) * (C // tn) == 1 and tm >= 32:
        tm //= 2
    return tm, tn


# --------------------------- Pallas kernels -------------------------------- #

def _mm_stats_kernel(a_ref, b_ref, o_ref, sum_ref, sq_ref, acc_ref):
    """Tiled matmul (bf16 x bf16 -> f32 acc) with per-channel sum / sumsq epilogue."""
    k = pl.program_id(2)

    @pl.when(k == 0)
    def _init():
        acc_ref[...] = jnp.zeros_like(acc_ref)

    acc_ref[...] += jnp.dot(a_ref[...], b_ref[...],
                            preferred_element_type=jnp.float32)

    @pl.when(k == pl.num_programs(2) - 1)
    def _finalize():
        acc = acc_ref[...]
        o_ref[...] = acc.astype(o_ref.dtype)
        sum_ref[...] = jnp.sum(acc, axis=0, keepdims=True)[None]
        sq_ref[...] = jnp.sum(acc * acc, axis=0, keepdims=True)[None]


def _mm_stats_shortcut_kernel(a_ref, b_ref, wsc_ref,
                              o_ref, sum_ref, sq_ref,
                              osc_ref, ssum_ref, ssq_ref,
                              acc_ref, accsc_ref, *, k_lo, k_hi):
    """Same as _mm_stats_kernel, plus a fused 1x1-shortcut matmul computed only on the
    k tiles [k_lo, k_hi) that cover the 3x3 center tap of the im2col A operand."""
    k = pl.program_id(2)

    @pl.when(k == 0)
    def _init():
        acc_ref[...] = jnp.zeros_like(acc_ref)
        accsc_ref[...] = jnp.zeros_like(accsc_ref)

    acc_ref[...] += jnp.dot(a_ref[...], b_ref[...],
                            preferred_element_type=jnp.float32)

    @pl.when((k >= k_lo) & (k < k_hi))
    def _shortcut():
        accsc_ref[...] += jnp.dot(a_ref[...], wsc_ref[...],
                                  preferred_element_type=jnp.float32)

    @pl.when(k == pl.num_programs(2) - 1)
    def _finalize():
        acc = acc_ref[...]
        o_ref[...] = acc.astype(o_ref.dtype)
        sum_ref[...] = jnp.sum(acc, axis=0, keepdims=True)[None]
        sq_ref[...] = jnp.sum(acc * acc, axis=0, keepdims=True)[None]
        accsc = accsc_ref[...]
        osc_ref[...] = accsc.astype(osc_ref.dtype)
        ssum_ref[...] = jnp.sum(accsc, axis=0, keepdims=True)[None]
        ssq_ref[...] = jnp.sum(accsc * accsc, axis=0, keepdims=True)[None]


def pallas_conv_matmul(a, b, *, cin_p, wsc=None, out_dtype=jnp.bfloat16):
    """a (M, 9*cin_p) bf16 @ b (9*cin_p, C) bf16 with per-channel sum/sumsq side outputs.

    If wsc (cin_p, C) is given, also computes  a[:, 4*cin_p:5*cin_p] @ wsc  (the 1x1
    stride-matched shortcut = center tap of the 3x3 im2col) fused into the same grid,
    returning (y, sum, sq, ysc, sc_sum, sc_sq); otherwise (y, sum, sq).
    Requires M % 16 == 0, cin_p % 128 == 0, C % 128 == 0.
    """
    M, K = a.shape
    _, C = b.shape
    assert M % 16 == 0 and cin_p % LANE == 0 and C % LANE == 0 and K % cin_p == 0

    tm, tn, tk = _matmul_tiles(M, C, cin_p)
    grid = (M // tm, C // tn, K // tk)
    mtiles = grid[0]

    a_spec = pl.BlockSpec((tm, tk), lambda i, j, k: (i, k))
    b_spec = pl.BlockSpec((tk, tn), lambda i, j, k: (k, j))
    o_spec = pl.BlockSpec((tm, tn), lambda i, j, k: (i, j))
    st_spec = pl.BlockSpec((1, 1, tn), lambda i, j, k: (i, 0, j))

    out_shapes = [jax.ShapeDtypeStruct((M, C), out_dtype),
                  jax.ShapeDtypeStruct((mtiles, 1, C), jnp.float32),
                  jax.ShapeDtypeStruct((mtiles, 1, C), jnp.float32)]
    out_specs = [o_spec, st_spec, st_spec]
    in_specs = [a_spec, b_spec]
    operands = [a, b]
    scratch = [pltpu.VMEM((tm, tn), jnp.float32)]

    if wsc is not None:
        d = cin_p // tk
        k_lo = 4 * d
        wsc_spec = pl.BlockSpec(
            (tk, tn),
            lambda i, j, k: (jnp.maximum(jnp.minimum(k - k_lo, d - 1), 0), j))
        kernel = functools.partial(_mm_stats_shortcut_kernel, k_lo=k_lo, k_hi=k_lo + d)
        in_specs.append(wsc_spec)
        operands.append(wsc)
        out_shapes += [jax.ShapeDtypeStruct((M, C), out_dtype),
                       jax.ShapeDtypeStruct((mtiles, 1, C), jnp.float32),
                       jax.ShapeDtypeStruct((mtiles, 1, C), jnp.float32)]
        out_specs += [o_spec, st_spec, st_spec]
        scratch.append(pltpu.VMEM((tm, tn), jnp.float32))
    else:
        kernel = _mm_stats_kernel

    return pl.pallas_call(
        kernel,
        out_shape=tuple(out_shapes),
        grid=grid,
        in_specs=in_specs,
        out_specs=tuple(out_specs),
        scratch_shapes=scratch,
        compiler_params=pltpu.CompilerParams(
            dimension_semantics=("parallel", "parallel", "arbitrary"),
            vmem_limit_bytes=VMEM_LIMIT),
    )(*operands)


def _affine_relu_kernel(x_ref, s_ref, h_ref, o_ref):
    y = x_ref[...].astype(jnp.float32) * s_ref[...] + h_ref[...]
    o_ref[...] = jnp.maximum(y, 0.0).astype(o_ref.dtype)


def pallas_affine_relu(x, scale, shift, *, out_dtype):
    """out = relu(x * scale + shift), per-channel scale/shift of shape (1, C)."""
    M, C = x.shape
    tm, tn = _ew_tiles(M, C)
    grid = (M // tm, C // tn)
    return pl.pallas_call(
        _affine_relu_kernel,
        out_shape=jax.ShapeDtypeStruct((M, C), out_dtype),
        grid=grid,
        in_specs=[pl.BlockSpec((tm, tn), lambda i, j: (i, j)),
                  pl.BlockSpec((1, tn), lambda i, j: (0, j)),
                  pl.BlockSpec((1, tn), lambda i, j: (0, j))],
        out_specs=pl.BlockSpec((tm, tn), lambda i, j: (i, j)),
        compiler_params=pltpu.CompilerParams(
            dimension_semantics=("parallel", "parallel"),
            vmem_limit_bytes=VMEM_LIMIT),
    )(x, scale, shift)


def _affine_add_relu_kernel(y_ref, sc_ref, s2_ref, h2_ref, ssc_ref, hsc_ref, o_ref):
    main = y_ref[...].astype(jnp.float32) * s2_ref[...] + h2_ref[...]
    short = sc_ref[...].astype(jnp.float32) * ssc_ref[...] + hsc_ref[...]
    o_ref[...] = jnp.maximum(main + short, 0.0).astype(o_ref.dtype)


def pallas_affine_add_relu(y, short, s2, h2, ssc, hsc, *, out_dtype=jnp.float32):
    """out = relu( (y*s2+h2) + (short*ssc+hsc) ) -- BN2 + BN_shortcut + add + ReLU fused."""
    M, C = y.shape
    tm, tn = _ew_tiles(M, C)
    grid = (M // tm, C // tn)
    return pl.pallas_call(
        _affine_add_relu_kernel,
        out_shape=jax.ShapeDtypeStruct((M, C), out_dtype),
        grid=grid,
        in_specs=[pl.BlockSpec((tm, tn), lambda i, j: (i, j)),
                  pl.BlockSpec((tm, tn), lambda i, j: (i, j)),
                  pl.BlockSpec((1, tn), lambda i, j: (0, j)),
                  pl.BlockSpec((1, tn), lambda i, j: (0, j)),
                  pl.BlockSpec((1, tn), lambda i, j: (0, j)),
                  pl.BlockSpec((1, tn), lambda i, j: (0, j))],
        out_specs=pl.BlockSpec((tm, tn), lambda i, j: (i, j)),
        compiler_params=pltpu.CompilerParams(
            dimension_semantics=("parallel", "parallel"),
            vmem_limit_bytes=VMEM_LIMIT),
    )(y, short, s2, h2, ssc, hsc)


# ------------------------------ JAX glue ------------------------------------ #

def _bn_scale_shift(col_sum, col_sq, m_real, gamma, beta):
    """Fold training-mode BN (biased variance) into per-channel scale/shift (f32)."""
    s = jnp.sum(col_sum[:, 0, :], axis=0, keepdims=True)      # (1, C)
    q = jnp.sum(col_sq[:, 0, :], axis=0, keepdims=True)       # (1, C)
    mean = s / m_real
    var = jnp.maximum(q / m_real - mean * mean, 0.0)
    scale = gamma * jax.lax.rsqrt(var + EPS)
    shift = beta - mean * scale
    return scale, shift


def _extract_patches(x_nhwc, ksize, stride, pad):
    """im2col: (N,H,W,C) -> (N*Ho*Wo, k*k*C), column order (kh, kw, c). Keeps dtype."""
    N, H, W, C = x_nhwc.shape
    xp = jnp.pad(x_nhwc, ((0, 0), (pad, pad), (pad, pad), (0, 0)))
    Ho = (H + 2 * pad - ksize) // stride + 1
    Wo = (W + 2 * pad - ksize) // stride + 1
    slices = []
    for kh in range(ksize):
        for kw in range(ksize):
            slices.append(xp[:, kh:kh + stride * (Ho - 1) + 1:stride,
                                kw:kw + stride * (Wo - 1) + 1:stride, :])
    patches = jnp.stack(slices, axis=3)                        # (N, Ho, Wo, k*k, C)
    return patches.reshape(N * Ho * Wo, ksize * ksize * C), (Ho, Wo)


def _pad_channels_w(w, cin_p, cout_p):
    _, _, cin, cout = w.shape
    return jnp.pad(w, ((0, 0), (0, 0), (0, cin_p - cin), (0, cout_p - cout)))


def _pad_channels_vec(v, c_p):
    return jnp.pad(v.astype(jnp.float32), ((0, 0), (0, c_p - v.shape[1])))


def init_params(key, indim, outdim):
    k1, k2, k3 = jax.random.split(key, 3)
    std3 = math.sqrt(2.0 / float(3 * 3 * outdim))              # init_layer for 3x3 convs
    params = {
        "W1": std3 * jax.random.normal(k1, (3, 3, indim, outdim), jnp.float32),
        "W2": std3 * jax.random.normal(k2, (3, 3, outdim, outdim), jnp.float32),
        "g1": jnp.ones((1, outdim), jnp.float32), "b1": jnp.zeros((1, outdim), jnp.float32),
        "g2": jnp.ones((1, outdim), jnp.float32), "b2": jnp.zeros((1, outdim), jnp.float32),
    }
    if indim != outdim:
        std1 = math.sqrt(2.0 / float(1 * 1 * outdim))          # 1x1 shortcut conv
        params["Wsc"] = std1 * jax.random.normal(k3, (1, 1, indim, outdim), jnp.float32)
        params["gsc"] = jnp.ones((1, outdim), jnp.float32)
        params["bsc"] = jnp.zeros((1, outdim), jnp.float32)
    return params


def simple_block_forward(x_nchw, params, half_res):
    """Pallas implementation of SimpleBlock.forward (training-mode BN). NCHW in/out."""
    N, Cin, H, W = x_nchw.shape
    Cout = params["W1"].shape[-1]
    s1 = 2 if half_res else 1
    identity = "Wsc" not in params
    if identity and Cin != Cout:
        raise ValueError("identity shortcut requires indim == outdim")
    if identity and half_res:
        raise ValueError("identity shortcut with half_res=True has mismatched spatial "
                         "shapes (the PyTorch module would fail at the residual add too)")

    Cin_p = _round_up(Cin, LANE)
    Cout_p = _round_up(Cout, LANE)

    # NCHW -> NHWC fused with the f32 -> bf16 cast; pad channels to lane multiples.
    x = jnp.transpose(x_nchw, (0, 2, 3, 1)).astype(jnp.bfloat16)
    xp = jnp.pad(x, ((0, 0), (0, 0), (0, 0), (0, Cin_p - Cin)))

    # ---- conv1 (3x3, stride s1, pad 1) + fused 1x1 shortcut, BN stats in epilogue ----
    p1, (Ho, Wo) = _extract_patches(xp, 3, s1, 1)              # (M, 9*Cin_p) bf16
    M = N * Ho * Wo
    Mp = _round_up(M, M_PAD)                                   # zero rows are stats-safe
    if Mp != M:
        p1 = jnp.pad(p1, ((0, Mp - M), (0, 0)))

    W1 = _pad_channels_w(params["W1"], Cin_p, Cout_p).reshape(9 * Cin_p, Cout_p)
    W1 = W1.astype(jnp.bfloat16)
    g1 = _pad_channels_vec(params["g1"], Cout_p)
    b1 = _pad_channels_vec(params["b1"], Cout_p)

    if not identity:
        Wsc = _pad_channels_w(params["Wsc"], Cin_p, Cout_p).reshape(Cin_p, Cout_p)
        Wsc = Wsc.astype(jnp.bfloat16)
        gsc = _pad_channels_vec(params["gsc"], Cout_p)
        bsc = _pad_channels_vec(params["bsc"], Cout_p)
        (y1, s1_sum, s1_sq,
         ysc, sc_sum, sc_sq) = pallas_conv_matmul(p1, W1, cin_p=Cin_p, wsc=Wsc,
                                                  out_dtype=jnp.bfloat16)
        scsc, shsc = _bn_scale_shift(sc_sum, sc_sq, M, gsc, bsc)
        short = ysc                                            # bf16
    else:
        y1, s1_sum, s1_sq = pallas_conv_matmul(p1, W1, cin_p=Cin_p,
                                               out_dtype=jnp.bfloat16)
        short = xp.reshape(M, Cin_p)                           # bf16 identity path
        if Mp != M:
            short = jnp.pad(short, ((0, Mp - M), (0, 0)))
        scsc = jnp.ones((1, Cout_p), jnp.float32)
        shsc = jnp.zeros((1, Cout_p), jnp.float32)

    sc1, sh1 = _bn_scale_shift(s1_sum, s1_sq, M, g1, b1)
    a1 = pallas_affine_relu(y1, sc1, sh1, out_dtype=jnp.bfloat16)   # bf16 for next MXU

    # ---- conv2 (3x3, stride 1, pad 1) with BN2 stats ----
    a1_nhwc = a1[:M].reshape(N, Ho, Wo, Cout_p)
    p2, _ = _extract_patches(a1_nhwc, 3, 1, 1)
    if Mp != M:
        p2 = jnp.pad(p2, ((0, Mp - M), (0, 0)))

    W2 = _pad_channels_w(params["W2"], Cout_p, Cout_p).reshape(9 * Cout_p, Cout_p)
    W2 = W2.astype(jnp.bfloat16)
    g2 = _pad_channels_vec(params["g2"], Cout_p)
    b2 = _pad_channels_vec(params["b2"], Cout_p)

    y2, s2_sum, s2_sq = pallas_conv_matmul(p2, W2, cin_p=Cout_p, out_dtype=jnp.bfloat16)
    sc2, sh2 = _bn_scale_shift(s2_sum, s2_sq, M, g2, b2)

    # ---- BN2 + BN_shortcut + residual add + final ReLU, fused (bf16 inputs) ----
    out = pallas_affine_add_relu(y2, short, sc2, sh2, scsc, shsc)
    out = out[:M, :Cout].reshape(N, Ho, Wo, Cout)
    return jnp.transpose(out, (0, 3, 1, 2))                    # NHWC -> NCHW


# ------------------------ pure-JAX reference check -------------------------- #

def _ref_conv(x, w, stride, pad):
    # Same numerics as the kernels: bf16-rounded operands, f32 accumulation,
    # conv output stored in bf16 (the Pallas pipeline stores y1/y2/ysc in bf16;
    # BN statistics are computed from the f32 accumulator, which differs only at ~1e-4).
    y = jax.lax.conv_general_dilated(
        x.astype(jnp.bfloat16).astype(jnp.float32),
        w.astype(jnp.bfloat16).astype(jnp.float32),
        window_strides=(stride, stride), padding=[(pad, pad), (pad, pad)],
        dimension_numbers=("NHWC", "HWIO", "NHWC"))
    return y.astype(jnp.bfloat16).astype(jnp.float32)


def _ref_bn(x, gamma, beta):
    mean = jnp.mean(x, axis=(0, 1, 2), keepdims=True)
    var = jnp.mean((x - mean) ** 2, axis=(0, 1, 2), keepdims=True)
    return (x - mean) * jax.lax.rsqrt(var + EPS) * gamma + beta


def reference_forward(x_nchw, params, half_res):
    x = jnp.transpose(x_nchw, (0, 2, 3, 1)).astype(jnp.float32)
    s1 = 2 if half_res else 1
    y = _ref_conv(x, params["W1"], s1, 1)
    y = jnp.maximum(_ref_bn(y, params["g1"].reshape(-1), params["b1"].reshape(-1)), 0.0)
    y = _ref_conv(y, params["W2"], 1, 1)
    y = _ref_bn(y, params["g2"].reshape(-1), params["b2"].reshape(-1))
    if "Wsc" in params:
        sc = _ref_conv(x, params["Wsc"], s1, 0)
        sc = _ref_bn(sc, params["gsc"].reshape(-1), params["bsc"].reshape(-1))
    else:
        sc = x.astype(jnp.bfloat16).astype(jnp.float32)
    out = jnp.maximum(y + sc, 0.0)
    return jnp.transpose(out, (0, 3, 1, 2))


# ---------------------------------- main ------------------------------------ #

if __name__ == "__main__":
    key = jax.random.PRNGKey(0)
    kx, kp = jax.random.split(key)

    N, indim, H, W = 2, 4, 16, 16
    outdim = 8
    half_res = True          # exercises stride-2 convs and the fused 1x1 BN-shortcut

    x = jax.random.normal(kx, (N, indim, H, W), jnp.float32)   # NCHW, like PyTorch
    params = init_params(kp, indim, outdim)

    fwd = jax.jit(functools.partial(simple_block_forward, half_res=half_res))
    out = jax.block_until_ready(fwd(x, params))

    ref = reference_forward(x, params, half_res)
    assert out.shape == ref.shape == (N, outdim, H // 2, W // 2)
    max_err = float(jnp.max(jnp.abs(out - ref)))
    # tolerance accounts for bf16 storage of conv outputs (mirrored in the reference)
    assert jnp.allclose(out, ref, atol=1e-2, rtol=1e-2), \
        f"mismatch vs JAX reference (max abs err {max_err})"

    print("KERNEL_OK")
</pallas_src>

<mosaic_0001>
module attributes {stable_mosaic.version = 11 : i64} {
  func.func @_mm_stats_shortcut_kernel(%arg0: i32, %arg1: i32, %arg2: i32, %arg3: memref<256x128xbf16, #tpu.memory_space<vmem>>, %arg4: memref<128x128xbf16, #tpu.memory_space<vmem>>, %arg5: memref<128x128xbf16, #tpu.memory_space<vmem>>, %arg6: memref<256x128xbf16, #tpu.memory_space<vmem>>, %arg7: memref<1x1x128xf32, #tpu.memory_space<vmem>>, %arg8: memref<1x1x128xf32, #tpu.memory_space<vmem>>, %arg9: memref<256x128xbf16, #tpu.memory_space<vmem>>, %arg10: memref<1x1x128xf32, #tpu.memory_space<vmem>>, %arg11: memref<1x1x128xf32, #tpu.memory_space<vmem>>, %arg12: memref<256x128xf32, #tpu.memory_space<vmem>>, %arg13: memref<256x128xf32, #tpu.memory_space<vmem>>) attributes {dimension_semantics = [#tpu.dimension_semantics<parallel>, #tpu.dimension_semantics<parallel>, #tpu.dimension_semantics<arbitrary>], iteration_bounds = array<i64: 2, 1, 9>, scalar_prefetch = 0 : i64, scratch_operands = 2 : i64, tpu.core_type = #tpu.core_type<tc>, window_params = [{transform_indices = @transform_0, window_bounds = array<i64: 256, 128>}, {transform_indices = @transform_1, window_bounds = array<i64: 128, 128>}, {transform_indices = @transform_2, window_bounds = array<i64: 128, 128>}, {transform_indices = @transform_3, window_bounds = array<i64: 256, 128>}, {transform_indices = @transform_4, window_bounds = array<i64: 1, 1, 128>}, {transform_indices = @transform_5, window_bounds = array<i64: 1, 1, 128>}, {transform_indices = @transform_6, window_bounds = array<i64: 256, 128>}, {transform_indices = @transform_7, window_bounds = array<i64: 1, 1, 128>}, {transform_indices = @transform_8, window_bounds = array<i64: 1, 1, 128>}]} {
    %c0_i32 = arith.constant 0 : i32
    %0 = arith.cmpi eq, %arg2, %c0_i32 : i32
    %1 = arith.extui %0 : i1 to i32
    %c0_i32_0 = arith.constant 0 : i32
    %2 = arith.cmpi ne, %1, %c0_i32_0 : i32
    scf.if %2 {
      %cst_10 = arith.constant 0.000000e+00 : f32
      %17 = vector.broadcast %cst_10 : f32 to vector<256x128xf32>
      %c0_11 = arith.constant 0 : index
      %c0_12 = arith.constant 0 : index
      %18 = vector.load %arg12[%c0_11, %c0_12] : memref<256x128xf32, #tpu.memory_space<vmem>>, vector<256x128xf32>
      tpu.vector_store %arg12[%c0_11, %c0_12], %17 {strides = array<i32>} : memref<256x128xf32, #tpu.memory_space<vmem>>, vector<256x128xf32>,
      %cst_13 = arith.constant 0.000000e+00 : f32
      %19 = vector.broadcast %cst_13 : f32 to vector<256x128xf32>
      %c0_14 = arith.constant 0 : index
      %c0_15 = arith.constant 0 : index
      %20 = vector.load %arg13[%c0_14, %c0_15] : memref<256x128xf32, #tpu.memory_space<vmem>>, vector<256x128xf32>
      tpu.vector_store %arg13[%c0_14, %c0_15], %19 {strides = array<i32>} : memref<256x128xf32, #tpu.memory_space<vmem>>, vector<256x128xf32>,
    } else {
    }
    %c0 = arith.constant 0 : index
    %c0_1 = arith.constant 0 : index
    %3 = vector.load %arg12[%c0, %c0_1] : memref<256x128xf32, #tpu.memory_space<vmem>>, vector<256x128xf32>
    %c0_2 = arith.constant 0 : index
    %c0_3 = arith.constant 0 : index
    %4 = vector.load %arg3[%c0_2, %c0_3] : memref<256x128xbf16, #tpu.memory_space<vmem>>, vector<256x128xbf16>
    %c0_4 = arith.constant 0 : index
    %c0_5 = arith.constant 0 : index
    %5 = vector.load %arg4[%c0_4, %c0_5] : memref<128x128xbf16, #tpu.memory_space<vmem>>, vector<128x128xbf16>
    %cst = arith.constant dense<0.000000e+00> : vector<256x128xf32>
    %6 = tpu.matmul %4, %5, %cst {dimension_numbers = #tpu.dot_dimension_numbers<[1], [0], [0], [1], [0, 0, 1, 1], [], []>} : vector<256x128xbf16>, vector<128x128xbf16>, vector<256x128xf32> -> vector<256x128xf32>
    %7 = arith.addf %3, %6 : vector<256x128xf32>
    %c0_6 = arith.constant 0 : index
    %c0_7 = arith.constant 0 : index
    %8 = vector.load %arg12[%c0_6, %c0_7] : memref<256x128xf32, #tpu.memory_space<vmem>>, vector<256x128xf32>
    tpu.vector_store %arg12[%c0_6, %c0_7], %7 {strides = array<i32>} : memref<256x128xf32, #tpu.memory_space<vmem>>, vector<256x128xf32>,
    %c4_i32 = arith.constant 4 : i32
    %9 = arith.cmpi sge, %arg2, %c4_i32 : i32
    %c5_i32 = arith.constant 5 : i32
    %10 = arith.cmpi slt, %arg2, %c5_i32 : i32
    %11 = arith.andi %9, %10 : i1
    %12 = arith.extui %11 : i1 to i32
    %c0_i32_8 = arith.constant 0 : i32
    %13 = arith.cmpi ne, %12, %c0_i32_8 : i32
    scf.if %13 {
      %c0_10 = arith.constant 0 : index
      %c0_11 = arith.constant 0 : index
      %17 = vector.load %arg13[%c0_10, %c0_11] : memref<256x128xf32, #tpu.memory_space<vmem>>, vector<256x128xf32>
      %c0_12 = arith.constant 0 : index
      %c0_13 = arith.constant 0 : index
      %18 = vector.load %arg3[%c0_12, %c0_13] : memref<256x128xbf16, #tpu.memory_space<vmem>>, vector<256x128xbf16>
      %c0_14 = arith.constant 0 : index
      %c0_15 = arith.constant 0 : index
      %19 = vector.load %arg5[%c0_14, %c0_15] : memref<128x128xbf16, #tpu.memory_space<vmem>>, vector<128x128xbf16>
      %cst_16 = arith.constant dense<0.000000e+00> : vector<256x128xf32>
      %20 = tpu.matmul %18, %19, %cst_16 {dimension_numbers = #tpu.dot_dimension_numbers<[1], [0], [0], [1], [0, 0, 1, 1], [], []>} : vector<256x128xbf16>, vector<128x128xbf16>, vector<256x128xf32> -> vector<256x128xf32>
      %21 = arith.addf %17, %20 : vector<256x128xf32>
      %c0_17 = arith.constant 0 : index
      %c0_18 = arith.constant 0 : index
      %22 = vector.load %arg13[%c0_17, %c0_18] : memref<256x128xf32, #tpu.memory_space<vmem>>, vector<256x128xf32>
      tpu.vector_store %arg13[%c0_17, %c0_18], %21 {strides = array<i32>} : memref<256x128xf32, #tpu.memory_space<vmem>>, vector<256x128xf32>,
    } else {
    }
    %c8_i32 = arith.constant 8 : i32
    %14 = arith.cmpi eq, %arg2, %c8_i32 : i32
    %15 = arith.extui %14 : i1 to i32
    %c0_i32_9 = arith.constant 0 : i32
    %16 = arith.cmpi ne, %15, %c0_i32_9 : i32
    scf.if %16 {
      %c0_10 = arith.constant 0 : index
      %c0_11 = arith.constant 0 : index
      %17 = vector.load %arg12[%c0_10, %c0_11] : memref<256x128xf32, #tpu.memory_space<vmem>>, vector<256x128xf32>
      %18 = arith.truncf %17 : vector<256x128xf32> to vector<256x128xbf16>
      %c0_12 = arith.constant 0 : index
      %c0_13 = arith.constant 0 : index
      %19 = vector.load %arg6[%c0_12, %c0_13] : memref<256x128xbf16, #tpu.memory_space<vmem>>, vector<256x128xbf16>
      tpu.vector_store %arg6[%c0_12, %c0_13], %18 {strides = array<i32>} : memref<256x128xbf16, #tpu.memory_space<vmem>>, vector<256x128xbf16>,
      %cst_14 = arith.constant dense<0.000000e+00> : vector<128xf32>
      %20 = vector.multi_reduction <add>, %17, %cst_14 [0] : vector<256x128xf32> to vector<128xf32>
      %21 = vector.shape_cast %20 : vector<128xf32> to vector<1x128xf32>
      %22 = vector.shape_cast %21 : vector<1x128xf32> to vector<1x1x128xf32>
      %c0_15 = arith.constant 0 : index
      %c0_16 = arith.constant 0 : index
      %c0_17 = arith.constant 0 : index
      %23 = vector.load %arg7[%c0_15, %c0_16, %c0_17] : memref<1x1x128xf32, #tpu.memory_space<vmem>>, vector<1x1x128xf32>
      tpu.vector_store %arg7[%c0_15, %c0_16, %c0_17], %22 {strides = array<i32>} : memref<1x1x128xf32, #tpu.memory_space<vmem>>, vector<1x1x128xf32>,
      %24 = arith.mulf %17, %17 : vector<256x128xf32>
      %cst_18 = arith.constant dense<0.000000e+00> : vector<128xf32>
      %25 = vector.multi_reduction <add>, %24, %cst_18 [0] : vector<256x128xf32> to vector<128xf32>
      %26 = vector.shape_cast %25 : vector<128xf32> to vector<1x128xf32>
      %27 = vector.shape_cast %26 : vector<1x128xf32> to vector<1x1x128xf32>
      %c0_19 = arith.constant 0 : index
      %c0_20 = arith.constant 0 : index
      %c0_21 = arith.constant 0 : index
      %28 = vector.load %arg8[%c0_19, %c0_20, %c0_21] : memref<1x1x128xf32, #tpu.memory_space<vmem>>, vector<1x1x128xf32>
      tpu.vector_store %arg8[%c0_19, %c0_20, %c0_21], %27 {strides = array<i32>} : memref<1x1x128xf32, #tpu.memory_space<vmem>>, vector<1x1x128xf32>,
      %c0_22 = arith.constant 0 : index
      %c0_23 = arith.constant 0 : index
      %29 = vector.load %arg13[%c0_22, %c0_23] : memref<256x128xf32, #tpu.memory_space<vmem>>, vector<256x128xf32>
      %30 = arith.truncf %29 : vector<256x128xf32> to vector<256x128xbf16>
      %c0_24 = arith.constant 0 : index
      %c0_25 = arith.constant 0 : index
      %31 = vector.load %arg9[%c0_24, %c0_25] : memref<256x128xbf16, #tpu.memory_space<vmem>>, vector<256x128xbf16>
      tpu.vector_store %arg9[%c0_24, %c0_25], %30 {strides = array<i32>} : memref<256x128xbf16, #tpu.memory_space<vmem>>, vector<256x128xbf16>,
      %cst_26 = arith.constant dense<0.000000e+00> : vector<128xf32>
      %32 = vector.multi_reduction <add>, %29, %cst_26 [0] : vector<256x128xf32> to vector<128xf32>
      %33 = vector.shape_cast %32 : vector<128xf32> to vector<1x128xf32>
      %34 = vector.shape_cast %33 : vector<1x128xf32> to vector<1x1x128xf32>
      %c0_27 = arith.constant 0 : index
      %c0_28 = arith.constant 0 : index
      %c0_29 = arith.constant 0 : index
      %35 = vector.load %arg10[%c0_27, %c0_28, %c0_29] : memref<1x1x128xf32, #tpu.memory_space<vmem>>, vector<1x1x128xf32>
      tpu.vector_store %arg10[%c0_27, %c0_28, %c0_29], %34 {strides = array<i32>} : memref<1x1x128xf32, #tpu.memory_space<vmem>>, vector<1x1x128xf32>,
      %36 = arith.mulf %29, %29 : vector<256x128xf32>
      %cst_30 = arith.constant dense<0.000000e+00> : vector<128xf32>
      %37 = vector.multi_reduction <add>, %36, %cst_30 [0] : vector<256x128xf32> to vector<128xf32>
      %38 = vector.shape_cast %37 : vector<128xf32> to vector<1x128xf32>
      %39 = vector.shape_cast %38 : vector<1x128xf32> to vector<1x1x128xf32>
      %c0_31 = arith.constant 0 : index
      %c0_32 = arith.constant 0 : index
      %c0_33 = arith.constant 0 : index
      %40 = vector.load %arg11[%c0_31, %c0_32, %c0_33] : memref<1x1x128xf32, #tpu.memory_space<vmem>>, vector<1x1x128xf32>
      tpu.vector_store %arg11[%c0_31, %c0_32, %c0_33], %39 {strides = array<i32>} : memref<1x1x128xf32, #tpu.memory_space<vmem>>, vector<1x1x128xf32>,
    } else {
    }
    return
  }
  func.func @transform_0(%arg0: i32, %arg1: i32, %arg2: i32) -> (i32, i32) {
    %c0_i32 = arith.constant 0 : i32
    return %arg0, %arg2 : i32, i32
  }
  func.func @transform_1(%arg0: i32, %arg1: i32, %arg2: i32) -> (i32, i32) {
    %c0_i32 = arith.constant 0 : i32
    return %arg2, %arg1 : i32, i32
  }
  func.func @transform_2(%arg0: i32, %arg1: i32, %arg2: i32) -> (i32, i32) {
    %c4_i32 = arith.constant 4 : i32
    %0 = arith.subi %arg2, %c4_i32 : i32
    %c0_i32 = arith.constant 0 : i32
    %1 = arith.minsi %0, %c0_i32 : i32
    %c0_i32_0 = arith.constant 0 : i32
    %2 = arith.maxsi %1, %c0_i32_0 : i32
    %c0_i32_1 = arith.constant 0 : i32
    return %2, %arg1 : i32, i32
  }
  func.func @transform_3(%arg0: i32, %arg1: i32, %arg2: i32) -> (i32, i32) {
    %c0_i32 = arith.constant 0 : i32
    return %arg0, %arg1 : i32, i32
  }
  func.func @transform_4(%arg0: i32, %arg1: i32, %arg2: i32) -> (i32, i32, i32) {
    %c0_i32 = arith.constant 0 : i32
    %c0_i32_0 = arith.constant 0 : i32
    return %arg0, %c0_i32, %arg1 : i32, i32, i32
  }
  func.func @transform_5(%arg0: i32, %arg1: i32, %arg2: i32) -> (i32, i32, i32) {
    %c0_i32 = arith.constant 0 : i32
    %c0_i32_0 = arith.constant 0 : i32
    return %arg0, %c0_i32, %arg1 : i32, i32, i32
  }
  func.func @transform_6(%arg0: i32, %arg1: i32, %arg2: i32) -> (i32, i32) {
    %c0_i32 = arith.constant 0 : i32
    return %arg0, %arg1 : i32, i32
  }
  func.func @transform_7(%arg0: i32, %arg1: i32, %arg2: i32) -> (i32, i32, i32) {
    %c0_i32 = arith.constant 0 : i32
    %c0_i32_0 = arith.constant 0 : i32
    return %arg0, %c0_i32, %arg1 : i32, i32, i32
  }
  func.func @transform_8(%arg0: i32, %arg1: i32, %arg2: i32) -> (i32, i32, i32) {
    %c0_i32 = arith.constant 0 : i32
    %c0_i32_0 = arith.constant 0 : i32
    return %arg0, %c0_i32, %arg1 : i32, i32, i32
  }
}

module attributes {stable_mosaic.version = 11 : i64} {
  func.func @_affine_relu_kernel(%arg0: i32, %arg1: i32, %arg2: memref<256x128xbf16, #tpu.memory_space<vmem>>, %arg3: memref<1x128xf32, #tpu.memory_space<vmem>>, %arg4: memref<1x128xf32, #tpu.memory_space<vmem>>, %arg5: memref<256x128xbf16, #tpu.memory_space<vmem>>) attributes {dimension_semantics = [#tpu.dimension_semantics<parallel>, #tpu.dimension_semantics<parallel>], iteration_bounds = array<i64: 2, 1>, scalar_prefetch = 0 : i64, scratch_operands = 0 : i64, tpu.core_type = #tpu.core_type<tc>, window_params = [{transform_indices = @transform_0, window_bounds = array<i64: 256, 128>}, {transform_indices = @transform_1, window_bounds = array<i64: 1, 128>}, {transform_indices = @transform_2, window_bounds = array<i64: 1, 128>}, {transform_indices = @transform_3, window_bounds = array<i64: 256, 128>}]} {
    %c0 = arith.constant 0 : index
    %c0_0 = arith.constant 0 : index
    %0 = vector.load %arg2[%c0, %c0_0] : memref<256x128xbf16, #tpu.memory_space<vmem>>, vector<256x128xbf16>
    %1 = arith.extf %0 : vector<256x128xbf16> to vector<256x128xf32>
    %c0_1 = arith.constant 0 : index
    %c0_2 = arith.constant 0 : index
    %2 = vector.load %arg3[%c0_1, %c0_2] : memref<1x128xf32, #tpu.memory_space<vmem>>, vector<1x128xf32>
    %3 = vector.broadcast %2 : vector<1x128xf32> to vector<256x128xf32>
    %4 = arith.mulf %1, %3 : vector<256x128xf32>
    %c0_3 = arith.constant 0 : index
    %c0_4 = arith.constant 0 : index
    %5 = vector.load %arg4[%c0_3, %c0_4] : memref<1x128xf32, #tpu.memory_space<vmem>>, vector<1x128xf32>
    %6 = vector.broadcast %5 : vector<1x128xf32> to vector<256x128xf32>
    %7 = arith.addf %4, %6 : vector<256x128xf32>
    %cst = arith.constant 0.000000e+00 : f32
    %8 = vector.broadcast %cst : f32 to vector<256x128xf32>
    %9 = arith.maximumf %7, %8 : vector<256x128xf32>
    %10 = arith.truncf %9 : vector<256x128xf32> to vector<256x128xbf16>
    %c0_5 = arith.constant 0 : index
    %c0_6 = arith.constant 0 : index
    %11 = vector.load %arg5[%c0_5, %c0_6] : memref<256x128xbf16, #tpu.memory_space<vmem>>, vector<256x128xbf16>
    tpu.vector_store %arg5[%c0_5, %c0_6], %10 {strides = array<i32>} : memref<256x128xbf16, #tpu.memory_space<vmem>>, vector<256x128xbf16>,
    return
  }
  func.func @transform_0(%arg0: i32, %arg1: i32) -> (i32, i32) {
    %c0_i32 = arith.constant 0 : i32
    return %arg0, %arg1 : i32, i32
  }
  func.func @transform_1(%arg0: i32, %arg1: i32) -> (i32, i32) {
    %c0_i32 = arith.constant 0 : i32
    %c0_i32_0 = arith.constant 0 : i32
    return %c0_i32, %arg1 : i32, i32
  }
  func.func @transform_2(%arg0: i32, %arg1: i32) -> (i32, i32) {
    %c0_i32 = arith.constant 0 : i32
    %c0_i32_0 = arith.constant 0 : i32
    return %c0_i32, %arg1 : i32, i32
  }
  func.func @transform_3(%arg0: i32, %arg1: i32) -> (i32, i32) {
    %c0_i32 = arith.constant 0 : i32
    return %arg0, %arg1 : i32, i32
  }
}

module attributes {stable_mosaic.version = 11 : i64} {
  func.func @_affine_add_relu_kernel(%arg0: i32, %arg1: i32, %arg2: memref<256x128xbf16, #tpu.memory_space<vmem>>, %arg3: memref<256x128xbf16, #tpu.memory_space<vmem>>, %arg4: memref<1x128xf32, #tpu.memory_space<vmem>>, %arg5: memref<1x128xf32, #tpu.memory_space<vmem>>, %arg6: memref<1x128xf32, #tpu.memory_space<vmem>>, %arg7: memref<1x128xf32, #tpu.memory_space<vmem>>, %arg8: memref<256x128xf32, #tpu.memory_space<vmem>>) attributes {dimension_semantics = [#tpu.dimension_semantics<parallel>, #tpu.dimension_semantics<parallel>], iteration_bounds = array<i64: 2, 1>, scalar_prefetch = 0 : i64, scratch_operands = 0 : i64, tpu.core_type = #tpu.core_type<tc>, window_params = [{transform_indices = @transform_0, window_bounds = array<i64: 256, 128>}, {transform_indices = @transform_1, window_bounds = array<i64: 256, 128>}, {transform_indices = @transform_2, window_bounds = array<i64: 1, 128>}, {transform_indices = @transform_3, window_bounds = array<i64: 1, 128>}, {transform_indices = @transform_4, window_bounds = array<i64: 1, 128>}, {transform_indices = @transform_5, window_bounds = array<i64: 1, 128>}, {transform_indices = @transform_6, window_bounds = array<i64: 256, 128>}]} {
    %c0 = arith.constant 0 : index
    %c0_0 = arith.constant 0 : index
    %0 = vector.load %arg2[%c0, %c0_0] : memref<256x128xbf16, #tpu.memory_space<vmem>>, vector<256x128xbf16>
    %1 = arith.extf %0 : vector<256x128xbf16> to vector<256x128xf32>
    %c0_1 = arith.constant 0 : index
    %c0_2 = arith.constant 0 : index
    %2 = vector.load %arg4[%c0_1, %c0_2] : memref<1x128xf32, #tpu.memory_space<vmem>>, vector<1x128xf32>
    %3 = vector.broadcast %2 : vector<1x128xf32> to vector<256x128xf32>
    %4 = arith.mulf %1, %3 : vector<256x128xf32>
    %c0_3 = arith.constant 0 : index
    %c0_4 = arith.constant 0 : index
    %5 = vector.load %arg5[%c0_3, %c0_4] : memref<1x128xf32, #tpu.memory_space<vmem>>, vector<1x128xf32>
    %6 = vector.broadcast %5 : vector<1x128xf32> to vector<256x128xf32>
    %7 = arith.addf %4, %6 : vector<256x128xf32>
    %c0_5 = arith.constant 0 : index
    %c0_6 = arith.constant 0 : index
    %8 = vector.load %arg3[%c0_5, %c0_6] : memref<256x128xbf16, #tpu.memory_space<vmem>>, vector<256x128xbf16>
    %9 = arith.extf %8 : vector<256x128xbf16> to vector<256x128xf32>
    %c0_7 = arith.constant 0 : index
    %c0_8 = arith.constant 0 : index
    %10 = vector.load %arg6[%c0_7, %c0_8] : memref<1x128xf32, #tpu.memory_space<vmem>>, vector<1x128xf32>
    %11 = vector.broadcast %10 : vector<1x128xf32> to vector<256x128xf32>
    %12 = arith.mulf %9, %11 : vector<256x128xf32>
    %c0_9 = arith.constant 0 : index
    %c0_10 = arith.constant 0 : index
    %13 = vector.load %arg7[%c0_9, %c0_10] : memref<1x128xf32, #tpu.memory_space<vmem>>, vector<1x128xf32>
    %14 = vector.broadcast %13 : vector<1x128xf32> to vector<256x128xf32>
    %15 = arith.addf %12, %14 : vector<256x128xf32>
    %16 = arith.addf %7, %15 : vector<256x128xf32>
    %cst = arith.constant 0.000000e+00 : f32
    %17 = vector.broadcast %cst : f32 to vector<256x128xf32>
    %18 = arith.maximumf %16, %17 : vector<256x128xf32>
    %c0_11 = arith.constant 0 : index
    %c0_12 = arith.constant 0 : index
    %19 = vector.load %arg8[%c0_11, %c0_12] : memref<256x128xf32, #tpu.memory_space<vmem>>, vector<256x128xf32>
    tpu.vector_store %arg8[%c0_11, %c0_12], %18 {strides = array<i32>} : memref<256x128xf32, #tpu.memory_space<vmem>>, vector<256x128xf32>,
    return
  }
  func.func @transform_0(%arg0: i32, %arg1: i32) -> (i32, i32) {
    %c0_i32 = arith.constant 0 : i32
    return %arg0, %arg1 : i32, i32
  }
  func.func @transform_1(%arg0: i32, %arg1: i32) -> (i32, i32) {
    %c0_i32 = arith.constant 0 : i32
    return %arg0, %arg1 : i32, i32
  }
  func.func @transform_2(%arg0: i32, %arg1: i32) -> (i32, i32) {
    %c0_i32 = arith.constant 0 : i32
    %c0_i32_0 = arith.constant 0 : i32
    return %c0_i32, %arg1 : i32, i32
  }
  func.func @transform_3(%arg0: i32, %arg1: i32) -> (i32, i32) {
    %c0_i32 = arith.constant 0 : i32
    %c0_i32_0 = arith.constant 0 : i32
    return %c0_i32, %arg1 : i32, i32
  }
  func.func @transform_4(%arg0: i32, %arg1: i32) -> (i32, i32) {
    %c0_i32 = arith.constant 0 : i32
    %c0_i32_0 = arith.constant 0 : i32
    return %c0_i32, %arg1 : i32, i32
  }
  func.func @transform_5(%arg0: i32, %arg1: i32) -> (i32, i32) {
    %c0_i32 = arith.constant 0 : i32
    %c0_i32_0 = arith.constant 0 : i32
    return %c0_i32, %arg1 : i32, i32
  }
  func.func @transform_6(%arg0: i32, %arg1: i32) -> (i32, i32) {
    %c0_i32 = arith.constant 0 : i32
    return %arg0, %arg1 : i32, i32
  }
}

module attributes {stable_mosaic.version = 11 : i64} {
  func.func @_mm_stats_kernel(%arg0: i32, %arg1: i32, %arg2: i32, %arg3: memref<256x128xbf16, #tpu.memory_space<vmem>>, %arg4: memref<128x128xbf16, #tpu.memory_space<vmem>>, %arg5: memref<256x128xbf16, #tpu.memory_space<vmem>>, %arg6: memref<1x1x128xf32, #tpu.memory_space<vmem>>, %arg7: memref<1x1x128xf32, #tpu.memory_space<vmem>>, %arg8: memref<256x128xf32, #tpu.memory_space<vmem>>) attributes {dimension_semantics = [#tpu.dimension_semantics<parallel>, #tpu.dimension_semantics<parallel>, #tpu.dimension_semantics<arbitrary>], iteration_bounds = array<i64: 2, 1, 9>, scalar_prefetch = 0 : i64, scratch_operands = 1 : i64, tpu.core_type = #tpu.core_type<tc>, window_params = [{transform_indices = @transform_0, window_bounds = array<i64: 256, 128>}, {transform_indices = @transform_1, window_bounds = array<i64: 128, 128>}, {transform_indices = @transform_2, window_bounds = array<i64: 256, 128>}, {transform_indices = @transform_3, window_bounds = array<i64: 1, 1, 128>}, {transform_indices = @transform_4, window_bounds = array<i64: 1, 1, 128>}]} {
    %c0_i32 = arith.constant 0 : i32
    %0 = arith.cmpi eq, %arg2, %c0_i32 : i32
    %1 = arith.extui %0 : i1 to i32
    %c0_i32_0 = arith.constant 0 : i32
    %2 = arith.cmpi ne, %1, %c0_i32_0 : i32
    scf.if %2 {
      %cst_9 = arith.constant 0.000000e+00 : f32
      %12 = vector.broadcast %cst_9 : f32 to vector<256x128xf32>
      %c0_10 = arith.constant 0 : index
      %c0_11 = arith.constant 0 : index
      %13 = vector.load %arg8[%c0_10, %c0_11] : memref<256x128xf32, #tpu.memory_space<vmem>>, vector<256x128xf32>
      tpu.vector_store %arg8[%c0_10, %c0_11], %12 {strides = array<i32>} : memref<256x128xf32, #tpu.memory_space<vmem>>, vector<256x128xf32>,
    } else {
    }
    %c0 = arith.constant 0 : index
    %c0_1 = arith.constant 0 : index
    %3 = vector.load %arg8[%c0, %c0_1] : memref<256x128xf32, #tpu.memory_space<vmem>>, vector<256x128xf32>
    %c0_2 = arith.constant 0 : index
    %c0_3 = arith.constant 0 : index
    %4 = vector.load %arg3[%c0_2, %c0_3] : memref<256x128xbf16, #tpu.memory_space<vmem>>, vector<256x128xbf16>
    %c0_4 = arith.constant 0 : index
    %c0_5 = arith.constant 0 : index
    %5 = vector.load %arg4[%c0_4, %c0_5] : memref<128x128xbf16, #tpu.memory_space<vmem>>, vector<128x128xbf16>
    %cst = arith.constant dense<0.000000e+00> : vector<256x128xf32>
    %6 = tpu.matmul %4, %5, %cst {dimension_numbers = #tpu.dot_dimension_numbers<[1], [0], [0], [1], [0, 0, 1, 1], [], []>} : vector<256x128xbf16>, vector<128x128xbf16>, vector<256x128xf32> -> vector<256x128xf32>
    %7 = arith.addf %3, %6 : vector<256x128xf32>
    %c0_6 = arith.constant 0 : index
    %c0_7 = arith.constant 0 : index
    %8 = vector.load %arg8[%c0_6, %c0_7] : memref<256x128xf32, #tpu.memory_space<vmem>>, vector<256x128xf32>
    tpu.vector_store %arg8[%c0_6, %c0_7], %7 {strides = array<i32>} : memref<256x128xf32, #tpu.memory_space<vmem>>, vector<256x128xf32>,
    %c8_i32 = arith.constant 8 : i32
    %9 = arith.cmpi eq, %arg2, %c8_i32 : i32
    %10 = arith.extui %9 : i1 to i32
    %c0_i32_8 = arith.constant 0 : i32
    %11 = arith.cmpi ne, %10, %c0_i32_8 : i32
    scf.if %11 {
      %c0_9 = arith.constant 0 : index
      %c0_10 = arith.constant 0 : index
      %12 = vector.load %arg8[%c0_9, %c0_10] : memref<256x128xf32, #tpu.memory_space<vmem>>, vector<256x128xf32>
      %13 = arith.truncf %12 : vector<256x128xf32> to vector<256x128xbf16>
      %c0_11 = arith.constant 0 : index
      %c0_12 = arith.constant 0 : index
      %14 = vector.load %arg5[%c0_11, %c0_12] : memref<256x128xbf16, #tpu.memory_space<vmem>>, vector<256x128xbf16>
      tpu.vector_store %arg5[%c0_11, %c0_12], %13 {strides = array<i32>} : memref<256x128xbf16, #tpu.memory_space<vmem>>, vector<256x128xbf16>,
      %cst_13 = arith.constant dense<0.000000e+00> : vector<128xf32>
      %15 = vector.multi_reduction <add>, %12, %cst_13 [0] : vector<256x128xf32> to vector<128xf32>
      %16 = vector.shape_cast %15 : vector<128xf32> to vector<1x128xf32>
      %17 = vector.shape_cast %16 : vector<1x128xf32> to vector<1x1x128xf32>
      %c0_14 = arith.constant 0 : index
      %c0_15 = arith.constant 0 : index
      %c0_16 = arith.constant 0 : index
      %18 = vector.load %arg6[%c0_14, %c0_15, %c0_16] : memref<1x1x128xf32, #tpu.memory_space<vmem>>, vector<1x1x128xf32>
      tpu.vector_store %arg6[%c0_14, %c0_15, %c0_16], %17 {strides = array<i32>} : memref<1x1x128xf32, #tpu.memory_space<vmem>>, vector<1x1x128xf32>,
      %19 = arith.mulf %12, %12 : vector<256x128xf32>
      %cst_17 = arith.constant dense<0.000000e+00> : vector<128xf32>
      %20 = vector.multi_reduction <add>, %19, %cst_17 [0] : vector<256x128xf32> to vector<128xf32>
      %21 = vector.shape_cast %20 : vector<128xf32> to vector<1x128xf32>
      %22 = vector.shape_cast %21 : vector<1x128xf32> to vector<1x1x128xf32>
      %c0_18 = arith.constant 0 : index
      %c0_19 = arith.constant 0 : index
      %c0_20 = arith.constant 0 : index
      %23 = vector.load %arg7[%c0_18, %c0_19, %c0_20] : memref<1x1x128xf32, #tpu.memory_space<vmem>>, vector<1x1x128xf32>
      tpu.vector_store %arg7[%c0_18, %c0_19, %c0_20], %22 {strides = array<i32>} : memref<1x1x128xf32, #tpu.memory_space<vmem>>, vector<1x1x128xf32>,
    } else {
    }
    return
  }
  func.func @transform_0(%arg0: i32, %arg1: i32, %arg2: i32) -> (i32, i32) {
    %c0_i32 = arith.constant 0 : i32
    return %arg0, %arg2 : i32, i32
  }
  func.func @transform_1(%arg0: i32, %arg1: i32, %arg2: i32) -> (i32, i32) {
    %c0_i32 = arith.constant 0 : i32
    return %arg2, %arg1 : i32, i32
  }
  func.func @transform_2(%arg0: i32, %arg1: i32, %arg2: i32) -> (i32, i32) {
    %c0_i32 = arith.constant 0 : i32
    return %arg0, %arg1 : i32, i32
  }
  func.func @transform_3(%arg0: i32, %arg1: i32, %arg2: i32) -> (i32, i32, i32) {
    %c0_i32 = arith.constant 0 : i32
    %c0_i32_0 = arith.constant 0 : i32
    return %arg0, %c0_i32, %arg1 : i32, i32, i32
  }
  func.func @transform_4(%arg0: i32, %arg1: i32, %arg2: i32) -> (i32, i32, i32) {
    %c0_i32 = arith.constant 0 : i32
    %c0_i32_0 = arith.constant 0 : i32
    return %arg0, %c0_i32, %arg1 : i32, i32, i32
  }
}

</mosaic_0001>

<bundles_post_ra>
// kernel: simple_block_forward.5
= control target key start
LH: loop header
LB: loop body
LE: loop exit
PB: predicated region body
PF: predicated region fallthrough
CT: control target
= control target key end

     0   :  { %s990_s12 = smov 0   ;;  %s992_s13 = smov 0   ;;  %s1140_s0 = inlined_call_operand.vmem [shape: bf16[512,128], index: 0, kind: input, shape index: {}]   ;;  %s1141_s1 = inlined_call_operand.vmem [shape: f32[1,128], index: 1, kind: input, shape index: {}]   ;;  %s1142_s2 = inlined_call_operand.vmem [shape: f32[1,128], index: 2, kind: input, shape index: {}]   ;;  %s1143_s3 = inlined_call_operand.vmem [shape: bf16[512,128], index: 3, kind: output, shape index: {}]  }
   0x1   :  { %s994_s14 = smov 0  }
   0x2 LB: > { %s25_s15 = sadd.s32 1, %s964_s13  ;;  %p675_p0 = scmp.ge.s32.totalorder %s968_s14, 1  ;;  %s968_s14 = sphi %s994_s14, %s13_s14   ;;  %s964_s13 = sphi %s992_s13, %s1145_s13   ;;  %s960_s12 = sphi %s990_s12, %s1144_s12  }
   0x3   : > { %p27_p1 = scmp.ge.s32.totalorder %s25_s15, 2  ;;  %p173_p2 = scmp.lt.s32.totalorder %s968_s14, 3 }
   0x5   : > { %s1147_s15 = smov (%p27_p1, %s25_s15), 0  ;;  %p174_p3 = pnand %p675_p0, %p173_p2 }
   0x6   : > { %s676_s16 = sshll.u32 (!%p174_p3), %s960_s12, 5  ;;  %v1021_v0 = vld [vmem:[%s1141_s1] ss:$0 sm:$0xff] (!%p174_p3) }
   0x7   : > { %177 = sbr.rel (%p174_p3) target bundleno = 60 (0x3c), region = 32  ;;  %p210_p4 = scmp.lt.s32.totalorder (!%p174_p3), %s676_s16, 63  ;;  %v1030_v9 = vld [vmem:[%s1142_s2] ss:$0 sm:$0xff] (!%p174_p3) }
   0xe   : > { %s1149_s16 = smov (!%p210_p4, %s676_s16), 63 }
   0xf   : > { %s677_s17 = sshll.u32 %s1149_s16, 2 }
  0x10   : > { %s1016_s20 = scalar_lea.vmem %s1140_s0, %s677_s17  ;;  %s1055_s27 = scalar_lea.vmem %s1143_s3, %s677_s17 }
  0x11   : > { %v749_v1 = vld [vmem:[%s1016_s20] sm:$0xff]   ;;  %v892_v2 = vld [vmem:[%s1016_s20 + $0x8] sm:$0xff]   ;;  %v893_v3 = vld [vmem:[%s1016_s20 + $0x10] sm:$0xff]  }
  0x12   : > { %v750_v4 = vunpack.c.l.bf16 %v749_v1  ;;  %v751_v5 = vunpack.c.h.bf16 %v749_v1  ;;  %v754_v6 = vunpack.c.l.bf16 %v892_v2  ;;  %v755_v7 = vunpack.c.h.bf16 %v892_v2  ;;  %v894_v8 = vld [vmem:[%s1016_s20 + $0x18] sm:$0xff]   ;;  %v895_v30 = vld [vmem:[%s1016_s20 + $0x20] sm:$0xff]   ;;  %v896_v35 = vld [vmem:[%s1016_s20 + $0x28] sm:$0xff]  }
  0x13   : > { %v758_v10 = vunpack.c.l.bf16 %v893_v3  ;;  %v759_v11 = vunpack.c.h.bf16 %v893_v3  ;;  %v762_v12 = vunpack.c.l.bf16 %v894_v8  ;;  %v763_v13 = vunpack.c.h.bf16 %v894_v8  ;;  %v897_v40 = vld [vmem:[%s1016_s20 + $0x30] sm:$0xff]   ;;  %v898_v45 = vld [vmem:[%s1016_s20 + $0x38] sm:$0xff]   ;;  %v899_v3 = vld [vmem:[%s1016_s20 + $0x40] sm:$0xff]  }
  0x14   : > { %v304_v14 = vmul.f32 %v750_v4, %v1021_v0  ;;  %v305_v15 = vmul.f32 %v751_v5, %v1021_v0  ;;  %v306_v16 = vmul.f32 %v754_v6, %v1021_v0  ;;  %v307_v17 = vmul.f32 %v755_v7, %v1021_v0 }
  0x15   : > { %v308_v18 = vmul.f32 %v758_v10, %v1021_v0  ;;  %v309_v19 = vmul.f32 %v759_v11, %v1021_v0  ;;  %v310_v20 = vmul.f32 %v762_v12, %v1021_v0  ;;  %v311_v21 = vmul.f32 %v763_v13, %v1021_v0  ;;  %v900_v13 = vld [vmem:[%s1016_s20 + $0x48] sm:$0xff]  }
  0x16   : > { %v343_v22 = vadd.f32 %v1030_v9, %v304_v14  ;;  %v344_v23 = vadd.f32 %v1030_v9, %v305_v15  ;;  %v345_v24 = vadd.f32 %v1030_v9, %v306_v16  ;;  %v346_v25 = vadd.f32 %v1030_v9, %v307_v17 }
  0x17   : > { %v347_v26 = vadd.f32 %v1030_v9, %v308_v18  ;;  %v348_v27 = vadd.f32 %v1030_v9, %v309_v19  ;;  %v349_v28 = vadd.f32 %v1030_v9, %v310_v20  ;;  %v350_v29 = vadd.f32 %v1030_v9, %v311_v21  ;;  %v901_v18 = vld [vmem:[%s1016_s20 + $0x50] sm:$0xff]  }
  0x18   : > { %v375_v31 = vmax.f32 %v343_v22, 0.0  ;;  %v376_v32 = vmax.f32 %v344_v23, 0.0  ;;  %v377_v33 = vmax.f32 %v345_v24, 0.0  ;;  %v378_v34 = vmax.f32 %v346_v25, 0.0  ;;  %v902_v23 = vld [vmem:[%s1016_s20 + $0x58] sm:$0xff]  }
  0x19   : > { %v379_v36 = vmax.f32 %v347_v26, 0.0  ;;  %v380_v37 = vmax.f32 %v348_v27, 0.0  ;;  %v381_v38 = vmax.f32 %v349_v28, 0.0  ;;  %v382_v39 = vmax.f32 %v350_v29, 0.0 }
  0x1a   : > { %v815_v41 = vpack.c.bf16 %v376_v32, %v375_v31  ;;  %v820_v42 = vpack.c.bf16 %v378_v34, %v377_v33  ;;  %v766_v43 = vunpack.c.l.bf16 %v895_v30  ;;  %v767_v44 = vunpack.c.h.bf16 %v895_v30 }
  0x1b   : > { %v825_v46 = vpack.c.bf16 %v380_v37, %v379_v36  ;;  %v830_v47 = vpack.c.bf16 %v382_v39, %v381_v38  ;;  %v770_v48 = vunpack.c.l.bf16 %v896_v35  ;;  %v771_v49 = vunpack.c.h.bf16 %v896_v35 }
  0x1c   : > { %816 = vst [vmem:[%s1055_s27] sm:$0xff] %v815_v41   ;;  %907 = vst [vmem:[%s1055_s27 + $0x8] sm:$0xff] %v820_v42   ;;  %v312_v50 = vmul.f32 %v766_v43, %v1021_v0  ;;  %v313_v51 = vmul.f32 %v767_v44, %v1021_v0  ;;  %v774_v52 = vunpack.c.l.bf16 %v897_v40  ;;  %v775_v53 = vunpack.c.h.bf16 %v897_v40  ;;  %v903_v40 = vld [vmem:[%s1016_s20 + $0x60] sm:$0xff]  }
  0x1d   : > { %908 = vst [vmem:[%s1055_s27 + $0x10] sm:$0xff] %v825_v46   ;;  %909 = vst [vmem:[%s1055_s27 + $0x18] sm:$0xff] %v830_v47   ;;  %v314_v54 = vmul.f32 %v770_v48, %v1021_v0  ;;  %v315_v55 = vmul.f32 %v771_v49, %v1021_v0  ;;  %v778_v56 = vunpack.c.l.bf16 %v898_v45  ;;  %v779_v57 = vunpack.c.h.bf16 %v898_v45 }
  0x1e   : > { %v351_v58 = vadd.f32 %v1030_v9, %v312_v50  ;;  %v352_v59 = vadd.f32 %v1030_v9, %v313_v51  ;;  %v316_v60 = vmul.f32 %v774_v52, %v1021_v0  ;;  %v317_v61 = vmul.f32 %v775_v53, %v1021_v0  ;;  %v904_v53 = vld [vmem:[%s1016_s20 + $0x68] sm:$0xff]  }
  0x1f   : > { %v353_v62 = vadd.f32 %v1030_v9, %v314_v54  ;;  %v354_v63 = vadd.f32 %v1030_v9, %v315_v55  ;;  %v318_v1 = vmul.f32 %v778_v56, %v1021_v0  ;;  %v319_v2 = vmul.f32 %v779_v57, %v1021_v0 }
  0x20   : > { %v383_v4 = vmax.f32 %v351_v58, 0.0  ;;  %v384_v5 = vmax.f32 %v352_v59, 0.0  ;;  %v355_v6 = vadd.f32 %v1030_v9, %v316_v60  ;;  %v356_v7 = vadd.f32 %v1030_v9, %v317_v61  ;;  %v905_v58 = vld [vmem:[%s1016_s20 + $0x70] sm:$0xff]  }
  0x21   : > { %v385_v8 = vmax.f32 %v353_v62, 0.0  ;;  %v386_v10 = vmax.f32 %v354_v63, 0.0  ;;  %v357_v11 = vadd.f32 %v1030_v9, %v318_v1  ;;  %v358_v12 = vadd.f32 %v1030_v9, %v319_v2  ;;  %v906_v63 = vld [vmem:[%s1016_s20 + $0x78] sm:$0xff]  }
  0x22   : > { %v835_v14 = vpack.c.bf16 %v384_v5, %v383_v4  ;;  %v387_v15 = vmax.f32 %v355_v6, 0.0  ;;  %v388_v16 = vmax.f32 %v356_v7, 0.0  ;;  %v782_v17 = vunpack.c.l.bf16 %v899_v3 }
  0x23   : > { %v840_v19 = vpack.c.bf16 %v386_v10, %v385_v8  ;;  %v389_v20 = vmax.f32 %v357_v11, 0.0  ;;  %v390_v21 = vmax.f32 %v358_v12, 0.0  ;;  %v783_v22 = vunpack.c.h.bf16 %v899_v3 }
  0x24   : > { %910 = vst [vmem:[%s1055_s27 + $0x20] sm:$0xff] %v835_v14   ;;  %v845_v24 = vpack.c.bf16 %v388_v16, %v387_v15  ;;  %v320_v25 = vmul.f32 %v782_v17, %v1021_v0  ;;  %v786_v26 = vunpack.c.l.bf16 %v900_v13  ;;  %v787_v27 = vunpack.c.h.bf16 %v900_v13 }
  0x25   : > { %911 = vst [vmem:[%s1055_s27 + $0x28] sm:$0xff] %v840_v19   ;;  %v850_v28 = vpack.c.bf16 %v390_v21, %v389_v20  ;;  %v321_v29 = vmul.f32 %v783_v22, %v1021_v0  ;;  %v790_v30 = vunpack.c.l.bf16 %v901_v18  ;;  %v791_v31 = vunpack.c.h.bf16 %v901_v18 }
  0x26   : > { %912 = vst [vmem:[%s1055_s27 + $0x30] sm:$0xff] %v845_v24   ;;  %v359_v32 = vadd.f32 %v1030_v9, %v320_v25  ;;  %v322_v33 = vmul.f32 %v786_v26, %v1021_v0  ;;  %v323_v34 = vmul.f32 %v787_v27, %v1021_v0  ;;  %v794_v35 = vunpack.c.l.bf16 %v902_v23 }
  0x27   : > { %913 = vst [vmem:[%s1055_s27 + $0x38] sm:$0xff] %v850_v28   ;;  %v360_v36 = vadd.f32 %v1030_v9, %v321_v29  ;;  %v324_v37 = vmul.f32 %v790_v30, %v1021_v0  ;;  %v325_v38 = vmul.f32 %v791_v31, %v1021_v0  ;;  %v795_v39 = vunpack.c.h.bf16 %v902_v23 }
  0x28   : > { %v391_v41 = vmax.f32 %v359_v32, 0.0  ;;  %v361_v42 = vadd.f32 %v1030_v9, %v322_v33  ;;  %v362_v43 = vadd.f32 %v1030_v9, %v323_v34  ;;  %v326_v44 = vmul.f32 %v794_v35, %v1021_v0 }
  0x29   : > { %v392_v45 = vmax.f32 %v360_v36, 0.0  ;;  %v363_v46 = vadd.f32 %v1030_v9, %v324_v37  ;;  %v364_v47 = vadd.f32 %v1030_v9, %v325_v38  ;;  %v327_v48 = vmul.f32 %v795_v39, %v1021_v0 }
  0x2a   : > { %v393_v49 = vmax.f32 %v361_v42, 0.0  ;;  %v394_v50 = vmax.f32 %v362_v43, 0.0  ;;  %v365_v51 = vadd.f32 %v1030_v9, %v326_v44  ;;  %v798_v52 = vunpack.c.l.bf16 %v903_v40 }
  0x2b   : > { %v855_v54 = vpack.c.bf16 %v392_v45, %v391_v41  ;;  %v395_v55 = vmax.f32 %v363_v46, 0.0  ;;  %v396_v56 = vmax.f32 %v364_v47, 0.0  ;;  %v366_v57 = vadd.f32 %v1030_v9, %v327_v48 }
  0x2c   : > { %v860_v59 = vpack.c.bf16 %v394_v50, %v393_v49  ;;  %v397_v60 = vmax.f32 %v365_v51, 0.0  ;;  %v799_v61 = vunpack.c.h.bf16 %v903_v40  ;;  %v328_v62 = vmul.f32 %v798_v52, %v1021_v0 }
  0x2d   : > { %914 = vst [vmem:[%s1055_s27 + $0x40] sm:$0xff] %v855_v54   ;;  %v865_v1 = vpack.c.bf16 %v396_v56, %v395_v55  ;;  %v398_v2 = vmax.f32 %v366_v57, 0.0  ;;  %v802_v3 = vunpack.c.l.bf16 %v904_v53  ;;  %v803_v4 = vunpack.c.h.bf16 %v904_v53 }
  0x2e   : > { %915 = vst [vmem:[%s1055_s27 + $0x48] sm:$0xff] %v860_v59   ;;  %v329_v5 = vmul.f32 %v799_v61, %v1021_v0  ;;  %v367_v6 = vadd.f32 %v1030_v9, %v328_v62  ;;  %v806_v7 = vunpack.c.l.bf16 %v905_v58  ;;  %v807_v8 = vunpack.c.h.bf16 %v905_v58 }
  0x2f   : > { %916 = vst [vmem:[%s1055_s27 + $0x50] sm:$0xff] %v865_v1   ;;  %v870_v10 = vpack.c.bf16 %v398_v2, %v397_v60  ;;  %v330_v11 = vmul.f32 %v802_v3, %v1021_v0  ;;  %v331_v12 = vmul.f32 %v803_v4, %v1021_v0  ;;  %v810_v13 = vunpack.c.l.bf16 %v906_v63 }
  0x30   : > { %v368_v14 = vadd.f32 %v1030_v9, %v329_v5  ;;  %v399_v15 = vmax.f32 %v367_v6, 0.0  ;;  %v332_v16 = vmul.f32 %v806_v7, %v1021_v0  ;;  %v333_v17 = vmul.f32 %v807_v8, %v1021_v0 }
  0x31   : > { %917 = vst [vmem:[%s1055_s27 + $0x58] sm:$0xff] %v870_v10   ;;  %v369_v18 = vadd.f32 %v1030_v9, %v330_v11  ;;  %v370_v19 = vadd.f32 %v1030_v9, %v331_v12  ;;  %v811_v20 = vunpack.c.h.bf16 %v906_v63  ;;  %v334_v21 = vmul.f32 %v810_v13, %v1021_v0 }
  0x32   : > { %v400_v22 = vmax.f32 %v368_v14, 0.0  ;;  %v371_v23 = vadd.f32 %v1030_v9, %v332_v16  ;;  %v372_v24 = vadd.f32 %v1030_v9, %v333_v17 }
  0x33   : > { %v401_v25 = vmax.f32 %v369_v18, 0.0  ;;  %v402_v26 = vmax.f32 %v370_v19, 0.0  ;;  %v335_v27 = vmul.f32 %v811_v20, %v1021_v0  ;;  %v373_v28 = vadd.f32 %v1030_v9, %v334_v21 }
  0x34   : > { %v875_v29 = vpack.c.bf16 %v400_v22, %v399_v15  ;;  %v403_v30 = vmax.f32 %v371_v23, 0.0  ;;  %v404_v31 = vmax.f32 %v372_v24, 0.0 }
  0x35   : > { %v880_v32 = vpack.c.bf16 %v402_v26, %v401_v25  ;;  %v374_v33 = vadd.f32 %v1030_v9, %v335_v27  ;;  %v405_v34 = vmax.f32 %v373_v28, 0.0 }
  0x36   : > { %918 = vst [vmem:[%s1055_s27 + $0x60] sm:$0xff] %v875_v29   ;;  %v885_v35 = vpack.c.bf16 %v404_v31, %v403_v30 }
  0x37   : > { %919 = vst [vmem:[%s1055_s27 + $0x68] sm:$0xff] %v880_v32   ;;  %v406_v36 = vmax.f32 %v374_v33, 0.0 }
  0x38   : > { %920 = vst [vmem:[%s1055_s27 + $0x70] sm:$0xff] %v885_v35  }
  0x39   : > { %v890_v37 = vpack.c.bf16 %v406_v36, %v405_v34 }
  0x3b   : > { %921 = vst [vmem:[%s1055_s27 + $0x78] sm:$0xff] %v890_v37  }
  0x3c PF: > { %s13_s14 = sadd.s32 1, %s968_s14   ;;  %s1144_s12 = smov %s964_s13 }
  0x3d   : > { %p10_p5 = scmp.ge.s32.totalorder %s13_s14, 4   ;;  %s1145_s13 = smov %s1147_s15 }
  0x3f   :  { %12 = sbr.rel (!%p10_p5) target bundleno = 2 (0x2), region = 68 }

// kernel: simple_block_forward.4
= control target key start
LH: loop header
LB: loop body
LE: loop exit
PB: predicated region body
PF: predicated region fallthrough
CT: control target
= control target key end

     0   :  { %s4025_s0 = inlined_call_operand.vmem [shape: bf16[512,1152], index: 0, kind: input, shape index: {}]   ;;  %s4026_s1 = inlined_call_operand.vmem [shape: bf16[1152,128], index: 1, kind: input, shape index: {}]   ;;  %s4027_s2 = inlined_call_operand.vmem [shape: bf16[128,128], index: 2, kind: input, shape index: {}]   ;;  %s4028_s3 = inlined_call_operand.vmem [shape: bf16[512,128], index: 3, kind: output, shape index: {0}]   ;;  %s4029_s4 = inlined_call_operand.vmem [shape: f32[2,1,128], index: 4, kind: output, shape index: {1}]   ;;  %s4030_s5 = inlined_call_operand.vmem [shape: f32[2,1,128], index: 5, kind: output, shape index: {2}]   ;;  %s4031_s6 = inlined_call_operand.vmem [shape: bf16[512,128], index: 6, kind: output, shape index: {3}]   ;;  %s4032_s7 = inlined_call_operand.vmem [shape: f32[2,1,128], index: 7, kind: output, shape index: {4}]   ;;  %s4033_s8 = inlined_call_operand.vmem [shape: f32[2,1,128], index: 8, kind: output, shape index: {5}]  }
   0x1   :  { %4038 = sst [smem:[#allocation9_spill]] %s4025_s0 }
   0x2   :  { %4039 = sst [smem:[#allocation10_spill]] %s4026_s1 }
   0x3   :  { %4040 = sst [smem:[#allocation11_spill]] %s4028_s3 }
   0x4   :  { %s3362_s27 = smov 0   ;;  %s3364_s28 = smov 0  }
   0x5   :  { %s3366_s29 = smov 0   ;;  %s3368_s30 = smov 0  }
   0x6   :  { %s3370_s9 = smov 0   ;;  %s3372_s10 = smov 0  }
   0x7   :  { %s3374_s11 = smov 0  }
   0x8 LB: > { %4041 = sst [smem:[#allocation5_spill]] %s3306_s9  ;;  %s31_s12 = sadd.s32 1, %s3306_s9  ;;  %s3314_s11 = sphi %s3374_s11, %s19_s11   ;;  %s3310_s10 = sphi %s3372_s10, %s4052_s10   ;;  %s3306_s9 = sphi %s3370_s9, %s4051_s9   ;;  %s3302_s30 = sphi %s3368_s30, %s4050_s30   ;;  %s3298_s29 = sphi %s3366_s29, %s4049_s29   ;;  %s3294_s28 = sphi %s3364_s28, %s4054_s28   ;;  %s3290_s27 = sphi %s3362_s27, %s4053_s27  }
   0x9   : > { %4042 = sst [smem:[#allocation6_spill]] %s3310_s10  ;;  %p32_p0 = scmp.ge.s32.totalorder %s31_s12, 9 }
   0xa   : > { %s38_s13 = sadd.s32 1, %s3310_s10  ;;  %p54_p1 = scmp.ne.s32.totalorder %s3294_s28, %s3290_s27 }
   0xb   : > { %p55_p2 = scmp.eq.s32.totalorder %s3314_s11, 0  ;;  %s4056_s12 = smov (%p32_p0, %s31_s12), 0 }
   0xc   : > { %4043 = sst [smem:[#allocation7_spill]] %s4056_s12  ;;  %s4058_s13 = smov (!%p32_p0, %s38_s13), %s3310_s10 }
   0xd   : > { %p56_p3 = por %p55_p2, %p54_p1  ;;  %p40_p4 = scmp.ge.s32.totalorder %s4058_s13, 2 }
   0xe   : > { %s43_s14 = ssub.s32 %s3306_s9, %s4056_s12  ;;  %s47_s17 = sadd.s32 1, %s3294_s28 }
   0xf   : > { %s4060_s13 = smov (%p40_p4, %s4058_s13), 0  ;;  %p2587_p6 = scmp.ge.s32.totalorder %s3314_s11, 18 }
  0x10   : > { %4044 = sst [smem:[#allocation8_spill]] %s4060_s13  ;;  %s42_s15 = ssub.s32 %s3310_s10, %s4060_s13 }
  0x11   : > { %s44_s16 = sor.u32 %s43_s14, %s42_s15  ;;  %314 = sbr.rel (%p2587_p6) target bundleno = 55 (0x37), region = 16 }
  0x12   : > { %p45_p5 = scmp.eq.s32.totalorder %s44_s16, 0 }
  0x14   : > { %s3413_s18 = scalar_select %p45_p5, %s3294_s28, %s47_s17  }
  0x18   : > { %317 = sbr.rel (!%p56_p3) target bundleno = 55 (0x37), region = 20  ;;  %s319_s19 = sand.u32 (%p56_p3), 1, %s3294_s28  }
  0x19   : > { %s3154_s20 = smul.u32 (%p56_p3), 288, %s3310_s10  ;;  %s2588_s21 = sshll.u32 (%p56_p3), %s319_s19, 7 }
  0x1a   : > { %s4045_s0 = sld [smem:[#allocation9_spill]] (%p56_p3)  ;;  %s3427_s14 = scalar_lea.vmem (%p56_p3), [#allocation4], %s2588_s21 }
  0x1b   : > { %s324_s22 = sadd.s32 (%p56_p3), %s3306_s9, %s3154_s20 }
  0x1c   : > { %s2591_s23 = sshll.u32 (%p56_p3), %s324_s22, 2 }
  0x20   : > { %s3422_s26 = scalar_lea.vmem %s4045_s0, %s2591_s23 }
  0x21   : > { %v342_v0 = vld [vmem:[%s3422_s26] sm:$0xf]  ;;  %v344_v1 = vld [vmem:[%s3422_s26 + $0x24] sm:$0xf]  ;;  %v346_v2 = vld [vmem:[%s3422_s26 + $0x48] sm:$0xf] }
  0x22   : > { %343 = vst [vmem:[%s3427_s14] sm:$0xf] %v342_v0  ;;  %345 = vst [vmem:[%s3427_s14 + $0x4] sm:$0xf] %v344_v1  ;;  %v348_v3 = vld [vmem:[%s3422_s26 + $0x6c] sm:$0xf] }
  0x23   : > { %347 = vst [vmem:[%s3427_s14 + $0x8] sm:$0xf] %v346_v2  ;;  %v350_v4 = vld [vmem:[%s3422_s26 + $0x90] sm:$0xf]  ;;  %v352_v5 = vld [vmem:[%s3422_s26 + $0xb4] sm:$0xf] }
  0x24   : > { %349 = vst [vmem:[%s3427_s14 + $0xc] sm:$0xf] %v348_v3  ;;  %351 = vst [vmem:[%s3427_s14 + $0x10] sm:$0xf] %v350_v4  ;;  %v354_v6 = vld [vmem:[%s3422_s26 + $0xd8] sm:$0xf] }
  0x25   : > { %353 = vst [vmem:[%s3427_s14 + $0x14] sm:$0xf] %v352_v5  ;;  %v356_v7 = vld [vmem:[%s3422_s26 + $0xfc] sm:$0xf]  ;;  %v358_v8 = vld [vmem:[%s3422_s26 + $0x120] sm:$0xf] }
  0x26   : > { %355 = vst [vmem:[%s3427_s14 + $0x18] sm:$0xf] %v354_v6  ;;  %357 = vst [vmem:[%s3427_s14 + $0x1c] sm:$0xf] %v356_v7  ;;  %v360_v9 = vld [vmem:[%s3422_s26 + $0x144] sm:$0xf] }
  0x27   : > { %359 = vst [vmem:[%s3427_s14 + $0x20] sm:$0xf] %v358_v8  ;;  %v362_v10 = vld [vmem:[%s3422_s26 + $0x168] sm:$0xf]  ;;  %v364_v11 = vld [vmem:[%s3422_s26 + $0x18c] sm:$0xf] }
  0x28   : > { %361 = vst [vmem:[%s3427_s14 + $0x24] sm:$0xf] %v360_v9  ;;  %363 = vst [vmem:[%s3427_s14 + $0x28] sm:$0xf] %v362_v10  ;;  %v366_v12 = vld [vmem:[%s3422_s26 + $0x1b0] sm:$0xf] }
  0x29   : > { %365 = vst [vmem:[%s3427_s14 + $0x2c] sm:$0xf] %v364_v11  ;;  %v368_v13 = vld [vmem:[%s3422_s26 + $0x1d4] sm:$0xf]  ;;  %v370_v14 = vld [vmem:[%s3422_s26 + $0x1f8] sm:$0xf] }
  0x2a   : > { %367 = vst [vmem:[%s3427_s14 + $0x30] sm:$0xf] %v366_v12  ;;  %369 = vst [vmem:[%s3427_s14 + $0x34] sm:$0xf] %v368_v13  ;;  %v372_v15 = vld [vmem:[%s3422_s26 + $0x21c] sm:$0xf] }
  0x2b   : > { %371 = vst [vmem:[%s3427_s14 + $0x38] sm:$0xf] %v370_v14  ;;  %v374_v16 = vld [vmem:[%s3422_s26 + $0x240] sm:$0xf]  ;;  %v376_v17 = vld [vmem:[%s3422_s26 + $0x264] sm:$0xf] }
  0x2c   : > { %373 = vst [vmem:[%s3427_s14 + $0x3c] sm:$0xf] %v372_v15  ;;  %375 = vst [vmem:[%s3427_s14 + $0x40] sm:$0xf] %v374_v16  ;;  %v378_v18 = vld [vmem:[%s3422_s26 + $0x288] sm:$0xf] }
  0x2d   : > { %377 = vst [vmem:[%s3427_s14 + $0x44] sm:$0xf] %v376_v17  ;;  %v380_v19 = vld [vmem:[%s3422_s26 + $0x2ac] sm:$0xf]  ;;  %v382_v20 = vld [vmem:[%s3422_s26 + $0x2d0] sm:$0xf] }
  0x2e   : > { %379 = vst [vmem:[%s3427_s14 + $0x48] sm:$0xf] %v378_v18  ;;  %381 = vst [vmem:[%s3427_s14 + $0x4c] sm:$0xf] %v380_v19  ;;  %v384_v21 = vld [vmem:[%s3422_s26 + $0x2f4] sm:$0xf] }
  0x2f   : > { %383 = vst [vmem:[%s3427_s14 + $0x50] sm:$0xf] %v382_v20  ;;  %v386_v22 = vld [vmem:[%s3422_s26 + $0x318] sm:$0xf]  ;;  %v388_v23 = vld [vmem:[%s3422_s26 + $0x33c] sm:$0xf] }
  0x30   : > { %385 = vst [vmem:[%s3427_s14 + $0x54] sm:$0xf] %v384_v21  ;;  %387 = vst [vmem:[%s3427_s14 + $0x58] sm:$0xf] %v386_v22  ;;  %v390_v24 = vld [vmem:[%s3422_s26 + $0x360] sm:$0xf] }
  0x31   : > { %389 = vst [vmem:[%s3427_s14 + $0x5c] sm:$0xf] %v388_v23  ;;  %v392_v25 = vld [vmem:[%s3422_s26 + $0x384] sm:$0xf]  ;;  %v394_v26 = vld [vmem:[%s3422_s26 + $0x3a8] sm:$0xf] }
  0x32   : > { %391 = vst [vmem:[%s3427_s14 + $0x60] sm:$0xf] %v390_v24  ;;  %393 = vst [vmem:[%s3427_s14 + $0x64] sm:$0xf] %v392_v25  ;;  %v396_v27 = vld [vmem:[%s3422_s26 + $0x3cc] sm:$0xf] }
  0x33   : > { %395 = vst [vmem:[%s3427_s14 + $0x68] sm:$0xf] %v394_v26  ;;  %v398_v28 = vld [vmem:[%s3422_s26 + $0x3f0] sm:$0xf]  ;;  %v400_v29 = vld [vmem:[%s3422_s26 + $0x414] sm:$0xf] }
  0x34   : > { %397 = vst [vmem:[%s3427_s14 + $0x6c] sm:$0xf] %v396_v27  ;;  %399 = vst [vmem:[%s3427_s14 + $0x70] sm:$0xf] %v398_v28  ;;  %v402_v30 = vld [vmem:[%s3422_s26 + $0x438] sm:$0xf] }
  0x35   : > { %401 = vst [vmem:[%s3427_s14 + $0x74] sm:$0xf] %v400_v29  ;;  %v404_v31 = vld [vmem:[%s3422_s26 + $0x45c] sm:$0xf]  ;;  %403 = vst [vmem:[%s3427_s14 + $0x78] sm:$0xf] %v402_v30 }
  0x36   : > { %405 = vst [vmem:[%s3427_s14 + $0x7c] sm:$0xf] %v404_v31 }
  0x37 PF: > { %p2592_p7 = scmp.ge.s32.totalorder %s3314_s11, 1  ;;  %p525_p8 = scmp.lt.s32.totalorder %s3314_s11, 19 }
  0x39   : > { %p526_p9 = pnand %p2592_p7, %p525_p8 }
  0x3a   : > { %s532_s15 = sand.u32 (!%p526_p9), 1, %s3290_s27   ;;  %s2594_s16 = sshll.u32 (!%p526_p9), %s3298_s29, 4 }
  0x3b   : > { %529 = sbr.rel (%p526_p9) target bundleno = 724 (0x2d4), region = 69  ;;  %s2593_s17 = sshll.u32 (!%p526_p9), %s532_s15, 7 }
  0x3c   : > { %p623_p10 = scmp.lt.s32.totalorder (!%p526_p9), %s2594_s16, 143  ;;  %s2604_s19 = sshll.u32 (!%p526_p9), %s3302_s30, 5 }
  0x3d   : > { %p651_p11 = scmp.lt.s32.totalorder (!%p526_p9), %s2604_s19, 63  ;;  %p659_p12 = scmp.lt.s32.totalorder (!%p526_p9), %s3302_s30, 1 }
  0x3e   : > { %s4046_s1 = sld [smem:[#allocation10_spill]] (!%p526_p9)  ;;  %s4047_s3 = sld [smem:[#allocation11_spill]] (!%p526_p9) }
  0x3f   : > { %s3530_s9 = scalar_lea.vmem (!%p526_p9), [#allocation4], %s2593_s17  ;;  %p2608_p13 = scmp.ne.s32.totalorder (!%p526_p9), %s3298_s29, 0 }
  0x42   : > { %s4062_s16 = smov (!%p623_p10, %s2594_s16), 143  ;;  %s4064_s19 = smov (!%p651_p11, %s2604_s19), 63 }
  0x43   : > { %s2595_s20 = sshll.u32 %s4062_s16, 2  ;;  %s4066_s30 = smov (!%p659_p12, %s3302_s30), 1  ;;  %v3316_v32 = vmov (!%p2608_p13), 0.0  }
  0x44   : > { %s3499_s23 = scalar_lea.vmem %s4046_s1, %s2595_s20  ;;  %s2605_s27 = sshll.u32 %s4064_s19, 2  ;;  %697 = vst [vmem:[#allocation2] sm:$0xff] (!%p2608_p13), %v3316_v32  ;;  %698 = vst [vmem:[#allocation2 + $0x8] sm:$0xff] (!%p2608_p13), %v3316_v32 }
  0x45   : > { %s3507_s26 = scalar_lea.vmem %s4047_s3, %s2605_s27  ;;  %s664_s16 = scalar_lea.vmem %s4029_s4, %s4066_s30  ;;  %699 = vst [vmem:[#allocation2 + $0x10] sm:$0xff] (!%p2608_p13), %v3316_v32  ;;  %700 = vst [vmem:[#allocation2 + $0x18] sm:$0xff] (!%p2608_p13), %v3316_v32 }
  0x46   : > { %s670_s22 = scalar_lea.vmem %s4030_s5, %s4066_s30  ;;  %s3520_s13 = scalar_lea.vmem %s4031_s6, %s2605_s27  ;;  %701 = vst [vmem:[#allocation2 + $0x20] sm:$0xff] (!%p2608_p13), %v3316_v32  ;;  %702 = vst [vmem:[#allocation2 + $0x28] sm:$0xff] (!%p2608_p13), %v3316_v32 }
  0x47   : > { %s685_s10 = scalar_lea.vmem %s4032_s7, %s4066_s30  ;;  %s691_s3 = scalar_lea.vmem %s4033_s8, %s4066_s30  ;;  %703 = vst [vmem:[#allocation2 + $0x30] sm:$0xff] (!%p2608_p13), %v3316_v32  ;;  %704 = vst [vmem:[#allocation2 + $0x38] sm:$0xff] (!%p2608_p13), %v3316_v32 }
  0x48   : > { %696 = sbr.rel (%p2608_p13) target bundleno = 100 (0x64), region = 77  ;;  %705 = vst [vmem:[#allocation2 + $0x40] sm:$0xff] (!%p2608_p13), %v3316_v32  ;;  %706 = vst [vmem:[#allocation2 + $0x48] sm:$0xff] (!%p2608_p13), %v3316_v32 }
  0x49   : > { %707 = vst [vmem:[#allocation2 + $0x50] sm:$0xff] (!%p2608_p13), %v3316_v32  ;;  %708 = vst [vmem:[#allocation2 + $0x58] sm:$0xff] (!%p2608_p13), %v3316_v32 }
  0x4a   : > { %709 = vst [vmem:[#allocation2 + $0x60] sm:$0xff] (!%p2608_p13), %v3316_v32  ;;  %710 = vst [vmem:[#allocation2 + $0x68] sm:$0xff] (!%p2608_p13), %v3316_v32 }
  0x4b   : > { %711 = vst [vmem:[#allocation2 + $0x70] sm:$0xff] (!%p2608_p13), %v3316_v32  ;;  %712 = vst [vmem:[#allocation2 + $0x78] sm:$0xff] (!%p2608_p13), %v3316_v32 }
  0x4c   : > { %713 = vst [vmem:[#allocation2 + $0x80] sm:$0xff] (!%p2608_p13), %v3316_v32  ;;  %714 = vst [vmem:[#allocation2 + $0x88] sm:$0xff] (!%p2608_p13), %v3316_v32 }
  0x4d   : > { %715 = vst [vmem:[#allocation2 + $0x90] sm:$0xff] (!%p2608_p13), %v3316_v32  ;;  %716 = vst [vmem:[#allocation2 + $0x98] sm:$0xff] (!%p2608_p13), %v3316_v32 }
  0x4e   : > { %717 = vst [vmem:[#allocation2 + $0xa0] sm:$0xff] (!%p2608_p13), %v3316_v32  ;;  %718 = vst [vmem:[#allocation2 + $0xa8] sm:$0xff] (!%p2608_p13), %v3316_v32 }
  0x4f   : > { %719 = vst [vmem:[#allocation2 + $0xb0] sm:$0xff] %v3316_v32  ;;  %720 = vst [vmem:[#allocation2 + $0xb8] sm:$0xff] %v3316_v32 }
  0x50   : > { %721 = vst [vmem:[#allocation2 + $0xc0] sm:$0xff] %v3316_v32  ;;  %722 = vst [vmem:[#allocation2 + $0xc8] sm:$0xff] %v3316_v32 }
  0x51   : > { %723 = vst [vmem:[#allocation2 + $0xd0] sm:$0xff] %v3316_v32  ;;  %724 = vst [vmem:[#allocation2 + $0xd8] sm:$0xff] %v3316_v32 }
  0x52   : > { %725 = vst [vmem:[#allocation2 + $0xe0] sm:$0xff] %v3316_v32  ;;  %726 = vst [vmem:[#allocation2 + $0xe8] sm:$0xff] %v3316_v32 }
  0x53   : > { %727 = vst [vmem:[#allocation2 + $0xf0] sm:$0xff] %v3316_v32  ;;  %728 = vst [vmem:[#allocation2 + $0xf8] sm:$0xff] %v3316_v32 }
  0x54   : > { %729 = vst [vmem:[#allocation3] sm:$0xff] %v3316_v32  ;;  %730 = vst [vmem:[#allocation3 + $0x8] sm:$0xff] %v3316_v32 }
  0x55   : > { %731 = vst [vmem:[#allocation3 + $0x10] sm:$0xff] %v3316_v32  ;;  %732 = vst [vmem:[#allocation3 + $0x18] sm:$0xff] %v3316_v32 }
  0x56   : > { %733 = vst [vmem:[#allocation3 + $0x20] sm:$0xff] %v3316_v32  ;;  %734 = vst [vmem:[#allocation3 + $0x28] sm:$0xff] %v3316_v32 }
  0x57   : > { %735 = vst [vmem:[#allocation3 + $0x30] sm:$0xff] %v3316_v32  ;;  %736 = vst [vmem:[#allocation3 + $0x38] sm:$0xff] %v3316_v32 }
  0x58   : > { %737 = vst [vmem:[#allocation3 + $0x40] sm:$0xff] %v3316_v32  ;;  %738 = vst [vmem:[#allocation3 + $0x48] sm:$0xff] %v3316_v32 }
  0x59   : > { %739 = vst [vmem:[#allocation3 + $0x50] sm:$0xff] %v3316_v32  ;;  %740 = vst [vmem:[#allocation3 + $0x58] sm:$0xff] %v3316_v32 }
  0x5a   : > { %741 = vst [vmem:[#allocation3 + $0x60] sm:$0xff] %v3316_v32  ;;  %742 = vst [vmem:[#allocation3 + $0x68] sm:$0xff] %v3316_v32 }
  0x5b   : > { %743 = vst [vmem:[#allocation3 + $0x70] sm:$0xff] %v3316_v32  ;;  %744 = vst [vmem:[#allocation3 + $0x78] sm:$0xff] %v3316_v32 }
  0x5c   : > { %745 = vst [vmem:[#allocation3 + $0x80] sm:$0xff] %v3316_v32  ;;  %746 = vst [vmem:[#allocation3 + $0x88] sm:$0xff] %v3316_v32 }
  0x5d   : > { %747 = vst [vmem:[#allocation3 + $0x90] sm:$0xff] %v3316_v32  ;;  %748 = vst [vmem:[#allocation3 + $0x98] sm:$0xff] %v3316_v32 }
  0x5e   : > { %749 = vst [vmem:[#allocation3 + $0xa0] sm:$0xff] %v3316_v32  ;;  %750 = vst [vmem:[#allocation3 + $0xa8] sm:$0xff] %v3316_v32 }
  0x5f   : > { %751 = vst [vmem:[#allocation3 + $0xb0] sm:$0xff] %v3316_v32  ;;  %752 = vst [vmem:[#allocation3 + $0xb8] sm:$0xff] %v3316_v32 }
  0x60   : > { %753 = vst [vmem:[#allocation3 + $0xc0] sm:$0xff] %v3316_v32  ;;  %754 = vst [vmem:[#allocation3 + $0xc8] sm:$0xff] %v3316_v32 }
  0x61   : > { %755 = vst [vmem:[#allocation3 + $0xd0] sm:$0xff] %v3316_v32  ;;  %756 = vst [vmem:[#allocation3 + $0xd8] sm:$0xff] %v3316_v32 }
  0x62   : > { %757 = vst [vmem:[#allocation3 + $0xe0] sm:$0xff] %v3316_v32  ;;  %758 = vst [vmem:[#allocation3 + $0xe8] sm:$0xff] %v3316_v32 }
  0x63   : > { %759 = vst [vmem:[#allocation3 + $0xf0] sm:$0xff] %v3316_v32  ;;  %760 = vst [vmem:[#allocation3 + $0xf8] sm:$0xff] %v3316_v32 }
  0x64 PF: > { %v3212_v33 = vld [vmem:[%s3499_s23] sm:$0xff]   ;;  %v3213_v34 = vld [vmem:[%s3499_s23 + $0x8] sm:$0xff]   ;;  %v3214_v35 = vld [vmem:[%s3499_s23 + $0x10] sm:$0xff]   ;;  %p1210_p0 = scmp.ge.s32.totalorder %s3298_s29, 4  ;;  %p1211_p1 = scmp.lt.s32.totalorder %s3298_s29, 5 }
  0x65   : > { %3026 = vmatprep.subr.bf16.mxu0 %v3212_v33  ;;  %3122 = vmatprep.subr.bf16.mxu1 %v3212_v33  ;;  %v3215_v36 = vld [vmem:[%s3499_s23 + $0x18] sm:$0xff]   ;;  %v3220_v37 = vld [vmem:[%s3530_s9] sm:$0xff]   ;;  %v3217_v40 = vld [vmem:[%s3499_s23 + $0x28] sm:$0xff]  }
  0x66   : > { %3027 = vmatpush3.bf16.msra.mxu0 %v3212_v33  ;;  %3130 = vmatpush3.bf16.msra.mxu1 %v3212_v33  ;;  %v3221_v38 = vld [vmem:[%s3530_s9 + $0x40] sm:$0xff]   ;;  %v3218_v41 = vld [vmem:[%s3499_s23 + $0x30] sm:$0xff]   ;;  %v3219_v42 = vld [vmem:[%s3499_s23 + $0x38] sm:$0xff]   ;;  %p3623_p2 = pnand %p1211_p1, %p1210_p0 }
  0x67   : > { %3028 = vmatprep.subr.bf16.mxu0 %v3213_v34  ;;  %3123 = vmatprep.subr.bf16.mxu1 %v3213_v34  ;;  %v3216_v39 = vld [vmem:[%s3499_s23 + $0x20] sm:$0xff]   ;;  %v3222_v43 = vld [vmem:[%s3530_s9 + $0x8] sm:$0xff]   ;;  %v3224_v45 = vld [vmem:[%s3530_s9 + $0x10] sm:$0xff]  }
  0x68   : > { %3042 = vmatprep.mubr.bf16.mxu0 %v3220_v37  ;;  %3058 = vmatprep.mubr.bf16.mxu1 %v3221_v38  ;;  %v3223_v44 = vld [vmem:[%s3530_s9 + $0x48] sm:$0xff]   ;;  %v3225_v46 = vld [vmem:[%s3530_s9 + $0x50] sm:$0xff]   ;;  %v3226_v47 = vld [vmem:[%s3530_s9 + $0x18] sm:$0xff]  }
  0x69   : > { %v3227_v48 = vld [vmem:[%s3530_s9 + $0x58] sm:$0xff]   ;;  %v3228_v49 = vld [vmem:[%s3530_s9 + $0x20] sm:$0xff]   ;;  %v3230_v51 = vld [vmem:[%s3530_s9 + $0x28] sm:$0xff]  }
  0x6a   : > { %3029 = vmatpush3.bf16.msra.mxu0 %v3213_v34  ;;  %3131 = vmatpush3.bf16.msra.mxu1 %v3213_v34  ;;  %v3229_v50 = vld [vmem:[%s3530_s9 + $0x60] sm:$0xff]   ;;  %v3231_v52 = vld [vmem:[%s3530_s9 + $0x68] sm:$0xff]   ;;  %v3232_v53 = vld [vmem:[%s3530_s9 + $0x30] sm:$0xff]  }
  0x6b   : > { %3030 = vmatprep.subr.bf16.mxu0 %v3214_v35  ;;  %3124 = vmatprep.subr.bf16.mxu1 %v3214_v35  ;;  %v3233_v54 = vld [vmem:[%s3530_s9 + $0x70] sm:$0xff]   ;;  %v3234_v55 = vld [vmem:[%s3530_s9 + $0x38] sm:$0xff]   ;;  %v761_v59 = vld [vmem:[#allocation2] sm:$0xff] }
  0x6c   : > { %v3235_v56 = vld [vmem:[%s3530_s9 + $0x78] sm:$0xff]   ;;  %v763_v57 = vld [vmem:[#allocation2 + $0x10] sm:$0xff]  ;;  %v777_v60 = vld [vmem:[#allocation2 + $0x80] sm:$0xff] }
  0x6d   : > { %v779_v58 = vld [vmem:[#allocation2 + $0x90] sm:$0xff]  ;;  %v764_v63 = vld [vmem:[#allocation2 + $0x18] sm:$0xff]  ;;  %v762_v5 = vld [vmem:[#allocation2 + $0x8] sm:$0xff] }
  0x6e   : > { %3031 = vmatpush3.bf16.msra.mxu0 %v3214_v35  ;;  %3132 = vmatpush3.bf16.msra.mxu1 %v3214_v35  ;;  %v780_v0 = vld [vmem:[#allocation2 + $0x98] sm:$0xff]  ;;  %v778_v6 = vld [vmem:[#allocation2 + $0x88] sm:$0xff]  ;;  %v767_v17 = vld [vmem:[#allocation2 + $0x30] sm:$0xff] }
  0x6f   : > { %3032 = vmatprep.subr.bf16.mxu0 %v3215_v36  ;;  %3125 = vmatprep.subr.bf16.mxu1 %v3215_v36  ;;  %v783_v18 = vld [vmem:[#allocation2 + $0xb0] sm:$0xff]  ;;  %v765_v19 = vld [vmem:[#allocation2 + $0x20] sm:$0xff]  ;;  %v768_v23 = vld [vmem:[#allocation2 + $0x38] sm:$0xff] }
  0x70   : > { %v781_v20 = vld [vmem:[#allocation2 + $0xa0] sm:$0xff]  ;;  %v784_v24 = vld [vmem:[#allocation2 + $0xb8] sm:$0xff]  ;;  %v766_v29 = vld [vmem:[#allocation2 + $0x28] sm:$0xff] }
  0x71   : > { %v782_v30 = vld [vmem:[#allocation2 + $0xa8] sm:$0xff] }
  0x72   : > { %3033 = vmatpush3.bf16.msra.mxu0 %v3215_v36  ;;  %3133 = vmatpush3.bf16.msra.mxu1 %v3215_v36 }
  0x73   : > { %3034 = vmatprep.subr.bf16.mxu0 %v3216_v39  ;;  %3126 = vmatprep.subr.bf16.mxu1 %v3216_v39 }
  0x76   : > { %3035 = vmatpush3.bf16.msra.mxu0 %v3216_v39  ;;  %3134 = vmatpush3.bf16.msra.mxu1 %v3216_v39 }
  0x77   : > { %3036 = vmatprep.subr.bf16.mxu0 %v3217_v40  ;;  %3127 = vmatprep.subr.bf16.mxu1 %v3217_v40 }
  0x7a   : > { %3037 = vmatpush3.bf16.msra.mxu0 %v3217_v40  ;;  %3135 = vmatpush3.bf16.msra.mxu1 %v3217_v40 }
  0x7b   : > { %3038 = vmatprep.subr.bf16.mxu0 %v3218_v41  ;;  %3128 = vmatprep.subr.bf16.mxu1 %v3218_v41 }
  0x7e   : > { %3039 = vmatpush3.bf16.msra.mxu0 %v3218_v41  ;;  %3136 = vmatpush3.bf16.msra.mxu1 %v3218_v41  ;;  %v771_v41 = vld [vmem:[#allocation2 + $0x50] sm:$0xff] }
  0x7f   : > { %3040 = vmatprep.subr.bf16.mxu0 %v3219_v42  ;;  %3129 = vmatprep.subr.bf16.mxu1 %v3219_v42 }
  0x82   : > { %3041 = vmatpush3.bf16.msra.mxu0 %v3219_v42  ;;  %3137 = vmatpush3.bf16.msra.mxu1 %v3219_v42  ;;  %v787_v42 = vld [vmem:[#allocation2 + $0xd0] sm:$0xff] }
  0x85   : > { %3043 = vmatmul.mubr.bf16.vlgmr.msra.gmra.mrb[0].mxu0 %v3222_v43  ;;  %3059 = vmatmul.mubr.bf16.vlgmr.msra.gmra.mrb[0].mxu1 %v3223_v44  ;;  %v769_v43 = vld [vmem:[#allocation2 + $0x40] sm:$0xff] }
  0x86   : > { %3046 = vmatprep.mubr.bf16.mxu0 %v3224_v45  ;;  %3062 = vmatprep.mubr.bf16.mxu1 %v3225_v46  ;;  %v785_v44 = vld [vmem:[#allocation2 + $0xc0] sm:$0xff] }
  0x8d   : > { %3047 = vmatmul.mubr.bf16.gmra.mrb[4].mxu0 %v3226_v47  ;;  %3063 = vmatmul.mubr.bf16.gmra.mrb[4].mxu1 %v3227_v48  ;;  %v772_v47 = vld [vmem:[#allocation2 + $0x58] sm:$0xff] }
  0x8e   : > { %3050 = vmatprep.mubr.bf16.mxu0 %v3228_v49  ;;  %3066 = vmatprep.mubr.bf16.mxu1 %v3229_v50  ;;  %v788_v48 = vld [vmem:[#allocation2 + $0xd8] sm:$0xff] }
  0x95   : > { %3051 = vmatmul.mubr.bf16.gmra.mrb[8].mxu0 %v3230_v51  ;;  %3067 = vmatmul.mubr.bf16.gmra.mrb[8].mxu1 %v3231_v52 }
  0x96   : > { %3054 = vmatprep.mubr.bf16.mxu0 %v3232_v53  ;;  %3070 = vmatprep.mubr.bf16.mxu1 %v3233_v54  ;;  %v770_v53 = vld [vmem:[#allocation2 + $0x48] sm:$0xff] }
  0x97   : > { %v786_v54 = vld [vmem:[#allocation2 + $0xc8] sm:$0xff] }
  0x9d   : > { %3055 = vmatmul.mubr.bf16.gmra.mrb[12].mxu0 %v3234_v55  ;;  %3071 = vmatmul.mubr.bf16.gmra.mrb[12].mxu1 %v3235_v56 }
 0x158   : > { %v3044_v61 = vpop.f32.mrb[0].mxu0  ;;  %v3060_v62 = vpop.f32.mrb[0].mxu1 }
 0x159   : > { %v1148_v1 = vadd.f32 %v3044_v61, %v763_v57  ;;  %v1164_v2 = vadd.f32 %v3060_v62, %v779_v58  ;;  %v1019_v3 = vpop.f32.mrb[1].mxu0  ;;  %v1083_v4 = vpop.f32.mrb[1].mxu1 }
 0x15a   : > { %v1146_v7 = vadd.f32 %v1019_v3, %v761_v59  ;;  %v1162_v8 = vadd.f32 %v1083_v4, %v777_v60  ;;  %v3045_v9 = vpop.f32.mrb[2].mxu0  ;;  %v3061_v10 = vpop.f32.mrb[2].mxu1  ;;  %v773_v3 = vld [vmem:[#allocation2 + $0x60] sm:$0xff] }
 0x15b   : > { %1180 = vst [vmem:[#allocation2 + $0x10] sm:$0xff] %v1148_v1  ;;  %1196 = vst [vmem:[#allocation2 + $0x90] sm:$0xff] %v1164_v2  ;;  %v1149_v11 = vadd.f32 %v3045_v9, %v764_v63  ;;  %v1165_v12 = vadd.f32 %v3061_v10, %v780_v0  ;;  %v1022_v13 = vpop.f32.mrb[3].mxu0  ;;  %v1086_v14 = vpop.f32.mrb[3].mxu1  ;;  %v775_v1 = vld [vmem:[#allocation2 + $0x70] sm:$0xff]  ;;  %v789_v4 = vld [vmem:[#allocation2 + $0xe0] sm:$0xff] }
 0x15c   : > { %1178 = vst [vmem:[#allocation2] sm:$0xff] %v1146_v7  ;;  %1194 = vst [vmem:[#allocation2 + $0x80] sm:$0xff] %v1162_v8  ;;  %v1147_v15 = vadd.f32 %v1022_v13, %v762_v5  ;;  %v1163_v16 = vadd.f32 %v1086_v14, %v778_v6  ;;  %v791_v2 = vld [vmem:[#allocation2 + $0xf0] sm:$0xff]  ;;  %v776_v7 = vld [vmem:[#allocation2 + $0x78] sm:$0xff] }
 0x15d   : > { %1181 = vst [vmem:[#allocation2 + $0x18] sm:$0xff] %v1149_v11  ;;  %1197 = vst [vmem:[#allocation2 + $0x98] sm:$0xff] %v1165_v12  ;;  %v792_v8 = vld [vmem:[#allocation2 + $0xf8] sm:$0xff]  ;;  %v774_v13 = vld [vmem:[#allocation2 + $0x68] sm:$0xff] }
 0x15e   : > { %1179 = vst [vmem:[#allocation2 + $0x8] sm:$0xff] %v1147_v15  ;;  %1195 = vst [vmem:[#allocation2 + $0x88] sm:$0xff] %v1163_v16  ;;  %v790_v14 = vld [vmem:[#allocation2 + $0xe8] sm:$0xff] }
 0x160   : > { %v3048_v21 = vpop.f32.mrb[4].mxu0  ;;  %v3064_v22 = vpop.f32.mrb[4].mxu1 }
 0x161   : > { %v1152_v25 = vadd.f32 %v3048_v21, %v767_v17  ;;  %v1168_v26 = vadd.f32 %v3064_v22, %v783_v18  ;;  %v1035_v27 = vpop.f32.mrb[5].mxu0  ;;  %v1099_v28 = vpop.f32.mrb[5].mxu1 }
 0x162   : > { %v1150_v31 = vadd.f32 %v1035_v27, %v765_v19  ;;  %v1166_v32 = vadd.f32 %v1099_v28, %v781_v20  ;;  %v3049_v33 = vpop.f32.mrb[6].mxu0  ;;  %v3065_v34 = vpop.f32.mrb[6].mxu1  ;;  %v3238_v27 = vld [vmem:[%s4027_s2 + $0x10] sm:$0xff] (!%p3623_p2)   ;;  %v3239_v28 = vld [vmem:[%s4027_s2 + $0x18] sm:$0xff] (!%p3623_p2)  }
 0x163   : > { %1184 = vst [vmem:[#allocation2 + $0x30] sm:$0xff] %v1152_v25  ;;  %1200 = vst [vmem:[#allocation2 + $0xb0] sm:$0xff] %v1168_v26  ;;  %v1153_v35 = vadd.f32 %v3049_v33, %v768_v23  ;;  %v1169_v36 = vadd.f32 %v3065_v34, %v784_v24  ;;  %v1038_v37 = vpop.f32.mrb[7].mxu0  ;;  %v1102_v38 = vpop.f32.mrb[7].mxu1  ;;  %v3236_v25 = vld [vmem:[%s4027_s2] sm:$0xff] (!%p3623_p2)   ;;  %v3237_v26 = vld [vmem:[%s4027_s2 + $0x8] sm:$0xff] (!%p3623_p2)  }
 0x164   : > { %1182 = vst [vmem:[#allocation2 + $0x20] sm:$0xff] %v1150_v31  ;;  %1198 = vst [vmem:[#allocation2 + $0xa0] sm:$0xff] %v1166_v32  ;;  %v1151_v39 = vadd.f32 %v1038_v37, %v766_v29  ;;  %v1167_v40 = vadd.f32 %v1102_v38, %v782_v30  ;;  %3074 = vmatprep.subr.bf16.mxu0 (!%p3623_p2), %v3236_v25  ;;  %3138 = vmatprep.subr.bf16.mxu1 (!%p3623_p2), %v3236_v25  ;;  %v3244_v29 = vld [vmem:[%s3530_s9] sm:$0xff] (!%p3623_p2)   ;;  %v3241_v32 = vld [vmem:[%s4027_s2 + $0x28] sm:$0xff] (!%p3623_p2)  }
 0x165   : > { %1185 = vst [vmem:[#allocation2 + $0x38] sm:$0xff] %v1153_v35  ;;  %1201 = vst [vmem:[#allocation2 + $0xb8] sm:$0xff] %v1169_v36  ;;  %3075 = vmatpush3.bf16.msra.mxu0 (!%p3623_p2), %v3236_v25  ;;  %3146 = vmatpush3.bf16.msra.mxu1 (!%p3623_p2), %v3236_v25  ;;  %v3245_v30 = vld [vmem:[%s3530_s9 + $0x40] sm:$0xff] (!%p3623_p2)   ;;  %v3242_v33 = vld [vmem:[%s4027_s2 + $0x30] sm:$0xff] (!%p3623_p2)  }
 0x166   : > { %1183 = vst [vmem:[#allocation2 + $0x28] sm:$0xff] %v1151_v39  ;;  %1199 = vst [vmem:[#allocation2 + $0xa8] sm:$0xff] %v1167_v40  ;;  %3076 = vmatprep.subr.bf16.mxu0 (!%p3623_p2), %v3237_v26  ;;  %3139 = vmatprep.subr.bf16.mxu1 (!%p3623_p2), %v3237_v26  ;;  %v3240_v31 = vld [vmem:[%s4027_s2 + $0x20] sm:$0xff] (!%p3623_p2)   ;;  %v3243_v34 = vld [vmem:[%s4027_s2 + $0x38] sm:$0xff] (!%p3623_p2)  }
 0x167   : > { %3090 = vmatprep.mubr.bf16.mxu0 (!%p3623_p2), %v3244_v29  ;;  %3106 = vmatprep.mubr.bf16.mxu1 (!%p3623_p2), %v3245_v30  ;;  %v3246_v35 = vld [vmem:[%s3530_s9 + $0x8] sm:$0xff] (!%p3623_p2)   ;;  %v3248_v37 = vld [vmem:[%s3530_s9 + $0x10] sm:$0xff] (!%p3623_p2)   ;;  %v3250_v39 = vld [vmem:[%s3530_s9 + $0x18] sm:$0xff] (!%p3623_p2)  }
 0x168   : > { %v3052_v45 = vpop.f32.mrb[8].mxu0  ;;  %v3068_v46 = vpop.f32.mrb[8].mxu1  ;;  %v3247_v36 = vld [vmem:[%s3530_s9 + $0x48] sm:$0xff] (!%p3623_p2)   ;;  %v3249_v38 = vld [vmem:[%s3530_s9 + $0x50] sm:$0xff] (!%p3623_p2)   ;;  %v3251_v40 = vld [vmem:[%s3530_s9 + $0x58] sm:$0xff] (!%p3623_p2)  }
 0x169   : > { %v1156_v49 = vadd.f32 %v3052_v45, %v771_v41  ;;  %v1172_v50 = vadd.f32 %v3068_v46, %v787_v42  ;;  %v1051_v51 = vpop.f32.mrb[9].mxu0  ;;  %v1115_v52 = vpop.f32.mrb[9].mxu1  ;;  %3077 = vmatpush3.bf16.msra.mxu0 (!%p3623_p2), %v3237_v26  ;;  %3147 = vmatpush3.bf16.msra.mxu1 (!%p3623_p2), %v3237_v26  ;;  %v3252_v41 = vld [vmem:[%s3530_s9 + $0x20] sm:$0xff] (!%p3623_p2)   ;;  %v3256_v45 = vld [vmem:[%s3530_s9 + $0x30] sm:$0xff] (!%p3623_p2)  }
 0x16a   : > { %v1154_v55 = vadd.f32 %v1051_v51, %v769_v43  ;;  %v1170_v56 = vadd.f32 %v1115_v52, %v785_v44  ;;  %v3053_v57 = vpop.f32.mrb[10].mxu0  ;;  %v3069_v58 = vpop.f32.mrb[10].mxu1  ;;  %3078 = vmatprep.subr.bf16.mxu0 (!%p3623_p2), %v3238_v27  ;;  %3140 = vmatprep.subr.bf16.mxu1 (!%p3623_p2), %v3238_v27  ;;  %v3253_v42 = vld [vmem:[%s3530_s9 + $0x60] sm:$0xff] (!%p3623_p2)   ;;  %v3254_v43 = vld [vmem:[%s3530_s9 + $0x28] sm:$0xff] (!%p3623_p2)   ;;  %v3257_v46 = vld [vmem:[%s3530_s9 + $0x70] sm:$0xff] (!%p3623_p2)  }
 0x16b   : > { %1188 = vst [vmem:[#allocation2 + $0x50] sm:$0xff] %v1156_v49  ;;  %1204 = vst [vmem:[#allocation2 + $0xd0] sm:$0xff] %v1172_v50  ;;  %v1157_v59 = vadd.f32 %v3053_v57, %v772_v47  ;;  %v1173_v60 = vadd.f32 %v3069_v58, %v788_v48  ;;  %v1054_v61 = vpop.f32.mrb[11].mxu0  ;;  %v1118_v62 = vpop.f32.mrb[11].mxu1  ;;  %v3255_v44 = vld [vmem:[%s3530_s9 + $0x68] sm:$0xff] (!%p3623_p2)   ;;  %v3258_v47 = vld [vmem:[%s3530_s9 + $0x38] sm:$0xff] (!%p3623_p2)  }
 0x16c   : > { %1186 = vst [vmem:[#allocation2 + $0x40] sm:$0xff] %v1154_v55  ;;  %1202 = vst [vmem:[#allocation2 + $0xc0] sm:$0xff] %v1170_v56  ;;  %v1155_v63 = vadd.f32 %v1054_v61, %v770_v53  ;;  %v1171_v0 = vadd.f32 %v1118_v62, %v786_v54  ;;  %v3259_v48 = vld [vmem:[%s3530_s9 + $0x78] sm:$0xff] (!%p3623_p2)   ;;  %v1218_v49 = vld [vmem:[#allocation3 + $0x10] sm:$0xff] (!%p3623_p2) }
 0x16d   : > { %1189 = vst [vmem:[#allocation2 + $0x58] sm:$0xff] %v1157_v59  ;;  %1205 = vst [vmem:[#allocation2 + $0xd8] sm:$0xff] %v1173_v60  ;;  %3079 = vmatpush3.bf16.msra.mxu0 (!%p3623_p2), %v3238_v27  ;;  %3148 = vmatpush3.bf16.msra.mxu1 (!%p3623_p2), %v3238_v27  ;;  %v1234_v50 = vld [vmem:[#allocation3 + $0x90] sm:$0xff] (!%p3623_p2)  ;;  %v1216_v51 = vld [vmem:[#allocation3] sm:$0xff] (!%p3623_p2) }
 0x16e   : > { %1187 = vst [vmem:[#allocation2 + $0x48] sm:$0xff] %v1155_v63  ;;  %1203 = vst [vmem:[#allocation2 + $0xc8] sm:$0xff] %v1171_v0  ;;  %3080 = vmatprep.subr.bf16.mxu0 (!%p3623_p2), %v3239_v28  ;;  %3141 = vmatprep.subr.bf16.mxu1 (!%p3623_p2), %v3239_v28  ;;  %v1232_v52 = vld [vmem:[#allocation3 + $0x80] sm:$0xff] (!%p3623_p2)  ;;  %v1219_v55 = vld [vmem:[#allocation3 + $0x18] sm:$0xff] (!%p3623_p2) }
 0x16f   : > { %v1235_v56 = vld [vmem:[#allocation3 + $0x98] sm:$0xff] (!%p3623_p2)  ;;  %v1217_v61 = vld [vmem:[#allocation3 + $0x8] sm:$0xff] (!%p3623_p2) }
 0x170   : > { %v3056_v5 = vpop.f32.mrb[12].mxu0  ;;  %v3072_v6 = vpop.f32.mrb[12].mxu1  ;;  %1215 = sbr.rel (%p3623_p2) target bundleno = 630 (0x276), region = 81  ;;  %v1233_v62 = vld [vmem:[#allocation3 + $0x88] sm:$0xff] (!%p3623_p2) }
 0x171   : > { %v1160_v9 = vadd.f32 %v3056_v5, %v775_v1  ;;  %v1176_v10 = vadd.f32 %v3072_v6, %v791_v2  ;;  %v1067_v11 = vpop.f32.mrb[13].mxu0  ;;  %v1131_v12 = vpop.f32.mrb[13].mxu1  ;;  %3081 = vmatpush3.bf16.msra.mxu0 (!%p3623_p2), %v3239_v28  ;;  %3149 = vmatpush3.bf16.msra.mxu1 (!%p3623_p2), %v3239_v28 }
 0x172   : > { %v1158_v15 = vadd.f32 %v1067_v11, %v773_v3  ;;  %v1174_v16 = vadd.f32 %v1131_v12, %v789_v4  ;;  %v3057_v17 = vpop.f32.mrb[14].mxu0  ;;  %v3073_v18 = vpop.f32.mrb[14].mxu1  ;;  %3082 = vmatprep.subr.bf16.mxu0 (!%p3623_p2), %v3240_v31  ;;  %3142 = vmatprep.subr.bf16.mxu1 (!%p3623_p2), %v3240_v31  ;;  %v1220_v11 = vld [vmem:[#allocation3 + $0x20] sm:$0xff] (!%p3623_p2) }
 0x173   : > { %1192 = vst [vmem:[#allocation2 + $0x70] sm:$0xff] %v1160_v9  ;;  %1208 = vst [vmem:[#allocation2 + $0xf0] sm:$0xff] %v1176_v10  ;;  %v1161_v19 = vadd.f32 %v3057_v17, %v776_v7  ;;  %v1177_v20 = vadd.f32 %v3073_v18, %v792_v8  ;;  %v1070_v21 = vpop.f32.mrb[15].mxu0  ;;  %v1134_v22 = vpop.f32.mrb[15].mxu1  ;;  %v1222_v9 = vld [vmem:[#allocation3 + $0x30] sm:$0xff] (!%p3623_p2)  ;;  %v1236_v12 = vld [vmem:[#allocation3 + $0xa0] sm:$0xff] (!%p3623_p2) }
 0x174   : > { %1190 = vst [vmem:[#allocation2 + $0x60] sm:$0xff] %v1158_v15  ;;  %1206 = vst [vmem:[#allocation2 + $0xe0] sm:$0xff] %v1174_v16  ;;  %v1159_v23 = vadd.f32 %v1070_v21, %v774_v13  ;;  %v1175_v24 = vadd.f32 %v1134_v22, %v790_v14  ;;  %v1238_v10 = vld [vmem:[#allocation3 + $0xb0] sm:$0xff] (!%p3623_p2)  ;;  %v1223_v15 = vld [vmem:[#allocation3 + $0x38] sm:$0xff] (!%p3623_p2) }
 0x175   : > { %1193 = vst [vmem:[#allocation2 + $0x78] sm:$0xff] %v1161_v19  ;;  %1209 = vst [vmem:[#allocation2 + $0xf8] sm:$0xff] %v1177_v20  ;;  %3083 = vmatpush3.bf16.msra.mxu0 (!%p3623_p2), %v3240_v31  ;;  %3150 = vmatpush3.bf16.msra.mxu1 (!%p3623_p2), %v3240_v31  ;;  %v1239_v16 = vld [vmem:[#allocation3 + $0xb8] sm:$0xff] (!%p3623_p2)  ;;  %v1221_v21 = vld [vmem:[#allocation3 + $0x28] sm:$0xff] (!%p3623_p2) }
 0x176   : > { %1191 = vst [vmem:[#allocation2 + $0x68] sm:$0xff] %v1159_v23  ;;  %1207 = vst [vmem:[#allocation2 + $0xe8] sm:$0xff] %v1175_v24  ;;  %3084 = vmatprep.subr.bf16.mxu0 (!%p3623_p2), %v3241_v32  ;;  %3143 = vmatprep.subr.bf16.mxu1 (!%p3623_p2), %v3241_v32  ;;  %v1237_v22 = vld [vmem:[#allocation3 + $0xa8] sm:$0xff] (!%p3623_p2) }
 0x179   : > { %3085 = vmatpush3.bf16.msra.mxu0 %v3241_v32  ;;  %3151 = vmatpush3.bf16.msra.mxu1 %v3241_v32 }
 0x17a   : > { %3086 = vmatprep.subr.bf16.mxu0 %v3242_v33  ;;  %3144 = vmatprep.subr.bf16.mxu1 %v3242_v33 }
 0x17d   : > { %3087 = vmatpush3.bf16.msra.mxu0 %v3242_v33  ;;  %3152 = vmatpush3.bf16.msra.mxu1 %v3242_v33  ;;  %v1226_v33 = vld [vmem:[#allocation3 + $0x50] sm:$0xff] }
 0x17e   : > { %3088 = vmatprep.subr.bf16.mxu0 %v3243_v34  ;;  %3145 = vmatprep.subr.bf16.mxu1 %v3243_v34 }
 0x181   : > { %3089 = vmatpush3.bf16.msra.mxu0 %v3243_v34  ;;  %3153 = vmatpush3.bf16.msra.mxu1 %v3243_v34  ;;  %v1242_v34 = vld [vmem:[#allocation3 + $0xd0] sm:$0xff] }
 0x184   : > { %3091 = vmatmul.mubr.bf16.vlgmr.msra.gmra.mrb[0].mxu0 %v3246_v35  ;;  %3107 = vmatmul.mubr.bf16.vlgmr.msra.gmra.mrb[0].mxu1 %v3247_v36  ;;  %v1224_v35 = vld [vmem:[#allocation3 + $0x40] sm:$0xff] }
 0x185   : > { %3094 = vmatprep.mubr.bf16.mxu0 %v3248_v37  ;;  %3110 = vmatprep.mubr.bf16.mxu1 %v3249_v38  ;;  %v1240_v36 = vld [vmem:[#allocation3 + $0xc0] sm:$0xff] }
 0x18c   : > { %3095 = vmatmul.mubr.bf16.gmra.mrb[4].mxu0 %v3250_v39  ;;  %3111 = vmatmul.mubr.bf16.gmra.mrb[4].mxu1 %v3251_v40  ;;  %v1227_v39 = vld [vmem:[#allocation3 + $0x58] sm:$0xff] }
 0x18d   : > { %3098 = vmatprep.mubr.bf16.mxu0 %v3252_v41  ;;  %3114 = vmatprep.mubr.bf16.mxu1 %v3253_v42  ;;  %v1243_v40 = vld [vmem:[#allocation3 + $0xd8] sm:$0xff] }
 0x194   : > { %3099 = vmatmul.mubr.bf16.gmra.mrb[8].mxu0 %v3254_v43  ;;  %3115 = vmatmul.mubr.bf16.gmra.mrb[8].mxu1 %v3255_v44 }
 0x195   : > { %3102 = vmatprep.mubr.bf16.mxu0 %v3256_v45  ;;  %3118 = vmatprep.mubr.bf16.mxu1 %v3257_v46  ;;  %v1225_v45 = vld [vmem:[#allocation3 + $0x48] sm:$0xff] }
 0x196   : > { %v1241_v46 = vld [vmem:[#allocation3 + $0xc8] sm:$0xff] }
 0x19c   : > { %3103 = vmatmul.mubr.bf16.gmra.mrb[12].mxu0 %v3258_v47  ;;  %3119 = vmatmul.mubr.bf16.gmra.mrb[12].mxu1 %v3259_v48 }
 0x257   : > { %v3092_v53 = vpop.f32.mrb[0].mxu0  ;;  %v3108_v54 = vpop.f32.mrb[0].mxu1 }
 0x258   : > { %v1603_v57 = vadd.f32 %v3092_v53, %v1218_v49  ;;  %v1619_v58 = vadd.f32 %v3108_v54, %v1234_v50  ;;  %v1474_v59 = vpop.f32.mrb[1].mxu0  ;;  %v1538_v60 = vpop.f32.mrb[1].mxu1 }
 0x259   : > { %v1601_v63 = vadd.f32 %v1474_v59, %v1216_v51  ;;  %v1617_v0 = vadd.f32 %v1538_v60, %v1232_v52  ;;  %v3093_v1 = vpop.f32.mrb[2].mxu0  ;;  %v3109_v2 = vpop.f32.mrb[2].mxu1  ;;  %v1228_v59 = vld [vmem:[#allocation3 + $0x60] sm:$0xff] }
 0x25a   : > { %1635 = vst [vmem:[#allocation3 + $0x10] sm:$0xff] %v1603_v57  ;;  %1651 = vst [vmem:[#allocation3 + $0x90] sm:$0xff] %v1619_v58  ;;  %v1604_v3 = vadd.f32 %v3093_v1, %v1219_v55  ;;  %v1620_v4 = vadd.f32 %v3109_v2, %v1235_v56  ;;  %v1477_v5 = vpop.f32.mrb[3].mxu0  ;;  %v1541_v6 = vpop.f32.mrb[3].mxu1  ;;  %v1230_v57 = vld [vmem:[#allocation3 + $0x70] sm:$0xff]  ;;  %v1244_v60 = vld [vmem:[#allocation3 + $0xe0] sm:$0xff] }
 0x25b   : > { %1633 = vst [vmem:[#allocation3] sm:$0xff] %v1601_v63  ;;  %1649 = vst [vmem:[#allocation3 + $0x80] sm:$0xff] %v1617_v0  ;;  %v1602_v7 = vadd.f32 %v1477_v5, %v1217_v61  ;;  %v1618_v8 = vadd.f32 %v1541_v6, %v1233_v62  ;;  %v1246_v58 = vld [vmem:[#allocation3 + $0xf0] sm:$0xff]  ;;  %v1231_v63 = vld [vmem:[#allocation3 + $0x78] sm:$0xff] }
 0x25c   : > { %1636 = vst [vmem:[#allocation3 + $0x18] sm:$0xff] %v1604_v3  ;;  %1652 = vst [vmem:[#allocation3 + $0x98] sm:$0xff] %v1620_v4  ;;  %v1247_v0 = vld [vmem:[#allocation3 + $0xf8] sm:$0xff]  ;;  %v1229_v5 = vld [vmem:[#allocation3 + $0x68] sm:$0xff] }
 0x25d   : > { %1634 = vst [vmem:[#allocation3 + $0x8] sm:$0xff] %v1602_v7  ;;  %1650 = vst [vmem:[#allocation3 + $0x88] sm:$0xff] %v1618_v8  ;;  %v1245_v6 = vld [vmem:[#allocation3 + $0xe8] sm:$0xff] }
 0x25f   : > { %v3096_v13 = vpop.f32.mrb[4].mxu0  ;;  %v3112_v14 = vpop.f32.mrb[4].mxu1 }
 0x260   : > { %v1607_v17 = vadd.f32 %v3096_v13, %v1222_v9  ;;  %v1623_v18 = vadd.f32 %v3112_v14, %v1238_v10  ;;  %v1490_v19 = vpop.f32.mrb[5].mxu0  ;;  %v1554_v20 = vpop.f32.mrb[5].mxu1 }
 0x261   : > { %v1605_v23 = vadd.f32 %v1490_v19, %v1220_v11  ;;  %v1621_v24 = vadd.f32 %v1554_v20, %v1236_v12  ;;  %v3097_v25 = vpop.f32.mrb[6].mxu0  ;;  %v3113_v26 = vpop.f32.mrb[6].mxu1 }
 0x262   : > { %1639 = vst [vmem:[#allocation3 + $0x30] sm:$0xff] %v1607_v17  ;;  %1655 = vst [vmem:[#allocation3 + $0xb0] sm:$0xff] %v1623_v18  ;;  %v1608_v27 = vadd.f32 %v3097_v25, %v1223_v15  ;;  %v1624_v28 = vadd.f32 %v3113_v26, %v1239_v16  ;;  %v1493_v29 = vpop.f32.mrb[7].mxu0  ;;  %v1557_v30 = vpop.f32.mrb[7].mxu1 }
 0x263   : > { %1637 = vst [vmem:[#allocation3 + $0x20] sm:$0xff] %v1605_v23  ;;  %1653 = vst [vmem:[#allocation3 + $0xa0] sm:$0xff] %v1621_v24  ;;  %v1606_v31 = vadd.f32 %v1493_v29, %v1221_v21  ;;  %v1622_v32 = vadd.f32 %v1557_v30, %v1237_v22 }
 0x264   : > { %1640 = vst [vmem:[#allocation3 + $0x38] sm:$0xff] %v1608_v27  ;;  %1656 = vst [vmem:[#allocation3 + $0xb8] sm:$0xff] %v1624_v28 }
 0x265   : > { %1638 = vst [vmem:[#allocation3 + $0x28] sm:$0xff] %v1606_v31  ;;  %1654 = vst [vmem:[#allocation3 + $0xa8] sm:$0xff] %v1622_v32 }
 0x267   : > { %v3100_v37 = vpop.f32.mrb[8].mxu0  ;;  %v3116_v38 = vpop.f32.mrb[8].mxu1 }
 0x268   : > { %v1611_v41 = vadd.f32 %v3100_v37, %v1226_v33  ;;  %v1627_v42 = vadd.f32 %v3116_v38, %v1242_v34  ;;  %v1506_v43 = vpop.f32.mrb[9].mxu0  ;;  %v1570_v44 = vpop.f32.mrb[9].mxu1 }
 0x269   : > { %v1609_v47 = vadd.f32 %v1506_v43, %v1224_v35  ;;  %v1625_v48 = vadd.f32 %v1570_v44, %v1240_v36  ;;  %v3101_v49 = vpop.f32.mrb[10].mxu0  ;;  %v3117_v50 = vpop.f32.mrb[10].mxu1 }
 0x26a   : > { %1643 = vst [vmem:[#allocation3 + $0x50] sm:$0xff] %v1611_v41  ;;  %1659 = vst [vmem:[#allocation3 + $0xd0] sm:$0xff] %v1627_v42  ;;  %v1612_v51 = vadd.f32 %v3101_v49, %v1227_v39  ;;  %v1628_v52 = vadd.f32 %v3117_v50, %v1243_v40  ;;  %v1509_v53 = vpop.f32.mrb[11].mxu0  ;;  %v1573_v54 = vpop.f32.mrb[11].mxu1 }
 0x26b   : > { %1641 = vst [vmem:[#allocation3 + $0x40] sm:$0xff] %v1609_v47  ;;  %1657 = vst [vmem:[#allocation3 + $0xc0] sm:$0xff] %v1625_v48  ;;  %v1610_v55 = vadd.f32 %v1509_v53, %v1225_v45  ;;  %v1626_v56 = vadd.f32 %v1573_v54, %v1241_v46 }
 0x26c   : > { %1644 = vst [vmem:[#allocation3 + $0x58] sm:$0xff] %v1612_v51  ;;  %1660 = vst [vmem:[#allocation3 + $0xd8] sm:$0xff] %v1628_v52 }
 0x26d   : > { %1642 = vst [vmem:[#allocation3 + $0x48] sm:$0xff] %v1610_v55  ;;  %1658 = vst [vmem:[#allocation3 + $0xc8] sm:$0xff] %v1626_v56 }
 0x26f   : > { %v3104_v61 = vpop.f32.mrb[12].mxu0  ;;  %v3120_v62 = vpop.f32.mrb[12].mxu1 }
 0x270   : > { %v1615_v1 = vadd.f32 %v3104_v61, %v1230_v57  ;;  %v1631_v2 = vadd.f32 %v3120_v62, %v1246_v58  ;;  %v1522_v3 = vpop.f32.mrb[13].mxu0  ;;  %v1586_v4 = vpop.f32.mrb[13].mxu1 }
 0x271   : > { %v1613_v7 = vadd.f32 %v1522_v3, %v1228_v59  ;;  %v1629_v8 = vadd.f32 %v1586_v4, %v1244_v60  ;;  %v3105_v9 = vpop.f32.mrb[14].mxu0  ;;  %v3121_v10 = vpop.f32.mrb[14].mxu1 }
 0x272   : > { %1647 = vst [vmem:[#allocation3 + $0x70] sm:$0xff] %v1615_v1  ;;  %1663 = vst [vmem:[#allocation3 + $0xf0] sm:$0xff] %v1631_v2  ;;  %v1616_v11 = vadd.f32 %v3105_v9, %v1231_v63  ;;  %v1632_v12 = vadd.f32 %v3121_v10, %v1247_v0  ;;  %v1525_v13 = vpop.f32.mrb[15].mxu0  ;;  %v1589_v14 = vpop.f32.mrb[15].mxu1 }
 0x273   : > { %1645 = vst [vmem:[#allocation3 + $0x60] sm:$0xff] %v1613_v7  ;;  %1661 = vst [vmem:[#allocation3 + $0xe0] sm:$0xff] %v1629_v8  ;;  %v1614_v15 = vadd.f32 %v1525_v13, %v1229_v5  ;;  %v1630_v16 = vadd.f32 %v1589_v14, %v1245_v6 }
 0x274   : > { %1648 = vst [vmem:[#allocation3 + $0x78] sm:$0xff] %v1616_v11  ;;  %1664 = vst [vmem:[#allocation3 + $0xf8] sm:$0xff] %v1632_v12 }
 0x275   : > { %1646 = vst [vmem:[#allocation3 + $0x68] sm:$0xff] %v1614_v15  ;;  %1662 = vst [vmem:[#allocation3 + $0xe8] sm:$0xff] %v1630_v16 }
 0x276 PF: > { %p2657_p3 = scmp.ne.s32.totalorder %s3298_s29, 8 }
 0x277   : > { %v1669_v17 = vld [vmem:[#allocation2] sm:$0xff] (!%p2657_p3)  ;;  %v1670_v18 = vld [vmem:[#allocation2 + $0x8] sm:$0xff] (!%p2657_p3)  ;;  %v1671_v19 = vld [vmem:[#allocation2 + $0x10] sm:$0xff] (!%p2657_p3) }
 0x278   : > { %1668 = sbr.rel (%p2657_p3) target bundleno = 724 (0x2d4), region = 85  ;;  %v2791_v20 = vpack.c.bf16 (!%p2657_p3), %v1670_v18, %v1669_v17  ;;  %v1861_v21 = vadd.f32 (!%p2657_p3), %v1670_v18, %v1669_v17  ;;  %v1899_v22 = vmul.f32 (!%p2657_p3), %v1669_v17, %v1669_v17  ;;  %v1900_v23 = vmul.f32 (!%p2657_p3), %v1670_v18, %v1670_v18  ;;  %v1672_v24 = vld [vmem:[#allocation2 + $0x18] sm:$0xff] (!%p2657_p3)  ;;  %v1673_v25 = vld [vmem:[#allocation2 + $0x20] sm:$0xff] (!%p2657_p3)  ;;  %v1674_v26 = vld [vmem:[#allocation2 + $0x28] sm:$0xff] (!%p2657_p3) }
 0x279   : > { %v2796_v27 = vpack.c.bf16 (!%p2657_p3), %v1672_v24, %v1671_v19  ;;  %v1901_v28 = vmul.f32 (!%p2657_p3), %v1671_v19, %v1671_v19  ;;  %v2801_v29 = vpack.c.bf16 (!%p2657_p3), %v1674_v26, %v1673_v25  ;;  %v1675_v30 = vld [vmem:[#allocation2 + $0x30] sm:$0xff] (!%p2657_p3)  ;;  %v1902_v33 = vmul.f32 (!%p2657_p3), %v1672_v24, %v1672_v24  ;;  %v1676_v34 = vld [vmem:[#allocation2 + $0x38] sm:$0xff] (!%p2657_p3)  ;;  %v3671_v35 = vld [vmem:[#allocation2 + $0x40] sm:$0xff] (!%p2657_p3) }
 0x27a   : > { %2792 = vst [vmem:[%s3507_s26] sm:$0xff] (!%p2657_p3), %v2791_v20   ;;  %v1931_v31 = vadd.f32 (!%p2657_p3), %v1900_v23, %v1899_v22  ;;  %v1862_v32 = vadd.f32 (!%p2657_p3), %v1861_v21, %v1671_v19  ;;  %v3673_v36 = vld [vmem:[#allocation2 + $0x48] sm:$0xff] (!%p2657_p3)  ;;  %v2806_v37 = vpack.c.bf16 (!%p2657_p3), %v1676_v34, %v1675_v30  ;;  %v3679_v39 = vld [vmem:[#allocation2 + $0x50] sm:$0xff] (!%p2657_p3)  ;;  %v1903_v42 = vmul.f32 (!%p2657_p3), %v1673_v25, %v1673_v25  ;;  %v3681_v43 = vld [vmem:[#allocation2 + $0x58] sm:$0xff] (!%p2657_p3) }
 0x27b   : > { %2948 = vst [vmem:[%s3507_s26 + $0x8] sm:$0xff] (!%p2657_p3), %v2796_v27   ;;  %2949 = vst [vmem:[%s3507_s26 + $0x10] sm:$0xff] (!%p2657_p3), %v2801_v29   ;;  %v2811_v38 = vpack.c.bf16 (!%p2657_p3), %v3673_v36, %v3671_v35  ;;  %v3683_v44 = vld [vmem:[#allocation2 + $0x60] sm:$0xff] (!%p2657_p3)  ;;  %v2816_v46 = vpack.c.bf16 (!%p2657_p3), %v3681_v43, %v3679_v39  ;;  %v3693_v48 = vld [vmem:[#allocation2 + $0x70] sm:$0xff] (!%p2657_p3)  ;;  %v1904_v51 = vmul.f32 (!%p2657_p3), %v1674_v26, %v1674_v26 }
 0x27c   : > { %v1863_v40 = vadd.f32 (!%p2657_p3), %v1862_v32, %v1672_v24  ;;  %v1932_v41 = vadd.f32 (!%p2657_p3), %v1931_v31, %v1901_v28  ;;  %v3685_v45 = vld [vmem:[#allocation2 + $0x68] sm:$0xff] (!%p2657_p3)  ;;  %2950 = vst [vmem:[%s3507_s26 + $0x18] sm:$0xff] (!%p2657_p3), %v2806_v37   ;;  %v3695_v52 = vld [vmem:[#allocation2 + $0x78] sm:$0xff] (!%p2657_p3)  ;;  %v3697_v53 = vld [vmem:[#allocation2 + $0x80] sm:$0xff] (!%p2657_p3)  ;;  %v1905_v60 = vmul.f32 (!%p2657_p3), %v1675_v30, %v1675_v30  ;;  %v1906_v5 = vmul.f32 (!%p2657_p3), %v1676_v34, %v1676_v34 }
 0x27d   : > { %2951 = vst [vmem:[%s3507_s26 + $0x20] sm:$0xff] (!%p2657_p3), %v2811_v38   ;;  %v2821_v47 = vpack.c.bf16 (!%p2657_p3), %v3685_v45, %v3683_v44  ;;  %v3699_v54 = vld [vmem:[#allocation2 + $0x88] sm:$0xff] (!%p2657_p3)  ;;  %2952 = vst [vmem:[%s3507_s26 + $0x28] sm:$0xff] (!%p2657_p3), %v2816_v46   ;;  %v2826_v55 = vpack.c.bf16 (!%p2657_p3), %v3695_v52, %v3693_v48  ;;  %v3707_v57 = vld [vmem:[#allocation2 + $0x90] sm:$0xff] (!%p2657_p3)  ;;  %v1907_v14 = vmul.f32 (!%p2657_p3), %v3671_v35, %v3671_v35 }
 0x27e   : > { %v1933_v49 = vadd.f32 (!%p2657_p3), %v1932_v41, %v1902_v33  ;;  %v1864_v50 = vadd.f32 (!%p2657_p3), %v1863_v40, %v1673_v25  ;;  %v2831_v56 = vpack.c.bf16 (!%p2657_p3), %v3699_v54, %v3697_v53  ;;  %v3709_v61 = vld [vmem:[#allocation2 + $0x98] sm:$0xff] (!%p2657_p3)  ;;  %v3711_v62 = vld [vmem:[#allocation2 + $0xa0] sm:$0xff] (!%p2657_p3)  ;;  %v3713_v63 = vld [vmem:[#allocation2 + $0xa8] sm:$0xff] (!%p2657_p3)  ;;  %v1908_v24 = vmul.f32 (!%p2657_p3), %v3673_v36, %v3673_v36 }
 0x27f   : > { %2953 = vst [vmem:[%s3507_s26 + $0x30] sm:$0xff] %v2821_v47   ;;  %2954 = vst [vmem:[%s3507_s26 + $0x38] sm:$0xff] %v2826_v55   ;;  %v2836_v0 = vpack.c.bf16 %v3709_v61, %v3707_v57  ;;  %v2841_v1 = vpack.c.bf16 %v3713_v63, %v3711_v62  ;;  %v3721_v2 = vld [vmem:[#allocation2 + $0xb0] sm:$0xff]  ;;  %v3723_v6 = vld [vmem:[#allocation2 + $0xb8] sm:$0xff]  ;;  %v1909_v28 = vmul.f32 %v3679_v39, %v3679_v39 }
 0x280   : > { %v1865_v58 = vadd.f32 %v1864_v50, %v1674_v26  ;;  %v1934_v59 = vadd.f32 %v1933_v49, %v1903_v42  ;;  %2955 = vst [vmem:[%s3507_s26 + $0x40] sm:$0xff] %v2831_v56   ;;  %v3725_v7 = vld [vmem:[#allocation2 + $0xc0] sm:$0xff]  ;;  %v3727_v8 = vld [vmem:[#allocation2 + $0xc8] sm:$0xff]  ;;  %v2846_v9 = vpack.c.bf16 %v3723_v6, %v3721_v2  ;;  %v3735_v11 = vld [vmem:[#allocation2 + $0xd0] sm:$0xff]  ;;  %v1910_v37 = vmul.f32 %v3681_v43, %v3681_v43 }
 0x281   : > { %2956 = vst [vmem:[%s3507_s26 + $0x48] sm:$0xff] %v2836_v0   ;;  %2957 = vst [vmem:[%s3507_s26 + $0x50] sm:$0xff] %v2841_v1   ;;  %v2851_v10 = vpack.c.bf16 %v3727_v8, %v3725_v7  ;;  %v3739_v15 = vld [vmem:[#allocation2 + $0xd8] sm:$0xff]  ;;  %v3741_v16 = vld [vmem:[#allocation2 + $0xe0] sm:$0xff]  ;;  %v1911_v1 = vmul.f32 %v3683_v44, %v3683_v44 }
 0x282   : > { %v1935_v3 = vadd.f32 %v1934_v59, %v1904_v51  ;;  %v1866_v4 = vadd.f32 %v1865_v58, %v1675_v30  ;;  %v3743_v17 = vld [vmem:[#allocation2 + $0xe8] sm:$0xff]  ;;  %2958 = vst [vmem:[%s3507_s26 + $0x58] sm:$0xff] %v2846_v9   ;;  %v2856_v18 = vpack.c.bf16 %v3739_v15, %v3735_v11  ;;  %v3751_v20 = vld [vmem:[#allocation2 + $0xf0] sm:$0xff]  ;;  %v1969_v21 = vld [vmem:[#allocation3] sm:$0xff] }
 0x283   : > { %2959 = vst [vmem:[%s3507_s26 + $0x60] sm:$0xff] %v2851_v10   ;;  %v2861_v19 = vpack.c.bf16 %v3743_v17, %v3741_v16  ;;  %v3756_v25 = vld [vmem:[#allocation2 + $0xf8] sm:$0xff]  ;;  %v1970_v26 = vld [vmem:[#allocation3 + $0x8] sm:$0xff]  ;;  %v1971_v27 = vld [vmem:[#allocation3 + $0x10] sm:$0xff] }
 0x284   : > { %v1867_v12 = vadd.f32 %v1866_v4, %v1676_v34  ;;  %v1936_v13 = vadd.f32 %v1935_v3, %v1905_v60  ;;  %2960 = vst [vmem:[%s3507_s26 + $0x68] sm:$0xff] %v2856_v18   ;;  %v2866_v29 = vpack.c.bf16 %v3756_v25, %v3751_v20  ;;  %v2871_v30 = vpack.c.bf16 %v1970_v26, %v1969_v21  ;;  %v1973_v42 = vld [vmem:[#allocation3 + $0x20] sm:$0xff]  ;;  %v1974_v46 = vld [vmem:[#allocation3 + $0x28] sm:$0xff]  ;;  %v1975_v51 = vld [vmem:[#allocation3 + $0x30] sm:$0xff] }
 0x285   : > { %2961 = vst [vmem:[%s3507_s26 + $0x70] sm:$0xff] %v2861_v19   ;;  %v2161_v33 = vadd.f32 %v1970_v26, %v1969_v21  ;;  %v2199_v34 = vmul.f32 %v1969_v21, %v1969_v21  ;;  %v2200_v38 = vmul.f32 %v1970_v26, %v1970_v26  ;;  %v2201_v41 = vmul.f32 %v1971_v27, %v1971_v27  ;;  %v1976_v55 = vld [vmem:[#allocation3 + $0x38] sm:$0xff]  ;;  %v1977_v4 = vld [vmem:[#allocation3 + $0x40] sm:$0xff]  ;;  %v3782_v18 = vld [vmem:[#allocation3 + $0x50] sm:$0xff] }
 0x286   : > { %v1937_v22 = vadd.f32 %v1936_v13, %v1906_v5  ;;  %v1868_v23 = vadd.f32 %v1867_v12, %v3671_v35  ;;  %v1972_v35 = vld [vmem:[#allocation3 + $0x18] sm:$0xff]  ;;  %2962 = vst [vmem:[%s3507_s26 + $0x78] sm:$0xff] %v2866_v29   ;;  %2872 = vst [vmem:[%s3520_s13] sm:$0xff] %v2871_v30   ;;  %v2881_v50 = vpack.c.bf16 %v1974_v46, %v1973_v42  ;;  %v3791_v26 = vld [vmem:[#allocation3 + $0x60] sm:$0xff] }
 0x287   : > { %v2876_v40 = vpack.c.bf16 %v1972_v35, %v1971_v27  ;;  %v2231_v56 = vadd.f32 %v2200_v38, %v2199_v34  ;;  %v2202_v58 = vmul.f32 %v1972_v35, %v1972_v35  ;;  %v2886_v59 = vpack.c.bf16 %v1976_v55, %v1975_v51  ;;  %v3784_v19 = vld [vmem:[#allocation3 + $0x58] sm:$0xff] }
 0x288   : > { %v1869_v31 = vadd.f32 %v1868_v23, %v3673_v36  ;;  %v1938_v32 = vadd.f32 %v1937_v22, %v1907_v14  ;;  %v2162_v36 = vadd.f32 %v2161_v33, %v1971_v27  ;;  %2964 = vst [vmem:[%s3520_s13 + $0x10] sm:$0xff] %v2881_v50   ;;  %v2203_v9 = vmul.f32 %v1973_v42, %v1973_v42 }
 0x289   : > { %2963 = vst [vmem:[%s3520_s13 + $0x8] sm:$0xff] %v2876_v40   ;;  %v2232_v5 = vadd.f32 %v2231_v56, %v2201_v41  ;;  %2965 = vst [vmem:[%s3520_s13 + $0x18] sm:$0xff] %v2886_v59   ;;  %v1913_v21 = vmul.f32 %v3693_v48, %v3693_v48  ;;  %v2204_v23 = vmul.f32 %v1974_v46, %v1974_v46  ;;  %v3809_v41 = vld [vmem:[#allocation3 + $0x80] sm:$0xff] }
 0x28a   : > { %v1939_v47 = vadd.f32 %v1938_v32, %v1908_v24  ;;  %v1870_v49 = vadd.f32 %v1869_v31, %v3679_v39  ;;  %v2163_v3 = vadd.f32 %v2162_v36, %v1972_v35  ;;  %v3775_v39 = vld [vmem:[#allocation3 + $0x48] sm:$0xff]  ;;  %v2896_v24 = vpack.c.bf16 %v3784_v19, %v3782_v18  ;;  %v3798_v31 = vld [vmem:[#allocation3 + $0x70] sm:$0xff]  ;;  %v3800_v32 = vld [vmem:[#allocation3 + $0x78] sm:$0xff] }
 0x28b   : > { %v2891_v10 = vpack.c.bf16 %v3775_v39, %v1977_v4  ;;  %v2233_v22 = vadd.f32 %v2232_v5, %v2202_v58  ;;  %v2205_v34 = vmul.f32 %v1975_v51, %v1975_v51  ;;  %v2906_v35 = vpack.c.bf16 %v3800_v32, %v3798_v31  ;;  %v3821_v58 = vld [vmem:[#allocation3 + $0x98] sm:$0xff] }
 0x28c   : > { %v1871_v60 = vadd.f32 %v1870_v49, %v3681_v43  ;;  %v1940_v0 = vadd.f32 %v1939_v47, %v1909_v28  ;;  %v1912_v43 = vmul.f32 %v3685_v45, %v3685_v45  ;;  %v2164_v14 = vadd.f32 %v2163_v3, %v1973_v42  ;;  %2967 = vst [vmem:[%s3520_s13 + $0x28] sm:$0xff] %v2896_v24   ;;  %v3811_v42 = vld [vmem:[#allocation3 + $0x88] sm:$0xff]  ;;  %v3849_v24 = vld [vmem:[#allocation3 + $0xc0] sm:$0xff] }
 0x28d   : > { %2966 = vst [vmem:[%s3520_s13 + $0x20] sm:$0xff] %v2891_v10   ;;  %v2234_v33 = vadd.f32 %v2233_v22, %v2203_v9  ;;  %v2206_v47 = vmul.f32 %v1976_v55, %v1976_v55  ;;  %2969 = vst [vmem:[%s3520_s13 + $0x38] sm:$0xff] %v2906_v35   ;;  %v2911_v49 = vpack.c.bf16 %v3811_v42, %v3809_v41  ;;  %v3830_v3 = vld [vmem:[#allocation3 + $0xa8] sm:$0xff]  ;;  %v3862_v35 = vld [vmem:[#allocation3 + $0xd0] sm:$0xff] }
 0x28e   : > { %v1941_v12 = vadd.f32 %v1940_v0, %v1910_v37  ;;  %v1872_v13 = vadd.f32 %v1871_v60, %v3683_v44  ;;  %v3793_v44 = vld [vmem:[#allocation3 + $0x68] sm:$0xff]  ;;  %v2165_v29 = vadd.f32 %v2164_v14, %v1974_v46  ;;  %v1916_v59 = vmul.f32 %v3699_v54, %v3699_v54 }
 0x28f   : > { %v2901_v30 = vpack.c.bf16 %v3793_v44, %v3791_v26  ;;  %v2235_v46 = vadd.f32 %v2234_v33, %v2204_v23  ;;  %v2207_v0 = vmul.f32 %v1977_v4, %v1977_v4  ;;  %2970 = vst [vmem:[%s3520_s13 + $0x40] sm:$0xff] %v2911_v49   ;;  %v2208_v14 = vmul.f32 %v3775_v39, %v3775_v39 }
 0x290   : > { %v1873_v27 = vadd.f32 %v1872_v13, %v3685_v45  ;;  %v1942_v28 = vadd.f32 %v1941_v12, %v1911_v1  ;;  %v1914_v45 = vmul.f32 %v3695_v52, %v3695_v52  ;;  %v2166_v40 = vadd.f32 %v2165_v29, %v1975_v51  ;;  %v3819_v51 = vld [vmem:[#allocation3 + $0x90] sm:$0xff]  ;;  %v3837_v13 = vld [vmem:[#allocation3 + $0xb8] sm:$0xff] }
 0x291   : > { %2968 = vst [vmem:[%s3520_s13 + $0x30] sm:$0xff] %v2901_v30   ;;  %v2236_v60 = vadd.f32 %v2235_v46, %v2205_v34  ;;  %v2916_v1 = vpack.c.bf16 %v3821_v58, %v3819_v51  ;;  %v3835_v12 = vld [vmem:[#allocation3 + $0xb0] sm:$0xff]  ;;  %v2209_v29 = vmul.f32 %v3782_v18, %v3782_v18  ;;  %v3873_v46 = vld [vmem:[#allocation3 + $0xe0] sm:$0xff] }
 0x292   : > { %v1943_v37 = vadd.f32 %v1942_v28, %v1912_v43  ;;  %v1874_v38 = vadd.f32 %v1873_v27, %v3693_v48  ;;  %v1915_v48 = vmul.f32 %v3697_v53, %v3697_v53  ;;  %v2167_v56 = vadd.f32 %v2166_v40, %v1976_v55  ;;  %v3851_v27 = vld [vmem:[#allocation3 + $0xc8] sm:$0xff] }
 0x293   : > { %v2237_v43 = vadd.f32 %v2236_v60, %v2206_v47  ;;  %2971 = vst [vmem:[%s3520_s13 + $0x48] sm:$0xff] %v2916_v1   ;;  %v2210_v40 = vmul.f32 %v3784_v19, %v3784_v19  ;;  %v2211_v60 = vmul.f32 %v3791_v26, %v3791_v26 }
 0x294   : > { %v1875_v36 = vadd.f32 %v1874_v38, %v3695_v52  ;;  %v1944_v50 = vadd.f32 %v1943_v37, %v1913_v21  ;;  %v3828_v52 = vld [vmem:[#allocation3 + $0xa0] sm:$0xff]  ;;  %v2168_v9 = vadd.f32 %v2167_v56, %v1977_v4  ;;  %v2926_v21 = vpack.c.bf16 %v3837_v13, %v3835_v12  ;;  %v3864_v37 = vld [vmem:[#allocation3 + $0xd8] sm:$0xff] }
 0x295   : > { %v2921_v10 = vpack.c.bf16 %v3830_v3, %v3828_v52  ;;  %v1917_v4 = vmul.f32 %v3707_v57, %v3707_v57  ;;  %v2238_v28 = vadd.f32 %v2237_v43, %v2207_v0  ;;  %v1919_v38 = vmul.f32 %v3711_v62, %v3711_v62  ;;  %v3883_v56 = vld [vmem:[#allocation3 + $0xf8] sm:$0xff] }
 0x296   : > { %v1945_v55 = vadd.f32 %v1944_v50, %v1914_v45  ;;  %v1876_v5 = vadd.f32 %v1875_v36, %v3697_v53  ;;  %v2169_v23 = vadd.f32 %v2168_v9, %v3775_v39  ;;  %2973 = vst [vmem:[%s3520_s13 + $0x58] sm:$0xff] %v2926_v21   ;;  %v1918_v39 = vmul.f32 %v3709_v61, %v3709_v61 }
 0x297   : > { %2972 = vst [vmem:[%s3520_s13 + $0x50] sm:$0xff] %v2921_v10   ;;  %v2239_v45 = vadd.f32 %v2238_v28, %v2208_v14  ;;  %v2212_v9 = vmul.f32 %v3793_v44, %v3793_v44  ;;  %v1921_v14 = vmul.f32 %v3721_v2, %v3721_v2 }
 0x298   : > { %v1877_v22 = vadd.f32 %v1876_v5, %v3699_v54  ;;  %v1946_v53 = vadd.f32 %v1945_v55, %v1915_v48  ;;  %v2931_v54 = vpack.c.bf16 %v3851_v27, %v3849_v24  ;;  %v2170_v34 = vadd.f32 %v2169_v23, %v3782_v18  ;;  %v3875_v18 = vld [vmem:[#allocation3 + $0xe8] sm:$0xff]  ;;  %v3881_v48 = vld [vmem:[#allocation3 + $0xf0] sm:$0xff] }
 0x299   : > { %v2941_v50 = vpack.c.bf16 %v3875_v18, %v3873_v46  ;;  %v2946_v0 = vpack.c.bf16 %v3883_v56, %v3881_v48 }
 0x29a   : > { %v1947_v30 = vadd.f32 %v1946_v53, %v1916_v59  ;;  %v1878_v33 = vadd.f32 %v1877_v22, %v3707_v57  ;;  %2974 = vst [vmem:[%s3520_s13 + $0x60] sm:$0xff] %v2931_v54   ;;  %v2936_v57 = vpack.c.bf16 %v3864_v37, %v3862_v35  ;;  %v2171_v36 = vadd.f32 %v2170_v34, %v3784_v19 }
 0x29b   : > { %v2240_v59 = vadd.f32 %v2239_v45, %v2209_v29  ;;  %v1920_v19 = vmul.f32 %v3713_v63, %v3713_v63  ;;  %2976 = vst [vmem:[%s3520_s13 + $0x70] sm:$0xff] %v2941_v50   ;;  %2977 = vst [vmem:[%s3520_s13 + $0x78] sm:$0xff] %v2946_v0   ;;  %v2213_v22 = vmul.f32 %v3798_v31, %v3798_v31 }
 0x29c   : > { %v1879_v47 = vadd.f32 %v1878_v33, %v3709_v61  ;;  %v1948_v49 = vadd.f32 %v1947_v30, %v1917_v4  ;;  %2975 = vst [vmem:[%s3520_s13 + $0x68] sm:$0xff] %v2936_v57   ;;  %v2172_v55 = vadd.f32 %v2171_v36, %v3791_v26  ;;  %v1922_v4 = vmul.f32 %v3723_v6, %v3723_v6 }
 0x29d   : > { %v2241_v5 = vadd.f32 %v2240_v59, %v2210_v40 }
 0x29e   : > { %v1949_v61 = vadd.f32 %v1948_v49, %v1918_v39  ;;  %v1880_v1 = vadd.f32 %v1879_v47, %v3711_v62  ;;  %v2173_v21 = vadd.f32 %v2172_v55, %v3793_v44  ;;  %v1923_v44 = vmul.f32 %v3725_v7, %v3725_v7 }
 0x29f   : > { %v2242_v62 = vadd.f32 %v2241_v5, %v2211_v60 }
 0x2a0   : > { %v1881_v10 = vadd.f32 %v1880_v1, %v3713_v63  ;;  %v1950_v43 = vadd.f32 %v1949_v61, %v1919_v38  ;;  %v2174_v23 = vadd.f32 %v2173_v21, %v3798_v31  ;;  %v2214_v63 = vmul.f32 %v3800_v32, %v3800_v32 }
 0x2a1   : > { %v2243_v28 = vadd.f32 %v2242_v62, %v2212_v9  ;;  %v1924_v31 = vmul.f32 %v3727_v8, %v3727_v8 }
 0x2a2   : > { %v1951_v53 = vadd.f32 %v1950_v43, %v1920_v19  ;;  %v1882_v26 = vadd.f32 %v1881_v10, %v3721_v2  ;;  %v2175_v30 = vadd.f32 %v2174_v23, %v3800_v32  ;;  %v2215_v2 = vmul.f32 %v3809_v41, %v3809_v41 }
 0x2a3   : > { %v2244_v33 = vadd.f32 %v2243_v28, %v2213_v22  ;;  %v1925_v32 = vmul.f32 %v3735_v11, %v3735_v11 }
 0x2a4   : > { %v1883_v29 = vadd.f32 %v1882_v26, %v3723_v6  ;;  %v1952_v54 = vadd.f32 %v1951_v53, %v1921_v14  ;;  %v2176_v38 = vadd.f32 %v2175_v30, %v3809_v41  ;;  %v2216_v6 = vmul.f32 %v3811_v42, %v3811_v42 }
 0x2a5   : > { %v2245_v45 = vadd.f32 %v2244_v33, %v2214_v63  ;;  %v1926_v41 = vmul.f32 %v3739_v15, %v3739_v15 }
 0x2a6   : > { %v1953_v39 = vadd.f32 %v1952_v54, %v1922_v4  ;;  %v1884_v34 = vadd.f32 %v1883_v29, %v3725_v7  ;;  %v2177_v47 = vadd.f32 %v2176_v38, %v3811_v42  ;;  %v2217_v7 = vmul.f32 %v3819_v51, %v3819_v51 }
 0x2a7   : > { %v2246_v49 = vadd.f32 %v2245_v45, %v2215_v2  ;;  %v1927_v42 = vmul.f32 %v3741_v16, %v3741_v16  ;;  %v2223_v29 = vmul.f32 %v3849_v24, %v3849_v24 }
 0x2a8   : > { %v1885_v40 = vadd.f32 %v1884_v34, %v3727_v8  ;;  %v1954_v57 = vadd.f32 %v1953_v39, %v1923_v44  ;;  %v2178_v59 = vadd.f32 %v2177_v47, %v3819_v51  ;;  %v2218_v8 = vmul.f32 %v3821_v58, %v3821_v58 }
 0x2a9   : > { %v2247_v60 = vadd.f32 %v2246_v49, %v2216_v6  ;;  %v1928_v51 = vmul.f32 %v3743_v17, %v3743_v17 }
 0x2aa   : > { %v1955_v36 = vadd.f32 %v1954_v57, %v1924_v31  ;;  %v1886_v50 = vadd.f32 %v1885_v40, %v3735_v11  ;;  %v2179_v1 = vadd.f32 %v2178_v59, %v3821_v58  ;;  %v2219_v11 = vmul.f32 %v3828_v52, %v3828_v52 }
 0x2ab   : > { %v2248_v19 = vadd.f32 %v2247_v60, %v2217_v7  ;;  %v1929_v58 = vmul.f32 %v3751_v20, %v3751_v20 }
 0x2ac   : > { %v1887_v0 = vadd.f32 %v1886_v50, %v3739_v15  ;;  %v1956_v61 = vadd.f32 %v1955_v36, %v1925_v32  ;;  %v2180_v9 = vadd.f32 %v2179_v1, %v3828_v52  ;;  %v2220_v15 = vmul.f32 %v3830_v3, %v3830_v3 }
 0x2ad   : > { %v2249_v10 = vadd.f32 %v2248_v19, %v2218_v8  ;;  %v1930_v52 = vmul.f32 %v3756_v25, %v3756_v25 }
 0x2ae   : > { %v1957_v55 = vadd.f32 %v1956_v61, %v1926_v41  ;;  %v1888_v5 = vadd.f32 %v1887_v0, %v3741_v16  ;;  %v2181_v21 = vadd.f32 %v2180_v9, %v3830_v3  ;;  %v2221_v16 = vmul.f32 %v3835_v12, %v3835_v12 }
 0x2af   : > { %v2250_v62 = vadd.f32 %v2249_v10, %v2219_v11  ;;  %v2230_v61 = vmul.f32 %v3883_v56, %v3883_v56 }
 0x2b0   : > { %v1889_v43 = vadd.f32 %v1888_v5, %v3743_v17  ;;  %v1958_v14 = vadd.f32 %v1957_v55, %v1927_v42  ;;  %v2182_v26 = vadd.f32 %v2181_v21, %v3835_v12  ;;  %v2222_v17 = vmul.f32 %v3837_v13, %v3837_v13 }
 0x2b1   : > { %v2251_v4 = vadd.f32 %v2250_v62, %v2220_v15  ;;  %v2224_v12 = vmul.f32 %v3851_v27, %v3851_v27 }
 0x2b2   : > { %v1959_v22 = vadd.f32 %v1958_v14, %v1928_v51  ;;  %v1890_v53 = vadd.f32 %v1889_v43, %v3751_v20  ;;  %v2183_v3 = vadd.f32 %v2182_v26, %v3837_v13  ;;  %v2225_v13 = vmul.f32 %v3862_v35, %v3862_v35 }
 0x2b3   : > { %v2252_v63 = vadd.f32 %v2251_v4, %v2221_v16 }
 0x2b4   : > { %v1891_v23 = vadd.f32 %v1890_v53, %v3756_v25  ;;  %v1960_v28 = vadd.f32 %v1959_v22, %v1929_v58  ;;  %v2184_v44 = vadd.f32 %v2183_v3, %v3849_v24  ;;  %v2226_v24 = vmul.f32 %v3864_v37, %v3864_v37 }
 0x2b5   : > { %v2253_v30 = vadd.f32 %v2252_v63, %v2222_v17 }
 0x2b6   : > { %v1892_v54 = vrot.slane %v1891_v23, 4  ;;  %v1961_v20 = vadd.f32 %v1960_v28, %v1930_v52  ;;  %v2185_v39 = vadd.f32 %v2184_v44, %v3851_v27  ;;  %v2227_v27 = vmul.f32 %v3873_v46, %v3873_v46 }
 0x2b7   : > { %v2254_v25 = vadd.f32 %v2253_v30, %v2223_v29 }
 0x2b8   : > { %v1893_v33 = vadd.f32 %v1892_v54, %v1891_v23  ;;  %v1962_v2 = vrot.slane %v1961_v20, 4  ;;  %v2186_v38 = vadd.f32 %v2185_v39, %v3862_v35  ;;  %v2228_v35 = vmul.f32 %v3875_v18, %v3875_v18 }
 0x2b9   : > { %v2255_v45 = vadd.f32 %v2254_v25, %v2224_v12 }
 0x2ba   : > { %v1894_v34 = vrot.slane %v1893_v33, 2  ;;  %v1963_v31 = vadd.f32 %v1962_v2, %v1961_v20  ;;  %v2187_v57 = vadd.f32 %v2186_v38, %v3864_v37  ;;  %v2229_v37 = vmul.f32 %v3881_v48, %v3881_v48 }
 0x2bb   : > { %v2256_v32 = vadd.f32 %v2255_v45, %v2225_v13 }
 0x2bc   : > { %v1895_v6 = vadd.f32 %v1894_v34, %v1893_v33  ;;  %v1964_v40 = vrot.slane %v1963_v31, 2  ;;  %v2188_v7 = vadd.f32 %v2187_v57, %v3873_v46 }
 0x2bd   : > { %v2257_v36 = vadd.f32 %v2256_v32, %v2226_v24 }
 0x2be   : > { %v1896_v47 = vrot.slane %v1895_v6, 1  ;;  %v1965_v49 = vadd.f32 %v1964_v40, %v1963_v31  ;;  %v2189_v59 = vadd.f32 %v2188_v7, %v3875_v18 }
 0x2bf   : > { %v2258_v60 = vadd.f32 %v2257_v36, %v2227_v27 }
 0x2c0   : > { %v1897_v50 = vadd.f32 %v1896_v47, %v1895_v6  ;;  %v1966_v41 = vrot.slane %v1965_v49, 1  ;;  %v2190_v46 = vadd.f32 %v2189_v59, %v3881_v48 }
 0x2c1   : > { %v2259_v0 = vadd.f32 %v2258_v60, %v2228_v35 }
 0x2c2   : > { %1898 = vst [vmem:[%s664_s16] sm:$0x1] %v1897_v50  ;;  %v1967_v8 = vadd.f32 %v1966_v41, %v1965_v49  ;;  %v2191_v18 = vadd.f32 %v2190_v46, %v3883_v56 }
 0x2c3   : > { %v2260_v42 = vadd.f32 %v2259_v0, %v2229_v37 }
 0x2c4   : > { %1968 = vst [vmem:[%s670_s22] sm:$0x1] %v1967_v8  ;;  %v2192_v1 = vrot.slane %v2191_v18, 4 }
 0x2c5   : > { %v2261_v19 = vadd.f32 %v2260_v42, %v2230_v61 }
 0x2c6   : > { %v2193_v11 = vadd.f32 %v2192_v1, %v2191_v18 }
 0x2c7   : > { %v2262_v55 = vrot.slane %v2261_v19, 4 }
 0x2c8   : > { %v2194_v5 = vrot.slane %v2193_v11, 2 }
 0x2c9   : > { %v2263_v48 = vadd.f32 %v2262_v55, %v2261_v19 }
 0x2ca   : > { %v2195_v51 = vadd.f32 %v2194_v5, %v2193_v11 }
 0x2cb   : > { %v2264_v9 = vrot.slane %v2263_v48, 2 }
 0x2cc   : > { %v2196_v10 = vrot.slane %v2195_v51, 1 }
 0x2cd   : > { %v2265_v15 = vadd.f32 %v2264_v9, %v2263_v48 }
 0x2ce   : > { %v2197_v43 = vadd.f32 %v2196_v10, %v2195_v51 }
 0x2cf   : > { %v2266_v14 = vrot.slane %v2265_v15, 1 }
 0x2d0   : > { %2198 = vst [vmem:[%s685_s10] sm:$0x1] %v2197_v43 }
 0x2d1   : > { %v2267_v56 = vadd.f32 %v2266_v14, %v2265_v15 }
 0x2d3   : > { %2268 = vst [vmem:[%s691_s3] sm:$0x1] %v2267_v56 }
 0x2d4 PF: > { %s19_s11 = sadd.s32 1, %s3314_s11   ;;  %s4049_s29 = sld [smem:[#allocation5_spill]] }
 0x2d5   : > { %p16_p4 = scmp.ge.s32.totalorder %s19_s11, 20   ;;  %s4050_s30 = sld [smem:[#allocation6_spill]] }
 0x2d6   : > { %s4051_s9 = sld [smem:[#allocation7_spill]]  ;;  %s4052_s10 = sld [smem:[#allocation8_spill]] }
 0x2d7   : > { %s4053_s27 = smov %s3294_s28  ;;  %s4054_s28 = smov %s3413_s18 }
 0x2d8   :  { %18 = sbr.rel (!%p16_p4) target bundleno = 8 (0x8), region = 186 }

// kernel: simple_block_forward.7
= control target key start
LH: loop header
LB: loop body
LE: loop exit
PB: predicated region body
PF: predicated region fallthrough
CT: control target
= control target key end

     0   :  { %s1158_s21 = smov 0   ;;  %s1160_s22 = smov 0   ;;  %s1416_s0 = inlined_call_operand.vmem [shape: bf16[512,128], index: 0, kind: input, shape index: {}]   ;;  %s1417_s1 = inlined_call_operand.vmem [shape: bf16[512,128], index: 1, kind: input, shape index: {}]   ;;  %s1418_s2 = inlined_call_operand.vmem [shape: f32[1,128], index: 2, kind: input, shape index: {}]   ;;  %s1419_s3 = inlined_call_operand.vmem [shape: f32[1,128], index: 3, kind: input, shape index: {}]   ;;  %s1420_s4 = inlined_call_operand.vmem [shape: f32[1,128], index: 4, kind: input, shape index: {}]   ;;  %s1421_s5 = inlined_call_operand.vmem [shape: f32[1,128], index: 5, kind: input, shape index: {}]   ;;  %s1422_s6 = inlined_call_operand.vmem [shape: f32[512,128], index: 6, kind: output, shape index: {}]  }
   0x1   :  { %s1162_s23 = smov 0  }
   0x2 LB: > { %s28_s24 = sadd.s32 1, %s1117_s22  ;;  %p904_p0 = scmp.ge.s32.totalorder %s1121_s23, 1  ;;  %s1121_s23 = sphi %s1162_s23, %s16_s23   ;;  %s1117_s22 = sphi %s1160_s22, %s1424_s22   ;;  %s1113_s21 = sphi %s1158_s21, %s1423_s21  }
   0x3   : > { %p30_p1 = scmp.ge.s32.totalorder %s28_s24, 2  ;;  %p280_p2 = scmp.lt.s32.totalorder %s1121_s23, 3 }
   0x5   : > { %s1426_s24 = smov (%p30_p1, %s28_s24), 0  ;;  %p281_p3 = pnand %p904_p0, %p280_p2 }
   0x6   : > { %s905_s25 = sshll.u32 (!%p281_p3), %s1113_s21, 5  ;;  %v1192_v0 = vld [vmem:[%s1418_s2] ss:$0 sm:$0xff] (!%p281_p3) }
   0x7   : > { %284 = sbr.rel (%p281_p3) target bundleno = 89 (0x59), region = 44  ;;  %p337_p4 = scmp.lt.s32.totalorder (!%p281_p3), %s905_s25, 63  ;;  %v1197_v1 = vld [vmem:[%s1420_s4] ss:$0 sm:$0xff] (!%p281_p3) }
   0x8   : > { %v1206_v10 = vld [vmem:[%s1419_s3] ss:$0 sm:$0xff] (!%p281_p3) }
   0x9   : > { %v1211_v11 = vld [vmem:[%s1421_s5] ss:$0 sm:$0xff] (!%p281_p3) }
   0xe   : > { %s1428_s25 = smov (!%p337_p4, %s905_s25), 63 }
   0xf   : > { %s906_s26 = sshll.u32 %s1428_s25, 2  ;;  %s910_s17 = sshll.u32 %s1428_s25, 3 }
  0x10   : > { %s1182_s29 = scalar_lea.vmem %s1416_s0, %s906_s26  ;;  %s1187_s8 = scalar_lea.vmem %s1417_s1, %s906_s26 }
  0x11   : > { %v918_v2 = vld [vmem:[%s1182_s29] sm:$0xff]   ;;  %v1045_v4 = vld [vmem:[%s1182_s29 + $0x8] sm:$0xff]   ;;  %v1046_v24 = vld [vmem:[%s1182_s29 + $0x10] sm:$0xff]   ;;  %s1235_s20 = scalar_lea.vmem %s1422_s6, %s910_s17 }
  0x12   : > { %v982_v3 = vld [vmem:[%s1187_s8] sm:$0xff]   ;;  %v919_v5 = vunpack.c.l.bf16 %v918_v2  ;;  %v920_v7 = vunpack.c.h.bf16 %v918_v2  ;;  %v1060_v9 = vld [vmem:[%s1187_s8 + $0x8] sm:$0xff]   ;;  %v923_v12 = vunpack.c.l.bf16 %v1045_v4  ;;  %v924_v14 = vunpack.c.h.bf16 %v1045_v4  ;;  %v1061_v25 = vld [vmem:[%s1187_s8 + $0x10] sm:$0xff]  }
  0x13   : > { %v983_v6 = vunpack.c.l.bf16 %v982_v3  ;;  %v984_v8 = vunpack.c.h.bf16 %v982_v3  ;;  %v987_v13 = vunpack.c.l.bf16 %v1060_v9  ;;  %v988_v15 = vunpack.c.h.bf16 %v1060_v9  ;;  %v1047_v42 = vld [vmem:[%s1182_s29 + $0x18] sm:$0xff]   ;;  %v1048_v52 = vld [vmem:[%s1182_s29 + $0x20] sm:$0xff]  }
  0x14   : > { %v446_v16 = vmul.f32 %v919_v5, %v1192_v0  ;;  %v447_v18 = vmul.f32 %v920_v7, %v1192_v0  ;;  %v448_v20 = vmul.f32 %v923_v12, %v1192_v0  ;;  %v449_v22 = vmul.f32 %v924_v14, %v1192_v0  ;;  %v1062_v43 = vld [vmem:[%s1187_s8 + $0x18] sm:$0xff]   ;;  %v1063_v57 = vld [vmem:[%s1187_s8 + $0x20] sm:$0xff]   ;;  %v1049_v14 = vld [vmem:[%s1182_s29 + $0x28] sm:$0xff]  }
  0x15   : > { %v588_v17 = vmul.f32 %v983_v6, %v1197_v1  ;;  %v589_v19 = vmul.f32 %v984_v8, %v1197_v1  ;;  %v590_v21 = vmul.f32 %v987_v13, %v1197_v1  ;;  %v591_v23 = vmul.f32 %v988_v15, %v1197_v1  ;;  %v1064_v15 = vld [vmem:[%s1187_s8 + $0x28] sm:$0xff]  }
  0x16   : > { %v485_v26 = vadd.f32 %v1206_v10, %v446_v16  ;;  %v486_v28 = vadd.f32 %v1206_v10, %v447_v18  ;;  %v487_v30 = vadd.f32 %v1206_v10, %v448_v20  ;;  %v488_v32 = vadd.f32 %v1206_v10, %v449_v22 }
  0x17   : > { %v627_v27 = vadd.f32 %v1211_v11, %v588_v17  ;;  %v628_v29 = vadd.f32 %v1211_v11, %v589_v19  ;;  %v629_v31 = vadd.f32 %v1211_v11, %v590_v21  ;;  %v630_v33 = vadd.f32 %v1211_v11, %v591_v23 }
  0x18   : > { %v927_v36 = vunpack.c.l.bf16 %v1046_v24  ;;  %v991_v37 = vunpack.c.l.bf16 %v1061_v25  ;;  %v928_v40 = vunpack.c.h.bf16 %v1046_v24  ;;  %v992_v41 = vunpack.c.h.bf16 %v1061_v25 }
  0x19   : > { %v659_v34 = vadd.f32 %v627_v27, %v485_v26  ;;  %v660_v35 = vadd.f32 %v628_v29, %v486_v28  ;;  %v661_v38 = vadd.f32 %v629_v31, %v487_v30  ;;  %v662_v39 = vadd.f32 %v630_v33, %v488_v32  ;;  %v1050_v32 = vld [vmem:[%s1182_s29 + $0x30] sm:$0xff]  }
  0x1a   : > { %v450_v46 = vmul.f32 %v927_v36, %v1192_v0  ;;  %v592_v47 = vmul.f32 %v991_v37, %v1197_v1  ;;  %v451_v50 = vmul.f32 %v928_v40, %v1192_v0  ;;  %v593_v51 = vmul.f32 %v992_v41, %v1197_v1  ;;  %v1065_v37 = vld [vmem:[%s1187_s8 + $0x30] sm:$0xff]  }
  0x1b   : > { %v691_v44 = vmax.f32 %v659_v34, 0.0  ;;  %v692_v45 = vmax.f32 %v660_v35, 0.0  ;;  %v693_v48 = vmax.f32 %v661_v38, 0.0  ;;  %v694_v49 = vmax.f32 %v662_v39, 0.0 }
  0x1c   : > { %v489_v53 = vadd.f32 %v1206_v10, %v450_v46  ;;  %v631_v54 = vadd.f32 %v1211_v11, %v592_v47  ;;  %v931_v55 = vunpack.c.l.bf16 %v1047_v42  ;;  %v995_v56 = vunpack.c.l.bf16 %v1062_v43  ;;  %v1051_v46 = vld [vmem:[%s1182_s29 + $0x38] sm:$0xff]  }
  0x1d   : > { %723 = vst [vmem:[%s1235_s20] sm:$0xff] %v691_v44  ;;  %724 = vst [vmem:[%s1235_s20 + $0x8] sm:$0xff] %v692_v45  ;;  %v490_v58 = vadd.f32 %v1206_v10, %v451_v50  ;;  %v632_v59 = vadd.f32 %v1211_v11, %v593_v51  ;;  %v932_v60 = vunpack.c.h.bf16 %v1047_v42  ;;  %v996_v61 = vunpack.c.h.bf16 %v1062_v43 }
  0x1e   : > { %725 = vst [vmem:[%s1235_s20 + $0x10] sm:$0xff] %v693_v48  ;;  %726 = vst [vmem:[%s1235_s20 + $0x18] sm:$0xff] %v694_v49  ;;  %v663_v62 = vadd.f32 %v631_v54, %v489_v53  ;;  %v452_v63 = vmul.f32 %v931_v55, %v1192_v0  ;;  %v594_v2 = vmul.f32 %v995_v56, %v1197_v1  ;;  %v935_v3 = vunpack.c.l.bf16 %v1048_v52  ;;  %v1066_v55 = vld [vmem:[%s1187_s8 + $0x38] sm:$0xff]  }
  0x1f   : > { %v664_v4 = vadd.f32 %v632_v59, %v490_v58  ;;  %v453_v5 = vmul.f32 %v932_v60, %v1192_v0  ;;  %v595_v6 = vmul.f32 %v996_v61, %v1197_v1  ;;  %v999_v7 = vunpack.c.l.bf16 %v1063_v57 }
  0x20   : > { %v695_v8 = vmax.f32 %v663_v62, 0.0  ;;  %v491_v9 = vadd.f32 %v1206_v10, %v452_v63  ;;  %v633_v12 = vadd.f32 %v1211_v11, %v594_v2  ;;  %v454_v13 = vmul.f32 %v935_v3, %v1192_v0 }
  0x21   : > { %v696_v16 = vmax.f32 %v664_v4, 0.0  ;;  %v492_v17 = vadd.f32 %v1206_v10, %v453_v5  ;;  %v634_v18 = vadd.f32 %v1211_v11, %v595_v6  ;;  %v596_v19 = vmul.f32 %v999_v7, %v1197_v1  ;;  %v1052_v6 = vld [vmem:[%s1182_s29 + $0x40] sm:$0xff]  }
  0x22   : > { %727 = vst [vmem:[%s1235_s20 + $0x20] sm:$0xff] %v695_v8  ;;  %v665_v20 = vadd.f32 %v633_v12, %v491_v9  ;;  %v493_v21 = vadd.f32 %v1206_v10, %v454_v13  ;;  %v936_v22 = vunpack.c.h.bf16 %v1048_v52  ;;  %v1000_v23 = vunpack.c.h.bf16 %v1063_v57  ;;  %v1067_v13 = vld [vmem:[%s1187_s8 + $0x40] sm:$0xff]  }
  0x23   : > { %728 = vst [vmem:[%s1235_s20 + $0x28] sm:$0xff] %v696_v16  ;;  %v666_v24 = vadd.f32 %v634_v18, %v492_v17  ;;  %v635_v25 = vadd.f32 %v1211_v11, %v596_v19  ;;  %v939_v26 = vunpack.c.l.bf16 %v1049_v14  ;;  %v1003_v27 = vunpack.c.l.bf16 %v1064_v15 }
  0x24   : > { %v697_v28 = vmax.f32 %v665_v20, 0.0  ;;  %v455_v29 = vmul.f32 %v936_v22, %v1192_v0  ;;  %v597_v30 = vmul.f32 %v1000_v23, %v1197_v1  ;;  %v940_v31 = vunpack.c.h.bf16 %v1049_v14 }
  0x25   : > { %v698_v33 = vmax.f32 %v666_v24, 0.0  ;;  %v667_v34 = vadd.f32 %v635_v25, %v493_v21  ;;  %v456_v35 = vmul.f32 %v939_v26, %v1192_v0  ;;  %v598_v36 = vmul.f32 %v1003_v27, %v1197_v1  ;;  %v1053_v26 = vld [vmem:[%s1182_s29 + $0x48] sm:$0xff]  }
  0x26   : > { %729 = vst [vmem:[%s1235_s20 + $0x30] sm:$0xff] %v697_v28  ;;  %v494_v38 = vadd.f32 %v1206_v10, %v455_v29  ;;  %v636_v39 = vadd.f32 %v1211_v11, %v597_v30  ;;  %v457_v40 = vmul.f32 %v940_v31, %v1192_v0  ;;  %v1004_v41 = vunpack.c.h.bf16 %v1064_v15  ;;  %v1068_v27 = vld [vmem:[%s1187_s8 + $0x48] sm:$0xff]  }
  0x27   : > { %730 = vst [vmem:[%s1235_s20 + $0x38] sm:$0xff] %v698_v33  ;;  %v699_v42 = vmax.f32 %v667_v34, 0.0  ;;  %v495_v43 = vadd.f32 %v1206_v10, %v456_v35  ;;  %v637_v44 = vadd.f32 %v1211_v11, %v598_v36  ;;  %v943_v45 = vunpack.c.l.bf16 %v1050_v32 }
  0x28   : > { %v668_v47 = vadd.f32 %v636_v39, %v494_v38  ;;  %v496_v48 = vadd.f32 %v1206_v10, %v457_v40  ;;  %v599_v49 = vmul.f32 %v1004_v41, %v1197_v1  ;;  %v1007_v50 = vunpack.c.l.bf16 %v1065_v37  ;;  %v1054_v40 = vld [vmem:[%s1182_s29 + $0x50] sm:$0xff]  }
  0x29   : > { %731 = vst [vmem:[%s1235_s20 + $0x40] sm:$0xff] %v699_v42  ;;  %v669_v51 = vadd.f32 %v637_v44, %v495_v43  ;;  %v458_v52 = vmul.f32 %v943_v45, %v1192_v0  ;;  %v944_v53 = vunpack.c.h.bf16 %v1050_v32  ;;  %v1008_v54 = vunpack.c.h.bf16 %v1065_v37  ;;  %v1069_v45 = vld [vmem:[%s1187_s8 + $0x50] sm:$0xff]  }
  0x2a   : > { %v700_v56 = vmax.f32 %v668_v47, 0.0  ;;  %v638_v57 = vadd.f32 %v1211_v11, %v599_v49  ;;  %v600_v58 = vmul.f32 %v1007_v50, %v1197_v1  ;;  %v947_v59 = vunpack.c.l.bf16 %v1051_v46 }
  0x2b   : > { %v701_v60 = vmax.f32 %v669_v51, 0.0  ;;  %v497_v61 = vadd.f32 %v1206_v10, %v458_v52  ;;  %v459_v62 = vmul.f32 %v944_v53, %v1192_v0  ;;  %v601_v63 = vmul.f32 %v1008_v54, %v1197_v1 }
  0x2c   : > { %732 = vst [vmem:[%s1235_s20 + $0x48] sm:$0xff] %v700_v56  ;;  %v670_v2 = vadd.f32 %v638_v57, %v496_v48  ;;  %v639_v3 = vadd.f32 %v1211_v11, %v600_v58  ;;  %v460_v4 = vmul.f32 %v947_v59, %v1192_v0  ;;  %v1011_v5 = vunpack.c.l.bf16 %v1066_v55 }
  0x2d   : > { %733 = vst [vmem:[%s1235_s20 + $0x50] sm:$0xff] %v701_v60  ;;  %v498_v7 = vadd.f32 %v1206_v10, %v459_v62  ;;  %v640_v8 = vadd.f32 %v1211_v11, %v601_v63  ;;  %v948_v9 = vunpack.c.h.bf16 %v1051_v46  ;;  %v1012_v12 = vunpack.c.h.bf16 %v1066_v55  ;;  %v1055_v62 = vld [vmem:[%s1182_s29 + $0x58] sm:$0xff]  }
  0x2e   : > { %v702_v14 = vmax.f32 %v670_v2, 0.0  ;;  %v671_v15 = vadd.f32 %v639_v3, %v497_v61  ;;  %v499_v16 = vadd.f32 %v1206_v10, %v460_v4  ;;  %v602_v17 = vmul.f32 %v1011_v5, %v1197_v1  ;;  %v1070_v5 = vld [vmem:[%s1187_s8 + $0x58] sm:$0xff]  }
  0x2f   : > { %v672_v18 = vadd.f32 %v640_v8, %v498_v7  ;;  %v461_v19 = vmul.f32 %v948_v9, %v1192_v0  ;;  %v603_v20 = vmul.f32 %v1012_v12, %v1197_v1  ;;  %v951_v21 = vunpack.c.l.bf16 %v1052_v6 }
  0x30   : > { %734 = vst [vmem:[%s1235_s20 + $0x58] sm:$0xff] %v702_v14  ;;  %v703_v22 = vmax.f32 %v671_v15, 0.0  ;;  %v641_v23 = vadd.f32 %v1211_v11, %v602_v17  ;;  %v1015_v24 = vunpack.c.l.bf16 %v1067_v13  ;;  %v952_v25 = vunpack.c.h.bf16 %v1052_v6 }
  0x31   : > { %v704_v28 = vmax.f32 %v672_v18, 0.0  ;;  %v500_v29 = vadd.f32 %v1206_v10, %v461_v19  ;;  %v642_v30 = vadd.f32 %v1211_v11, %v603_v20  ;;  %v462_v31 = vmul.f32 %v951_v21, %v1192_v0  ;;  %v1056_v20 = vld [vmem:[%s1182_s29 + $0x60] sm:$0xff]  }
  0x32   : > { %735 = vst [vmem:[%s1235_s20 + $0x60] sm:$0xff] %v703_v22  ;;  %v673_v32 = vadd.f32 %v641_v23, %v499_v16  ;;  %v604_v33 = vmul.f32 %v1015_v24, %v1197_v1  ;;  %v463_v34 = vmul.f32 %v952_v25, %v1192_v0  ;;  %v1016_v35 = vunpack.c.h.bf16 %v1067_v13  ;;  %v1071_v25 = vld [vmem:[%s1187_s8 + $0x60] sm:$0xff]  }
  0x33   : > { %736 = vst [vmem:[%s1235_s20 + $0x68] sm:$0xff] %v704_v28  ;;  %v674_v36 = vadd.f32 %v642_v30, %v500_v29  ;;  %v501_v37 = vadd.f32 %v1206_v10, %v462_v31  ;;  %v955_v38 = vunpack.c.l.bf16 %v1053_v26  ;;  %v1019_v39 = vunpack.c.l.bf16 %v1068_v27 }
  0x34   : > { %v705_v41 = vmax.f32 %v673_v32, 0.0  ;;  %v643_v42 = vadd.f32 %v1211_v11, %v604_v33  ;;  %v502_v43 = vadd.f32 %v1206_v10, %v463_v34  ;;  %v605_v44 = vmul.f32 %v1016_v35, %v1197_v1  ;;  %v1057_v34 = vld [vmem:[%s1182_s29 + $0x68] sm:$0xff]  }
  0x35   : > { %v706_v46 = vmax.f32 %v674_v36, 0.0  ;;  %v464_v47 = vmul.f32 %v955_v38, %v1192_v0  ;;  %v606_v48 = vmul.f32 %v1019_v39, %v1197_v1  ;;  %v956_v49 = vunpack.c.h.bf16 %v1053_v26 }
  0x36   : > { %737 = vst [vmem:[%s1235_s20 + $0x70] sm:$0xff] %v705_v41  ;;  %v675_v50 = vadd.f32 %v643_v42, %v501_v37  ;;  %v644_v51 = vadd.f32 %v1211_v11, %v605_v44  ;;  %v1020_v52 = vunpack.c.h.bf16 %v1068_v27  ;;  %v959_v53 = vunpack.c.l.bf16 %v1054_v40 }
  0x37   : > { %738 = vst [vmem:[%s1235_s20 + $0x78] sm:$0xff] %v706_v46  ;;  %v503_v54 = vadd.f32 %v1206_v10, %v464_v47  ;;  %v645_v55 = vadd.f32 %v1211_v11, %v606_v48  ;;  %v465_v56 = vmul.f32 %v956_v49, %v1192_v0  ;;  %v1023_v57 = vunpack.c.l.bf16 %v1069_v45 }
  0x38   : > { %v707_v58 = vmax.f32 %v675_v50, 0.0  ;;  %v676_v59 = vadd.f32 %v644_v51, %v502_v43  ;;  %v607_v60 = vmul.f32 %v1020_v52, %v1197_v1  ;;  %v466_v61 = vmul.f32 %v959_v53, %v1192_v0  ;;  %v1072_v43 = vld [vmem:[%s1187_s8 + $0x68] sm:$0xff]  }
  0x39   : > { %v677_v63 = vadd.f32 %v645_v55, %v503_v54  ;;  %v504_v2 = vadd.f32 %v1206_v10, %v465_v56  ;;  %v608_v3 = vmul.f32 %v1023_v57, %v1197_v1  ;;  %v960_v4 = vunpack.c.h.bf16 %v1054_v40  ;;  %v1058_v56 = vld [vmem:[%s1182_s29 + $0x70] sm:$0xff]  }
  0x3a   : > { %739 = vst [vmem:[%s1235_s20 + $0x80] sm:$0xff] %v707_v58  ;;  %v708_v6 = vmax.f32 %v676_v59, 0.0  ;;  %v646_v7 = vadd.f32 %v1211_v11, %v607_v60  ;;  %v505_v8 = vadd.f32 %v1206_v10, %v466_v61  ;;  %v1024_v9 = vunpack.c.h.bf16 %v1069_v45  ;;  %v1073_v57 = vld [vmem:[%s1187_s8 + $0x70] sm:$0xff]  }
  0x3b   : > { %v709_v12 = vmax.f32 %v677_v63, 0.0  ;;  %v647_v13 = vadd.f32 %v1211_v11, %v608_v3  ;;  %v467_v14 = vmul.f32 %v960_v4, %v1192_v0  ;;  %v963_v15 = vunpack.c.l.bf16 %v1055_v62 }
  0x3c   : > { %740 = vst [vmem:[%s1235_s20 + $0x88] sm:$0xff] %v708_v6  ;;  %v678_v16 = vadd.f32 %v646_v7, %v504_v2  ;;  %v609_v17 = vmul.f32 %v1024_v9, %v1197_v1  ;;  %v1027_v18 = vunpack.c.l.bf16 %v1070_v5  ;;  %v964_v19 = vunpack.c.h.bf16 %v1055_v62 }
  0x3d   : > { %741 = vst [vmem:[%s1235_s20 + $0x90] sm:$0xff] %v709_v12  ;;  %v679_v21 = vadd.f32 %v647_v13, %v505_v8  ;;  %v506_v22 = vadd.f32 %v1206_v10, %v467_v14  ;;  %v468_v23 = vmul.f32 %v963_v15, %v1192_v0  ;;  %v1028_v24 = vunpack.c.h.bf16 %v1070_v5  ;;  %v1059_v14 = vld [vmem:[%s1182_s29 + $0x78] sm:$0xff]  }
  0x3e   : > { %v710_v26 = vmax.f32 %v678_v16, 0.0  ;;  %v648_v27 = vadd.f32 %v1211_v11, %v609_v17  ;;  %v610_v28 = vmul.f32 %v1027_v18, %v1197_v1  ;;  %v469_v29 = vmul.f32 %v964_v19, %v1192_v0  ;;  %v1074_v15 = vld [vmem:[%s1187_s8 + $0x78] sm:$0xff]  }
  0x3f   : > { %v711_v30 = vmax.f32 %v679_v21, 0.0  ;;  %v507_v31 = vadd.f32 %v1206_v10, %v468_v23  ;;  %v611_v32 = vmul.f32 %v1028_v24, %v1197_v1  ;;  %v967_v33 = vunpack.c.l.bf16 %v1056_v20 }
  0x40   : > { %742 = vst [vmem:[%s1235_s20 + $0x98] sm:$0xff] %v710_v26  ;;  %v680_v35 = vadd.f32 %v648_v27, %v506_v22  ;;  %v649_v36 = vadd.f32 %v1211_v11, %v610_v28  ;;  %v508_v37 = vadd.f32 %v1206_v10, %v469_v29  ;;  %v1031_v38 = vunpack.c.l.bf16 %v1071_v25 }
  0x41   : > { %743 = vst [vmem:[%s1235_s20 + $0xa0] sm:$0xff] %v711_v30  ;;  %v650_v39 = vadd.f32 %v1211_v11, %v611_v32  ;;  %v470_v40 = vmul.f32 %v967_v33, %v1192_v0  ;;  %v968_v41 = vunpack.c.h.bf16 %v1056_v20  ;;  %v1032_v42 = vunpack.c.h.bf16 %v1071_v25 }
  0x42   : > { %v712_v44 = vmax.f32 %v680_v35, 0.0  ;;  %v681_v45 = vadd.f32 %v649_v36, %v507_v31  ;;  %v612_v46 = vmul.f32 %v1031_v38, %v1197_v1  ;;  %v971_v47 = vunpack.c.l.bf16 %v1057_v34 }
  0x43   : > { %v682_v48 = vadd.f32 %v650_v39, %v508_v37  ;;  %v509_v49 = vadd.f32 %v1206_v10, %v470_v40  ;;  %v471_v50 = vmul.f32 %v968_v41, %v1192_v0  ;;  %v613_v51 = vmul.f32 %v1032_v42, %v1197_v1 }
  0x44   : > { %744 = vst [vmem:[%s1235_s20 + $0xa8] sm:$0xff] %v712_v44  ;;  %v713_v52 = vmax.f32 %v681_v45, 0.0  ;;  %v651_v53 = vadd.f32 %v1211_v11, %v612_v46  ;;  %v472_v54 = vmul.f32 %v971_v47, %v1192_v0  ;;  %v1035_v55 = vunpack.c.l.bf16 %v1072_v43 }
  0x45   : > { %v714_v58 = vmax.f32 %v682_v48, 0.0  ;;  %v510_v59 = vadd.f32 %v1206_v10, %v471_v50  ;;  %v652_v60 = vadd.f32 %v1211_v11, %v613_v51  ;;  %v972_v61 = vunpack.c.h.bf16 %v1057_v34 }
  0x46   : > { %745 = vst [vmem:[%s1235_s20 + $0xb0] sm:$0xff] %v713_v52  ;;  %v683_v62 = vadd.f32 %v651_v53, %v509_v49  ;;  %v511_v63 = vadd.f32 %v1206_v10, %v472_v54  ;;  %v614_v2 = vmul.f32 %v1035_v55, %v1197_v1  ;;  %v1036_v3 = vunpack.c.h.bf16 %v1072_v43 }
  0x47   : > { %746 = vst [vmem:[%s1235_s20 + $0xb8] sm:$0xff] %v714_v58  ;;  %v684_v4 = vadd.f32 %v652_v60, %v510_v59  ;;  %v473_v5 = vmul.f32 %v972_v61, %v1192_v0  ;;  %v975_v6 = vunpack.c.l.bf16 %v1058_v56  ;;  %v1039_v7 = vunpack.c.l.bf16 %v1073_v57 }
  0x48   : > { %v715_v8 = vmax.f32 %v683_v62, 0.0  ;;  %v653_v9 = vadd.f32 %v1211_v11, %v614_v2  ;;  %v615_v12 = vmul.f32 %v1036_v3, %v1197_v1  ;;  %v976_v13 = vunpack.c.h.bf16 %v1058_v56 }
  0x49   : > { %v716_v16 = vmax.f32 %v684_v4, 0.0  ;;  %v512_v17 = vadd.f32 %v1206_v10, %v473_v5  ;;  %v474_v18 = vmul.f32 %v975_v6, %v1192_v0  ;;  %v616_v19 = vmul.f32 %v1039_v7, %v1197_v1 }
  0x4a   : > { %747 = vst [vmem:[%s1235_s20 + $0xc0] sm:$0xff] %v715_v8  ;;  %v685_v20 = vadd.f32 %v653_v9, %v511_v63  ;;  %v654_v21 = vadd.f32 %v1211_v11, %v615_v12  ;;  %v475_v22 = vmul.f32 %v976_v13, %v1192_v0  ;;  %v1040_v23 = vunpack.c.h.bf16 %v1073_v57 }
  0x4b   : > { %748 = vst [vmem:[%s1235_s20 + $0xc8] sm:$0xff] %v716_v16  ;;  %v513_v24 = vadd.f32 %v1206_v10, %v474_v18  ;;  %v655_v25 = vadd.f32 %v1211_v11, %v616_v19  ;;  %v979_v26 = vunpack.c.l.bf16 %v1059_v14  ;;  %v1043_v27 = vunpack.c.l.bf16 %v1074_v15 }
  0x4c   : > { %v717_v28 = vmax.f32 %v685_v20, 0.0  ;;  %v686_v29 = vadd.f32 %v654_v21, %v512_v17  ;;  %v514_v30 = vadd.f32 %v1206_v10, %v475_v22  ;;  %v617_v31 = vmul.f32 %v1040_v23, %v1197_v1 }
  0x4d   : > { %v687_v32 = vadd.f32 %v655_v25, %v513_v24  ;;  %v476_v33 = vmul.f32 %v979_v26, %v1192_v0  ;;  %v618_v34 = vmul.f32 %v1043_v27, %v1197_v1  ;;  %v980_v35 = vunpack.c.h.bf16 %v1059_v14 }
  0x4e   : > { %749 = vst [vmem:[%s1235_s20 + $0xd0] sm:$0xff] %v717_v28  ;;  %v718_v36 = vmax.f32 %v686_v29, 0.0  ;;  %v656_v37 = vadd.f32 %v1211_v11, %v617_v31  ;;  %v1044_v38 = vunpack.c.h.bf16 %v1074_v15 }
  0x4f   : > { %v719_v39 = vmax.f32 %v687_v32, 0.0  ;;  %v515_v40 = vadd.f32 %v1206_v10, %v476_v33  ;;  %v657_v41 = vadd.f32 %v1211_v11, %v618_v34  ;;  %v477_v42 = vmul.f32 %v980_v35, %v1192_v0 }
  0x50   : > { %750 = vst [vmem:[%s1235_s20 + $0xd8] sm:$0xff] %v718_v36  ;;  %v688_v43 = vadd.f32 %v656_v37, %v514_v30  ;;  %v619_v44 = vmul.f32 %v1044_v38, %v1197_v1 }
  0x51   : > { %751 = vst [vmem:[%s1235_s20 + $0xe0] sm:$0xff] %v719_v39  ;;  %v689_v45 = vadd.f32 %v657_v41, %v515_v40  ;;  %v516_v46 = vadd.f32 %v1206_v10, %v477_v42 }
  0x52   : > { %v720_v47 = vmax.f32 %v688_v43, 0.0  ;;  %v658_v48 = vadd.f32 %v1211_v11, %v619_v44 }
  0x53   : > { %v721_v49 = vmax.f32 %v689_v45, 0.0 }
  0x54   : > { %752 = vst [vmem:[%s1235_s20 + $0xe8] sm:$0xff] %v720_v47  ;;  %v690_v50 = vadd.f32 %v658_v48, %v516_v46 }
  0x55   : > { %753 = vst [vmem:[%s1235_s20 + $0xf0] sm:$0xff] %v721_v49 }
  0x56   : > { %v722_v51 = vmax.f32 %v690_v50, 0.0 }
  0x58   : > { %754 = vst [vmem:[%s1235_s20 + $0xf8] sm:$0xff] %v722_v51 }
  0x59 PF: > { %s16_s23 = sadd.s32 1, %s1121_s23   ;;  %s1423_s21 = smov %s1117_s22 }
  0x5a   : > { %p13_p5 = scmp.ge.s32.totalorder %s16_s23, 4   ;;  %s1424_s22 = smov %s1426_s24 }
  0x5c   :  { %15 = sbr.rel (!%p13_p5) target bundleno = 2 (0x2), region = 89 }

// kernel: simple_block_forward.6
= control target key start
LH: loop header
LB: loop body
LE: loop exit
PB: predicated region body
PF: predicated region fallthrough
CT: control target
= control target key end

     0   :  { %s1880_s15 = smov 0   ;;  %s1882_s16 = smov 0   ;;  %s2248_s0 = inlined_call_operand.vmem [shape: bf16[512,1152], index: 0, kind: input, shape index: {}]   ;;  %s2249_s1 = inlined_call_operand.vmem [shape: bf16[1152,128], index: 1, kind: input, shape index: {}]   ;;  %s2250_s2 = inlined_call_operand.vmem [shape: bf16[512,128], index: 2, kind: output, shape index: {0}]   ;;  %s2251_s3 = inlined_call_operand.vmem [shape: f32[2,1,128], index: 3, kind: output, shape index: {1}]   ;;  %s2252_s4 = inlined_call_operand.vmem [shape: f32[2,1,128], index: 4, kind: output, shape index: {2}]  }
   0x1   :  { %s1884_s17 = smov 0   ;;  %s1886_s18 = smov 0  }
   0x2   :  { %s1888_s19 = smov 0   ;;  %s1890_s20 = smov 0  }
   0x3   :  { %s1892_s21 = smov 0  }
   0x4 LB: > { %s27_s22 = sadd.s32 1, %s1844_s19  ;;  %s34_s23 = sadd.s32 1, %s1848_s20  ;;  %s1852_s21 = sphi %s1892_s21, %s15_s21   ;;  %s1848_s20 = sphi %s1890_s20, %s2258_s20   ;;  %s1844_s19 = sphi %s1888_s19, %s2257_s19   ;;  %s1840_s18 = sphi %s1886_s18, %s2256_s18   ;;  %s1836_s17 = sphi %s1884_s17, %s2255_s17   ;;  %s1832_s16 = sphi %s1882_s16, %s2254_s16   ;;  %s1828_s15 = sphi %s1880_s15, %s2253_s15  }
   0x5   : > { %p28_p0 = scmp.ge.s32.totalorder %s27_s22, 9  ;;  %p50_p1 = scmp.ne.s32.totalorder %s1832_s16, %s1828_s15 }
   0x6   : > { %p51_p2 = scmp.eq.s32.totalorder %s1852_s21, 0  ;;  %s43_s27 = sadd.s32 1, %s1832_s16 }
   0x7   : > { %s2260_s22 = smov (%p28_p0, %s27_s22), 0  ;;  %s2262_s23 = smov (!%p28_p0, %s34_s23), %s1848_s20 }
   0x8   : > { %p52_p3 = por %p51_p2, %p50_p1  ;;  %p36_p4 = scmp.ge.s32.totalorder %s2262_s23, 2 }
   0x9   : > { %s39_s24 = ssub.s32 %s1844_s19, %s2260_s22  ;;  %p1430_p6 = scmp.ge.s32.totalorder %s1852_s21, 18 }
   0xa   : > { %s2264_s23 = smov (%p36_p4, %s2262_s23), 0 }
   0xb   : > { %s38_s25 = ssub.s32 %s1848_s20, %s2264_s23  ;;  %188 = sbr.rel (%p1430_p6) target bundleno = 46 (0x2e), region = 16 }
   0xc   : > { %s40_s26 = sor.u32 %s39_s24, %s38_s25 }
   0xd   : > { %p41_p5 = scmp.eq.s32.totalorder %s40_s26, 0 }
   0xf   : > { %s1931_s28 = scalar_select %p41_p5, %s1832_s16, %s43_s27  }
  0x12   : > { %191 = sbr.rel (!%p52_p3) target bundleno = 46 (0x2e), region = 20  ;;  %s193_s29 = sand.u32 (%p52_p3), 1, %s1832_s16  }
  0x13   : > { %s1716_s30 = smul.u32 (%p52_p3), 288, %s1848_s20  ;;  %s1431_s5 = sshll.u32 (%p52_p3), %s193_s29, 7 }
  0x14   : > { %s1945_s11 = scalar_lea.vmem (%p52_p3), [#allocation3], %s1431_s5 }
  0x15   : > { %s198_s6 = sadd.s32 (%p52_p3), %s1844_s19, %s1716_s30 }
  0x16   : > { %s1434_s7 = sshll.u32 (%p52_p3), %s198_s6, 2 }
  0x17   : > { %s1940_s10 = scalar_lea.vmem (%p52_p3), %s2248_s0, %s1434_s7 }
  0x18   : > { %v216_v0 = vld [vmem:[%s1940_s10] sm:$0xf] (%p52_p3)  ;;  %v218_v1 = vld [vmem:[%s1940_s10 + $0x24] sm:$0xf] (%p52_p3)  ;;  %v220_v2 = vld [vmem:[%s1940_s10 + $0x48] sm:$0xf] (%p52_p3) }
  0x19   : > { %217 = vst [vmem:[%s1945_s11] sm:$0xf] %v216_v0  ;;  %219 = vst [vmem:[%s1945_s11 + $0x4] sm:$0xf] %v218_v1  ;;  %v222_v3 = vld [vmem:[%s1940_s10 + $0x6c] sm:$0xf] }
  0x1a   : > { %221 = vst [vmem:[%s1945_s11 + $0x8] sm:$0xf] %v220_v2  ;;  %v224_v4 = vld [vmem:[%s1940_s10 + $0x90] sm:$0xf]  ;;  %v226_v5 = vld [vmem:[%s1940_s10 + $0xb4] sm:$0xf] }
  0x1b   : > { %223 = vst [vmem:[%s1945_s11 + $0xc] sm:$0xf] %v222_v3  ;;  %225 = vst [vmem:[%s1945_s11 + $0x10] sm:$0xf] %v224_v4  ;;  %v228_v6 = vld [vmem:[%s1940_s10 + $0xd8] sm:$0xf] }
  0x1c   : > { %227 = vst [vmem:[%s1945_s11 + $0x14] sm:$0xf] %v226_v5  ;;  %v230_v7 = vld [vmem:[%s1940_s10 + $0xfc] sm:$0xf]  ;;  %v232_v8 = vld [vmem:[%s1940_s10 + $0x120] sm:$0xf] }
  0x1d   : > { %229 = vst [vmem:[%s1945_s11 + $0x18] sm:$0xf] %v228_v6  ;;  %231 = vst [vmem:[%s1945_s11 + $0x1c] sm:$0xf] %v230_v7  ;;  %v234_v9 = vld [vmem:[%s1940_s10 + $0x144] sm:$0xf] }
  0x1e   : > { %233 = vst [vmem:[%s1945_s11 + $0x20] sm:$0xf] %v232_v8  ;;  %v236_v10 = vld [vmem:[%s1940_s10 + $0x168] sm:$0xf]  ;;  %v238_v11 = vld [vmem:[%s1940_s10 + $0x18c] sm:$0xf] }
  0x1f   : > { %235 = vst [vmem:[%s1945_s11 + $0x24] sm:$0xf] %v234_v9  ;;  %237 = vst [vmem:[%s1945_s11 + $0x28] sm:$0xf] %v236_v10  ;;  %v240_v12 = vld [vmem:[%s1940_s10 + $0x1b0] sm:$0xf] }
  0x20   : > { %239 = vst [vmem:[%s1945_s11 + $0x2c] sm:$0xf] %v238_v11  ;;  %v242_v13 = vld [vmem:[%s1940_s10 + $0x1d4] sm:$0xf]  ;;  %v244_v14 = vld [vmem:[%s1940_s10 + $0x1f8] sm:$0xf] }
  0x21   : > { %241 = vst [vmem:[%s1945_s11 + $0x30] sm:$0xf] %v240_v12  ;;  %243 = vst [vmem:[%s1945_s11 + $0x34] sm:$0xf] %v242_v13  ;;  %v246_v15 = vld [vmem:[%s1940_s10 + $0x21c] sm:$0xf] }
  0x22   : > { %245 = vst [vmem:[%s1945_s11 + $0x38] sm:$0xf] %v244_v14  ;;  %v248_v16 = vld [vmem:[%s1940_s10 + $0x240] sm:$0xf]  ;;  %v250_v17 = vld [vmem:[%s1940_s10 + $0x264] sm:$0xf] }
  0x23   : > { %247 = vst [vmem:[%s1945_s11 + $0x3c] sm:$0xf] %v246_v15  ;;  %249 = vst [vmem:[%s1945_s11 + $0x40] sm:$0xf] %v248_v16  ;;  %v252_v18 = vld [vmem:[%s1940_s10 + $0x288] sm:$0xf] }
  0x24   : > { %251 = vst [vmem:[%s1945_s11 + $0x44] sm:$0xf] %v250_v17  ;;  %v254_v19 = vld [vmem:[%s1940_s10 + $0x2ac] sm:$0xf]  ;;  %v256_v20 = vld [vmem:[%s1940_s10 + $0x2d0] sm:$0xf] }
  0x25   : > { %253 = vst [vmem:[%s1945_s11 + $0x48] sm:$0xf] %v252_v18  ;;  %255 = vst [vmem:[%s1945_s11 + $0x4c] sm:$0xf] %v254_v19  ;;  %v258_v21 = vld [vmem:[%s1940_s10 + $0x2f4] sm:$0xf] }
  0x26   : > { %257 = vst [vmem:[%s1945_s11 + $0x50] sm:$0xf] %v256_v20  ;;  %v260_v22 = vld [vmem:[%s1940_s10 + $0x318] sm:$0xf]  ;;  %v262_v23 = vld [vmem:[%s1940_s10 + $0x33c] sm:$0xf] }
  0x27   : > { %259 = vst [vmem:[%s1945_s11 + $0x54] sm:$0xf] %v258_v21  ;;  %261 = vst [vmem:[%s1945_s11 + $0x58] sm:$0xf] %v260_v22  ;;  %v264_v24 = vld [vmem:[%s1940_s10 + $0x360] sm:$0xf] }
  0x28   : > { %263 = vst [vmem:[%s1945_s11 + $0x5c] sm:$0xf] %v262_v23  ;;  %v266_v25 = vld [vmem:[%s1940_s10 + $0x384] sm:$0xf]  ;;  %v268_v26 = vld [vmem:[%s1940_s10 + $0x3a8] sm:$0xf] }
  0x29   : > { %265 = vst [vmem:[%s1945_s11 + $0x60] sm:$0xf] %v264_v24  ;;  %267 = vst [vmem:[%s1945_s11 + $0x64] sm:$0xf] %v266_v25  ;;  %v270_v27 = vld [vmem:[%s1940_s10 + $0x3cc] sm:$0xf] }
  0x2a   : > { %269 = vst [vmem:[%s1945_s11 + $0x68] sm:$0xf] %v268_v26  ;;  %v272_v28 = vld [vmem:[%s1940_s10 + $0x3f0] sm:$0xf]  ;;  %v274_v29 = vld [vmem:[%s1940_s10 + $0x414] sm:$0xf] }
  0x2b   : > { %271 = vst [vmem:[%s1945_s11 + $0x6c] sm:$0xf] %v270_v27  ;;  %273 = vst [vmem:[%s1945_s11 + $0x70] sm:$0xf] %v272_v28  ;;  %v276_v30 = vld [vmem:[%s1940_s10 + $0x438] sm:$0xf] }
  0x2c   : > { %275 = vst [vmem:[%s1945_s11 + $0x74] sm:$0xf] %v274_v29  ;;  %v278_v31 = vld [vmem:[%s1940_s10 + $0x45c] sm:$0xf]  ;;  %277 = vst [vmem:[%s1945_s11 + $0x78] sm:$0xf] %v276_v30 }
  0x2d   : > { %279 = vst [vmem:[%s1945_s11 + $0x7c] sm:$0xf] %v278_v31 }
  0x2e PF: > { %p1435_p7 = scmp.ge.s32.totalorder %s1852_s21, 1  ;;  %p377_p8 = scmp.lt.s32.totalorder %s1852_s21, 19 }
  0x30   : > { %p378_p9 = pnand %p1435_p7, %p377_p8 }
  0x31   : > { %s384_s12 = sand.u32 (!%p378_p9), 1, %s1828_s15   ;;  %s1437_s13 = sshll.u32 (!%p378_p9), %s1836_s17, 4 }
  0x32   : > { %381 = sbr.rel (%p378_p9) target bundleno = 415 (0x19f), region = 65  ;;  %s1436_s14 = sshll.u32 (!%p378_p9), %s384_s12, 7 }
  0x33   : > { %p434_p10 = scmp.lt.s32.totalorder (!%p378_p9), %s1437_s13, 143  ;;  %s1439_s24 = sshll.u32 (!%p378_p9), %s1840_s18, 5 }
  0x34   : > { %p443_p11 = scmp.lt.s32.totalorder (!%p378_p9), %s1439_s24, 63  ;;  %p451_p12 = scmp.lt.s32.totalorder (!%p378_p9), %s1840_s18, 1 }
  0x35   : > { %p1441_p13 = scmp.ne.s32.totalorder (!%p378_p9), %s1836_s17, 0 }
  0x39   : > { %s2266_s13 = smov (!%p434_p10, %s1437_s13), 143  ;;  %s2268_s24 = smov (!%p443_p11, %s1439_s24), 63 }
  0x3a   : > { %s1438_s25 = sshll.u32 %s2266_s13, 2  ;;  %s2270_s18 = smov (!%p451_p12, %s1840_s18), 1  ;;  %v1854_v32 = vmov (!%p1441_p13), 0.0  }
  0x3b   : > { %s2017_s29 = scalar_lea.vmem %s2249_s1, %s1438_s25  ;;  %s1440_s30 = sshll.u32 %s2268_s24, 2  ;;  %468 = vst [vmem:[#allocation2] sm:$0xff] (!%p1441_p13), %v1854_v32  ;;  %469 = vst [vmem:[#allocation2 + $0x8] sm:$0xff] (!%p1441_p13), %v1854_v32 }
  0x3c   : > { %s2025_s6 = scalar_lea.vmem %s2250_s2, %s1440_s30  ;;  %s456_s9 = scalar_lea.vmem %s2251_s3, %s2270_s18  ;;  %470 = vst [vmem:[#allocation2 + $0x10] sm:$0xff] (!%p1441_p13), %v1854_v32  ;;  %471 = vst [vmem:[#allocation2 + $0x18] sm:$0xff] (!%p1441_p13), %v1854_v32 }
  0x3d   : > { %s462_s12 = scalar_lea.vmem %s2252_s4, %s2270_s18  ;;  %s2035_s13 = scalar_lea.vmem [#allocation3], %s1436_s14  ;;  %472 = vst [vmem:[#allocation2 + $0x20] sm:$0xff] (!%p1441_p13), %v1854_v32  ;;  %473 = vst [vmem:[#allocation2 + $0x28] sm:$0xff] (!%p1441_p13), %v1854_v32 }
  0x3e   : > { %467 = sbr.rel (%p1441_p13) target bundleno = 75 (0x4b), region = 73  ;;  %474 = vst [vmem:[#allocation2 + $0x30] sm:$0xff] (!%p1441_p13), %v1854_v32  ;;  %475 = vst [vmem:[#allocation2 + $0x38] sm:$0xff] (!%p1441_p13), %v1854_v32 }
  0x3f   : > { %476 = vst [vmem:[#allocation2 + $0x40] sm:$0xff] (!%p1441_p13), %v1854_v32  ;;  %477 = vst [vmem:[#allocation2 + $0x48] sm:$0xff] (!%p1441_p13), %v1854_v32 }
  0x40   : > { %478 = vst [vmem:[#allocation2 + $0x50] sm:$0xff] (!%p1441_p13), %v1854_v32  ;;  %479 = vst [vmem:[#allocation2 + $0x58] sm:$0xff] (!%p1441_p13), %v1854_v32 }
  0x41   : > { %480 = vst [vmem:[#allocation2 + $0x60] sm:$0xff] (!%p1441_p13), %v1854_v32  ;;  %481 = vst [vmem:[#allocation2 + $0x68] sm:$0xff] (!%p1441_p13), %v1854_v32 }
  0x42   : > { %482 = vst [vmem:[#allocation2 + $0x70] sm:$0xff] (!%p1441_p13), %v1854_v32  ;;  %483 = vst [vmem:[#allocation2 + $0x78] sm:$0xff] (!%p1441_p13), %v1854_v32 }
  0x43   : > { %484 = vst [vmem:[#allocation2 + $0x80] sm:$0xff] (!%p1441_p13), %v1854_v32  ;;  %485 = vst [vmem:[#allocation2 + $0x88] sm:$0xff] (!%p1441_p13), %v1854_v32 }
  0x44   : > { %486 = vst [vmem:[#allocation2 + $0x90] sm:$0xff] (!%p1441_p13), %v1854_v32  ;;  %487 = vst [vmem:[#allocation2 + $0x98] sm:$0xff] (!%p1441_p13), %v1854_v32 }
  0x45   : > { %488 = vst [vmem:[#allocation2 + $0xa0] sm:$0xff] %v1854_v32  ;;  %489 = vst [vmem:[#allocation2 + $0xa8] sm:$0xff] %v1854_v32 }
  0x46   : > { %490 = vst [vmem:[#allocation2 + $0xb0] sm:$0xff] %v1854_v32  ;;  %491 = vst [vmem:[#allocation2 + $0xb8] sm:$0xff] %v1854_v32 }
  0x47   : > { %492 = vst [vmem:[#allocation2 + $0xc0] sm:$0xff] %v1854_v32  ;;  %493 = vst [vmem:[#allocation2 + $0xc8] sm:$0xff] %v1854_v32 }
  0x48   : > { %494 = vst [vmem:[#allocation2 + $0xd0] sm:$0xff] %v1854_v32  ;;  %495 = vst [vmem:[#allocation2 + $0xd8] sm:$0xff] %v1854_v32 }
  0x49   : > { %496 = vst [vmem:[#allocation2 + $0xe0] sm:$0xff] %v1854_v32  ;;  %497 = vst [vmem:[#allocation2 + $0xe8] sm:$0xff] %v1854_v32 }
  0x4a   : > { %498 = vst [vmem:[#allocation2 + $0xf0] sm:$0xff] %v1854_v32  ;;  %499 = vst [vmem:[#allocation2 + $0xf8] sm:$0xff] %v1854_v32 }
  0x4b PF: > { %v1774_v33 = vld [vmem:[%s2017_s29] sm:$0xff]   ;;  %v1775_v34 = vld [vmem:[%s2017_s29 + $0x8] sm:$0xff]   ;;  %v1776_v35 = vld [vmem:[%s2017_s29 + $0x10] sm:$0xff]   ;;  %p1466_p0 = scmp.ne.s32.totalorder %s1836_s17, 8 }
  0x4c   : > { %1652 = vmatprep.subr.bf16.mxu0 %v1774_v33  ;;  %1700 = vmatprep.subr.bf16.mxu1 %v1774_v33  ;;  %v1777_v36 = vld [vmem:[%s2017_s29 + $0x18] sm:$0xff]   ;;  %v1782_v37 = vld [vmem:[%s2035_s13] sm:$0xff]   ;;  %v1779_v40 = vld [vmem:[%s2017_s29 + $0x28] sm:$0xff]  }
  0x4d   : > { %1653 = vmatpush3.bf16.msra.mxu0 %v1774_v33  ;;  %1708 = vmatpush3.bf16.msra.mxu1 %v1774_v33  ;;  %v1783_v38 = vld [vmem:[%s2035_s13 + $0x40] sm:$0xff]   ;;  %v1780_v41 = vld [vmem:[%s2017_s29 + $0x30] sm:$0xff]   ;;  %v1781_v42 = vld [vmem:[%s2017_s29 + $0x38] sm:$0xff]  }
  0x4e   : > { %1654 = vmatprep.subr.bf16.mxu0 %v1775_v34  ;;  %1701 = vmatprep.subr.bf16.mxu1 %v1775_v34  ;;  %v1778_v39 = vld [vmem:[%s2017_s29 + $0x20] sm:$0xff]   ;;  %v1784_v43 = vld [vmem:[%s2035_s13 + $0x8] sm:$0xff]   ;;  %v1786_v45 = vld [vmem:[%s2035_s13 + $0x10] sm:$0xff]  }
  0x4f   : > { %1668 = vmatprep.mubr.bf16.mxu0 %v1782_v37  ;;  %1684 = vmatprep.mubr.bf16.mxu1 %v1783_v38  ;;  %v1785_v44 = vld [vmem:[%s2035_s13 + $0x48] sm:$0xff]   ;;  %v1787_v46 = vld [vmem:[%s2035_s13 + $0x50] sm:$0xff]   ;;  %v1788_v47 = vld [vmem:[%s2035_s13 + $0x18] sm:$0xff]  }
  0x50   : > { %v1789_v48 = vld [vmem:[%s2035_s13 + $0x58] sm:$0xff]   ;;  %v1790_v49 = vld [vmem:[%s2035_s13 + $0x20] sm:$0xff]   ;;  %v1792_v51 = vld [vmem:[%s2035_s13 + $0x28] sm:$0xff]  }
  0x51   : > { %1655 = vmatpush3.bf16.msra.mxu0 %v1775_v34  ;;  %1709 = vmatpush3.bf16.msra.mxu1 %v1775_v34  ;;  %v1791_v50 = vld [vmem:[%s2035_s13 + $0x60] sm:$0xff]   ;;  %v1793_v52 = vld [vmem:[%s2035_s13 + $0x68] sm:$0xff]   ;;  %v1794_v53 = vld [vmem:[%s2035_s13 + $0x30] sm:$0xff]  }
  0x52   : > { %1656 = vmatprep.subr.bf16.mxu0 %v1776_v35  ;;  %1702 = vmatprep.subr.bf16.mxu1 %v1776_v35  ;;  %v1795_v54 = vld [vmem:[%s2035_s13 + $0x70] sm:$0xff]   ;;  %v1796_v55 = vld [vmem:[%s2035_s13 + $0x38] sm:$0xff]   ;;  %v500_v59 = vld [vmem:[#allocation2] sm:$0xff] }
  0x53   : > { %v1797_v56 = vld [vmem:[%s2035_s13 + $0x78] sm:$0xff]   ;;  %v502_v57 = vld [vmem:[#allocation2 + $0x10] sm:$0xff]  ;;  %v516_v60 = vld [vmem:[#allocation2 + $0x80] sm:$0xff] }
  0x54   : > { %v518_v58 = vld [vmem:[#allocation2 + $0x90] sm:$0xff]  ;;  %v503_v63 = vld [vmem:[#allocation2 + $0x18] sm:$0xff]  ;;  %v501_v5 = vld [vmem:[#allocation2 + $0x8] sm:$0xff] }
  0x55   : > { %1657 = vmatpush3.bf16.msra.mxu0 %v1776_v35  ;;  %1710 = vmatpush3.bf16.msra.mxu1 %v1776_v35  ;;  %v519_v0 = vld [vmem:[#allocation2 + $0x98] sm:$0xff]  ;;  %v517_v6 = vld [vmem:[#allocation2 + $0x88] sm:$0xff]  ;;  %v506_v17 = vld [vmem:[#allocation2 + $0x30] sm:$0xff] }
  0x56   : > { %1658 = vmatprep.subr.bf16.mxu0 %v1777_v36  ;;  %1703 = vmatprep.subr.bf16.mxu1 %v1777_v36  ;;  %v522_v18 = vld [vmem:[#allocation2 + $0xb0] sm:$0xff]  ;;  %v504_v19 = vld [vmem:[#allocation2 + $0x20] sm:$0xff]  ;;  %v507_v23 = vld [vmem:[#allocation2 + $0x38] sm:$0xff] }
  0x57   : > { %v520_v20 = vld [vmem:[#allocation2 + $0xa0] sm:$0xff]  ;;  %v523_v24 = vld [vmem:[#allocation2 + $0xb8] sm:$0xff]  ;;  %v505_v29 = vld [vmem:[#allocation2 + $0x28] sm:$0xff] }
  0x58   : > { %v521_v30 = vld [vmem:[#allocation2 + $0xa8] sm:$0xff] }
  0x59   : > { %1659 = vmatpush3.bf16.msra.mxu0 %v1777_v36  ;;  %1711 = vmatpush3.bf16.msra.mxu1 %v1777_v36 }
  0x5a   : > { %1660 = vmatprep.subr.bf16.mxu0 %v1778_v39  ;;  %1704 = vmatprep.subr.bf16.mxu1 %v1778_v39 }
  0x5d   : > { %1661 = vmatpush3.bf16.msra.mxu0 %v1778_v39  ;;  %1712 = vmatpush3.bf16.msra.mxu1 %v1778_v39 }
  0x5e   : > { %1662 = vmatprep.subr.bf16.mxu0 %v1779_v40  ;;  %1705 = vmatprep.subr.bf16.mxu1 %v1779_v40 }
  0x61   : > { %1663 = vmatpush3.bf16.msra.mxu0 %v1779_v40  ;;  %1713 = vmatpush3.bf16.msra.mxu1 %v1779_v40 }
  0x62   : > { %1664 = vmatprep.subr.bf16.mxu0 %v1780_v41  ;;  %1706 = vmatprep.subr.bf16.mxu1 %v1780_v41 }
  0x65   : > { %1665 = vmatpush3.bf16.msra.mxu0 %v1780_v41  ;;  %1714 = vmatpush3.bf16.msra.mxu1 %v1780_v41  ;;  %v510_v41 = vld [vmem:[#allocation2 + $0x50] sm:$0xff] }
  0x66   : > { %1666 = vmatprep.subr.bf16.mxu0 %v1781_v42  ;;  %1707 = vmatprep.subr.bf16.mxu1 %v1781_v42 }
  0x69   : > { %1667 = vmatpush3.bf16.msra.mxu0 %v1781_v42  ;;  %1715 = vmatpush3.bf16.msra.mxu1 %v1781_v42  ;;  %v526_v42 = vld [vmem:[#allocation2 + $0xd0] sm:$0xff] }
  0x6c   : > { %1669 = vmatmul.mubr.bf16.vlgmr.msra.gmra.mrb[0].mxu0 %v1784_v43  ;;  %1685 = vmatmul.mubr.bf16.vlgmr.msra.gmra.mrb[0].mxu1 %v1785_v44  ;;  %v508_v43 = vld [vmem:[#allocation2 + $0x40] sm:$0xff] }
  0x6d   : > { %1672 = vmatprep.mubr.bf16.mxu0 %v1786_v45  ;;  %1688 = vmatprep.mubr.bf16.mxu1 %v1787_v46  ;;  %v524_v44 = vld [vmem:[#allocation2 + $0xc0] sm:$0xff] }
  0x74   : > { %1673 = vmatmul.mubr.bf16.gmra.mrb[4].mxu0 %v1788_v47  ;;  %1689 = vmatmul.mubr.bf16.gmra.mrb[4].mxu1 %v1789_v48  ;;  %v511_v47 = vld [vmem:[#allocation2 + $0x58] sm:$0xff] }
  0x75   : > { %1676 = vmatprep.mubr.bf16.mxu0 %v1790_v49  ;;  %1692 = vmatprep.mubr.bf16.mxu1 %v1791_v50  ;;  %v527_v48 = vld [vmem:[#allocation2 + $0xd8] sm:$0xff] }
  0x7c   : > { %1677 = vmatmul.mubr.bf16.gmra.mrb[8].mxu0 %v1792_v51  ;;  %1693 = vmatmul.mubr.bf16.gmra.mrb[8].mxu1 %v1793_v52 }
  0x7d   : > { %1680 = vmatprep.mubr.bf16.mxu0 %v1794_v53  ;;  %1696 = vmatprep.mubr.bf16.mxu1 %v1795_v54  ;;  %v509_v53 = vld [vmem:[#allocation2 + $0x48] sm:$0xff] }
  0x7e   : > { %v525_v54 = vld [vmem:[#allocation2 + $0xc8] sm:$0xff] }
  0x84   : > { %1681 = vmatmul.mubr.bf16.gmra.mrb[12].mxu0 %v1796_v55  ;;  %1697 = vmatmul.mubr.bf16.gmra.mrb[12].mxu1 %v1797_v56 }
 0x13f   : > { %v1670_v61 = vpop.f32.mrb[0].mxu0  ;;  %v1686_v62 = vpop.f32.mrb[0].mxu1 }
 0x140   : > { %v887_v1 = vadd.f32 %v1670_v61, %v502_v57  ;;  %v903_v2 = vadd.f32 %v1686_v62, %v518_v58  ;;  %v758_v3 = vpop.f32.mrb[1].mxu0  ;;  %v822_v4 = vpop.f32.mrb[1].mxu1 }
 0x141   : > { %v885_v7 = vadd.f32 %v758_v3, %v500_v59  ;;  %v901_v8 = vadd.f32 %v822_v4, %v516_v60  ;;  %v1671_v9 = vpop.f32.mrb[2].mxu0  ;;  %v1687_v10 = vpop.f32.mrb[2].mxu1  ;;  %v512_v3 = vld [vmem:[#allocation2 + $0x60] sm:$0xff] }
 0x142   : > { %919 = vst [vmem:[#allocation2 + $0x10] sm:$0xff] %v887_v1  ;;  %935 = vst [vmem:[#allocation2 + $0x90] sm:$0xff] %v903_v2  ;;  %v888_v11 = vadd.f32 %v1671_v9, %v503_v63  ;;  %v904_v12 = vadd.f32 %v1687_v10, %v519_v0  ;;  %v761_v13 = vpop.f32.mrb[3].mxu0  ;;  %v825_v14 = vpop.f32.mrb[3].mxu1  ;;  %v514_v1 = vld [vmem:[#allocation2 + $0x70] sm:$0xff]  ;;  %v528_v4 = vld [vmem:[#allocation2 + $0xe0] sm:$0xff] }
 0x143   : > { %917 = vst [vmem:[#allocation2] sm:$0xff] %v885_v7  ;;  %933 = vst [vmem:[#allocation2 + $0x80] sm:$0xff] %v901_v8  ;;  %v886_v15 = vadd.f32 %v761_v13, %v501_v5  ;;  %v902_v16 = vadd.f32 %v825_v14, %v517_v6  ;;  %v530_v2 = vld [vmem:[#allocation2 + $0xf0] sm:$0xff]  ;;  %v515_v7 = vld [vmem:[#allocation2 + $0x78] sm:$0xff] }
 0x144   : > { %920 = vst [vmem:[#allocation2 + $0x18] sm:$0xff] %v888_v11  ;;  %936 = vst [vmem:[#allocation2 + $0x98] sm:$0xff] %v904_v12  ;;  %v531_v8 = vld [vmem:[#allocation2 + $0xf8] sm:$0xff]  ;;  %v513_v13 = vld [vmem:[#allocation2 + $0x68] sm:$0xff] }
 0x145   : > { %918 = vst [vmem:[#allocation2 + $0x8] sm:$0xff] %v886_v15  ;;  %934 = vst [vmem:[#allocation2 + $0x88] sm:$0xff] %v902_v16  ;;  %v529_v14 = vld [vmem:[#allocation2 + $0xe8] sm:$0xff] }
 0x147   : > { %v1674_v21 = vpop.f32.mrb[4].mxu0  ;;  %v1690_v22 = vpop.f32.mrb[4].mxu1 }
 0x148   : > { %v891_v25 = vadd.f32 %v1674_v21, %v506_v17  ;;  %v907_v26 = vadd.f32 %v1690_v22, %v522_v18  ;;  %v774_v27 = vpop.f32.mrb[5].mxu0  ;;  %v838_v28 = vpop.f32.mrb[5].mxu1 }
 0x149   : > { %v889_v31 = vadd.f32 %v774_v27, %v504_v19  ;;  %v905_v32 = vadd.f32 %v838_v28, %v520_v20  ;;  %v1675_v33 = vpop.f32.mrb[6].mxu0  ;;  %v1691_v34 = vpop.f32.mrb[6].mxu1  ;;  %v955_v27 = vld [vmem:[#allocation2 + $0x10] sm:$0xff] (!%p1466_p0) }
 0x14a   : > { %923 = vst [vmem:[#allocation2 + $0x30] sm:$0xff] %v891_v25  ;;  %939 = vst [vmem:[#allocation2 + $0xb0] sm:$0xff] %v907_v26  ;;  %v892_v35 = vadd.f32 %v1675_v33, %v507_v23  ;;  %v908_v36 = vadd.f32 %v1691_v34, %v523_v24  ;;  %v777_v37 = vpop.f32.mrb[7].mxu0  ;;  %v841_v38 = vpop.f32.mrb[7].mxu1  ;;  %v953_v25 = vld [vmem:[#allocation2] sm:$0xff] (!%p1466_p0) }
 0x14b   : > { %921 = vst [vmem:[#allocation2 + $0x20] sm:$0xff] %v889_v31  ;;  %937 = vst [vmem:[#allocation2 + $0xa0] sm:$0xff] %v905_v32  ;;  %v890_v39 = vadd.f32 %v777_v37, %v505_v29  ;;  %v906_v40 = vadd.f32 %v841_v38, %v521_v30  ;;  %v1183_v30 = vmul.f32 (!%p1466_p0), %v953_v25, %v953_v25  ;;  %v956_v32 = vld [vmem:[#allocation2 + $0x18] sm:$0xff] (!%p1466_p0) }
 0x14c   : > { %924 = vst [vmem:[#allocation2 + $0x38] sm:$0xff] %v892_v35  ;;  %940 = vst [vmem:[#allocation2 + $0xb8] sm:$0xff] %v908_v36  ;;  %v954_v26 = vld [vmem:[#allocation2 + $0x8] sm:$0xff] (!%p1466_p0)  ;;  %v1541_v35 = vpack.c.bf16 (!%p1466_p0), %v956_v32, %v955_v27  ;;  %v1185_v36 = vmul.f32 (!%p1466_p0), %v955_v27, %v955_v27 }
 0x14d   : > { %922 = vst [vmem:[#allocation2 + $0x28] sm:$0xff] %v890_v39  ;;  %938 = vst [vmem:[#allocation2 + $0xa8] sm:$0xff] %v906_v40  ;;  %v1536_v28 = vpack.c.bf16 (!%p1466_p0), %v954_v26, %v953_v25  ;;  %v1145_v29 = vadd.f32 (!%p1466_p0), %v954_v26, %v953_v25  ;;  %v1184_v31 = vmul.f32 (!%p1466_p0), %v954_v26, %v954_v26 }
 0x14e   : > { %1613 = vst [vmem:[%s2025_s6 + $0x8] sm:$0xff] (!%p1466_p0), %v1541_v35  }
 0x14f   : > { %v1678_v45 = vpop.f32.mrb[8].mxu0  ;;  %v1694_v46 = vpop.f32.mrb[8].mxu1  ;;  %1537 = vst [vmem:[%s2025_s6] sm:$0xff] (!%p1466_p0), %v1536_v28   ;;  %v1215_v39 = vadd.f32 (!%p1466_p0), %v1184_v31, %v1183_v30  ;;  %v1146_v40 = vadd.f32 (!%p1466_p0), %v1145_v29, %v955_v27 }
 0x150   : > { %v895_v49 = vadd.f32 %v1678_v45, %v510_v41  ;;  %v911_v50 = vadd.f32 %v1694_v46, %v526_v42  ;;  %v790_v51 = vpop.f32.mrb[9].mxu0  ;;  %v854_v52 = vpop.f32.mrb[9].mxu1  ;;  %v1186_v41 = vmul.f32 (!%p1466_p0), %v956_v32, %v956_v32 }
 0x151   : > { %v893_v55 = vadd.f32 %v790_v51, %v508_v43  ;;  %v909_v56 = vadd.f32 %v854_v52, %v524_v44  ;;  %v1679_v57 = vpop.f32.mrb[10].mxu0  ;;  %v1695_v58 = vpop.f32.mrb[10].mxu1  ;;  %v959_v38 = vld [vmem:[#allocation2 + $0x30] sm:$0xff] (!%p1466_p0) }
 0x152   : > { %927 = vst [vmem:[#allocation2 + $0x50] sm:$0xff] %v895_v49  ;;  %943 = vst [vmem:[#allocation2 + $0xd0] sm:$0xff] %v911_v50  ;;  %v896_v59 = vadd.f32 %v1679_v57, %v511_v47  ;;  %v912_v60 = vadd.f32 %v1695_v58, %v527_v48  ;;  %v793_v61 = vpop.f32.mrb[11].mxu0  ;;  %v857_v62 = vpop.f32.mrb[11].mxu1  ;;  %v957_v33 = vld [vmem:[#allocation2 + $0x20] sm:$0xff] (!%p1466_p0)  ;;  %v1147_v48 = vadd.f32 (!%p1466_p0), %v1146_v40, %v956_v32 }
 0x153   : > { %925 = vst [vmem:[#allocation2 + $0x40] sm:$0xff] %v893_v55  ;;  %941 = vst [vmem:[#allocation2 + $0xc0] sm:$0xff] %v909_v56  ;;  %v894_v63 = vadd.f32 %v793_v61, %v509_v53  ;;  %v910_v0 = vadd.f32 %v857_v62, %v525_v54  ;;  %v960_v42 = vld [vmem:[#allocation2 + $0x38] sm:$0xff] (!%p1466_p0)  ;;  %v1216_v49 = vadd.f32 (!%p1466_p0), %v1215_v39, %v1185_v36  ;;  %v2087_v61 = vld [vmem:[#allocation2 + $0x80] sm:$0xff] (!%p1466_p0) }
 0x154   : > { %928 = vst [vmem:[#allocation2 + $0x58] sm:$0xff] %v896_v59  ;;  %944 = vst [vmem:[#allocation2 + $0xd8] sm:$0xff] %v912_v60  ;;  %v958_v34 = vld [vmem:[#allocation2 + $0x28] sm:$0xff] (!%p1466_p0)  ;;  %v1551_v45 = vpack.c.bf16 (!%p1466_p0), %v960_v42, %v959_v38  ;;  %v1187_v50 = vmul.f32 (!%p1466_p0), %v957_v33, %v957_v33  ;;  %v1148_v58 = vadd.f32 (!%p1466_p0), %v1147_v48, %v957_v33 }
 0x155   : > { %926 = vst [vmem:[#allocation2 + $0x48] sm:$0xff] %v894_v63  ;;  %942 = vst [vmem:[#allocation2 + $0xc8] sm:$0xff] %v910_v0  ;;  %v1546_v37 = vpack.c.bf16 (!%p1466_p0), %v958_v34, %v957_v33  ;;  %v1217_v57 = vadd.f32 (!%p1466_p0), %v1216_v49, %v1186_v41  ;;  %v1188_v59 = vmul.f32 (!%p1466_p0), %v958_v34, %v958_v34  ;;  %v2089_v62 = vld [vmem:[#allocation2 + $0x88] sm:$0xff] (!%p1466_p0) }
 0x156   : > { %1615 = vst [vmem:[%s2025_s6 + $0x18] sm:$0xff] (!%p1466_p0), %v1551_v45   ;;  %v1576_v0 = vpack.c.bf16 (!%p1466_p0), %v2089_v62, %v2087_v61 }
 0x157   : > { %v1682_v5 = vpop.f32.mrb[12].mxu0  ;;  %v1698_v6 = vpop.f32.mrb[12].mxu1  ;;  %952 = sbr.rel (%p1466_p0) target bundleno = 415 (0x19f), region = 77  ;;  %1614 = vst [vmem:[%s2025_s6 + $0x10] sm:$0xff] (!%p1466_p0), %v1546_v37  }
 0x158   : > { %v899_v9 = vadd.f32 %v1682_v5, %v514_v1  ;;  %v915_v10 = vadd.f32 %v1698_v6, %v530_v2  ;;  %v806_v11 = vpop.f32.mrb[13].mxu0  ;;  %v870_v12 = vpop.f32.mrb[13].mxu1  ;;  %v2097_v1 = vld [vmem:[#allocation2 + $0x90] sm:$0xff] (!%p1466_p0)  ;;  %v1149_v2 = vadd.f32 (!%p1466_p0), %v1148_v58, %v958_v34  ;;  %v2099_v5 = vld [vmem:[#allocation2 + $0x98] sm:$0xff] (!%p1466_p0)  ;;  %v2101_v6 = vld [vmem:[#allocation2 + $0xa0] sm:$0xff] (!%p1466_p0)  ;;  %1620 = vst [vmem:[%s2025_s6 + $0x40] sm:$0xff] (!%p1466_p0), %v1576_v0  }
 0x159   : > { %v897_v15 = vadd.f32 %v806_v11, %v512_v3  ;;  %v913_v16 = vadd.f32 %v870_v12, %v528_v4  ;;  %v1683_v17 = vpop.f32.mrb[14].mxu0  ;;  %v1699_v18 = vpop.f32.mrb[14].mxu1  ;;  %v2069_v47 = vld [vmem:[#allocation2 + $0x50] sm:$0xff] (!%p1466_p0)  ;;  %v1218_v3 = vadd.f32 (!%p1466_p0), %v1217_v57, %v1187_v50  ;;  %v1189_v4 = vmul.f32 (!%p1466_p0), %v959_v38, %v959_v38 }
 0x15a   : > { %931 = vst [vmem:[#allocation2 + $0x70] sm:$0xff] %v899_v9  ;;  %947 = vst [vmem:[#allocation2 + $0xf0] sm:$0xff] %v915_v10  ;;  %v900_v19 = vadd.f32 %v1683_v17, %v515_v7  ;;  %v916_v20 = vadd.f32 %v1699_v18, %v531_v8  ;;  %v809_v21 = vpop.f32.mrb[15].mxu0  ;;  %v873_v22 = vpop.f32.mrb[15].mxu1  ;;  %v961_v43 = vld [vmem:[#allocation2 + $0x40] sm:$0xff] (!%p1466_p0)  ;;  %v2103_v7 = vld [vmem:[#allocation2 + $0xa8] sm:$0xff] (!%p1466_p0)  ;;  %v1581_v8 = vpack.c.bf16 (!%p1466_p0), %v2099_v5, %v2097_v1 }
 0x15b   : > { %929 = vst [vmem:[#allocation2 + $0x60] sm:$0xff] %v897_v15  ;;  %945 = vst [vmem:[#allocation2 + $0xe0] sm:$0xff] %v913_v16  ;;  %v898_v23 = vadd.f32 %v809_v21, %v513_v13  ;;  %v914_v24 = vadd.f32 %v873_v22, %v529_v14  ;;  %v2071_v51 = vld [vmem:[#allocation2 + $0x58] sm:$0xff] (!%p1466_p0)  ;;  %v1586_v9 = vpack.c.bf16 (!%p1466_p0), %v2103_v7, %v2101_v6  ;;  %v2111_v10 = vld [vmem:[#allocation2 + $0xb0] sm:$0xff] (!%p1466_p0) }
 0x15c   : > { %932 = vst [vmem:[#allocation2 + $0x78] sm:$0xff] %v900_v19  ;;  %948 = vst [vmem:[#allocation2 + $0xf8] sm:$0xff] %v916_v20  ;;  %v2064_v44 = vld [vmem:[#allocation2 + $0x48] sm:$0xff] (!%p1466_p0)  ;;  %v1561_v54 = vpack.c.bf16 (!%p1466_p0), %v2071_v51, %v2069_v47  ;;  %v1219_v11 = vadd.f32 (!%p1466_p0), %v1218_v3, %v1188_v59  ;;  %v1150_v12 = vadd.f32 (!%p1466_p0), %v1149_v2, %v959_v38  ;;  %v2113_v14 = vld [vmem:[#allocation2 + $0xb8] sm:$0xff] (!%p1466_p0) }
 0x15d   : > { %930 = vst [vmem:[#allocation2 + $0x68] sm:$0xff] %v898_v23  ;;  %946 = vst [vmem:[#allocation2 + $0xe8] sm:$0xff] %v914_v24  ;;  %v1556_v46 = vpack.c.bf16 (!%p1466_p0), %v2064_v44, %v961_v43  ;;  %v1190_v13 = vmul.f32 (!%p1466_p0), %v960_v42, %v960_v42  ;;  %v2115_v15 = vld [vmem:[#allocation2 + $0xc0] sm:$0xff] (!%p1466_p0)  ;;  %v2117_v16 = vld [vmem:[#allocation2 + $0xc8] sm:$0xff] (!%p1466_p0)  ;;  %v1591_v17 = vpack.c.bf16 (!%p1466_p0), %v2113_v14, %v2111_v10 }
 0x15e   : > { %1617 = vst [vmem:[%s2025_s6 + $0x28] sm:$0xff] %v1561_v54   ;;  %1621 = vst [vmem:[%s2025_s6 + $0x48] sm:$0xff] %v1581_v8   ;;  %v1596_v18 = vpack.c.bf16 %v2117_v16, %v2115_v15  ;;  %v2125_v19 = vld [vmem:[#allocation2 + $0xd0] sm:$0xff]  ;;  %v1151_v20 = vadd.f32 %v1150_v12, %v960_v42  ;;  %v1220_v21 = vadd.f32 %v1219_v11, %v1189_v4  ;;  %v2127_v23 = vld [vmem:[#allocation2 + $0xd8] sm:$0xff] }
 0x15f   : > { %1616 = vst [vmem:[%s2025_s6 + $0x20] sm:$0xff] %v1556_v46   ;;  %1622 = vst [vmem:[%s2025_s6 + $0x50] sm:$0xff] %v1586_v9   ;;  %v1191_v22 = vmul.f32 %v961_v43, %v961_v43  ;;  %v1601_v26 = vpack.c.bf16 %v2127_v23, %v2125_v19  ;;  %v1192_v30 = vmul.f32 %v2064_v44, %v2064_v44 }
 0x160   : > { %1623 = vst [vmem:[%s2025_s6 + $0x58] sm:$0xff] %v1591_v17   ;;  %1624 = vst [vmem:[%s2025_s6 + $0x60] sm:$0xff] %v1596_v18   ;;  %v1221_v28 = vadd.f32 %v1220_v21, %v1190_v13  ;;  %v1152_v29 = vadd.f32 %v1151_v20, %v961_v43  ;;  %v1193_v36 = vmul.f32 %v2069_v47, %v2069_v47 }
 0x161   : > { %v2083_v56 = vld [vmem:[#allocation2 + $0x70] sm:$0xff]  ;;  %1625 = vst [vmem:[%s2025_s6 + $0x68] sm:$0xff] %v1601_v26   ;;  %v1194_v39 = vmul.f32 %v2071_v51, %v2071_v51 }
 0x162   : > { %v2073_v52 = vld [vmem:[#allocation2 + $0x60] sm:$0xff]  ;;  %v2141_v31 = vld [vmem:[#allocation2 + $0xf0] sm:$0xff]  ;;  %v1153_v34 = vadd.f32 %v1152_v29, %v2064_v44  ;;  %v1222_v35 = vadd.f32 %v1221_v28, %v1191_v22 }
 0x163   : > { %v2085_v60 = vld [vmem:[#allocation2 + $0x78] sm:$0xff]  ;;  %v2129_v24 = vld [vmem:[#allocation2 + $0xe0] sm:$0xff]  ;;  %v1195_v42 = vmul.f32 %v2073_v52, %v2073_v52 }
 0x164   : > { %v2075_v53 = vld [vmem:[#allocation2 + $0x68] sm:$0xff]  ;;  %v1571_v63 = vpack.c.bf16 %v2085_v60, %v2083_v56  ;;  %v2143_v32 = vld [vmem:[#allocation2 + $0xf8] sm:$0xff]  ;;  %v1223_v37 = vadd.f32 %v1222_v35, %v1192_v30  ;;  %v1154_v38 = vadd.f32 %v1153_v34, %v2069_v47  ;;  %v1197_v47 = vmul.f32 %v2083_v56, %v2083_v56 }
 0x165   : > { %v1566_v55 = vpack.c.bf16 %v2075_v53, %v2073_v52  ;;  %v2131_v25 = vld [vmem:[#allocation2 + $0xe8] sm:$0xff]  ;;  %v1611_v33 = vpack.c.bf16 %v2143_v32, %v2141_v31  ;;  %v1196_v45 = vmul.f32 %v2075_v53, %v2075_v53 }
 0x166   : > { %1619 = vst [vmem:[%s2025_s6 + $0x38] sm:$0xff] %v1571_v63   ;;  %v1606_v27 = vpack.c.bf16 %v2131_v25, %v2129_v24  ;;  %v1155_v40 = vadd.f32 %v1154_v38, %v2071_v51  ;;  %v1224_v41 = vadd.f32 %v1223_v37, %v1193_v36  ;;  %v1198_v51 = vmul.f32 %v2085_v60, %v2085_v60 }
 0x167   : > { %1618 = vst [vmem:[%s2025_s6 + $0x30] sm:$0xff] %v1566_v55   ;;  %1627 = vst [vmem:[%s2025_s6 + $0x78] sm:$0xff] %v1611_v33  }
 0x168   : > { %1626 = vst [vmem:[%s2025_s6 + $0x70] sm:$0xff] %v1606_v27   ;;  %v1225_v43 = vadd.f32 %v1224_v41, %v1194_v39  ;;  %v1156_v44 = vadd.f32 %v1155_v40, %v2073_v52  ;;  %v1199_v52 = vmul.f32 %v2087_v61, %v2087_v61 }
 0x16a   : > { %v1157_v46 = vadd.f32 %v1156_v44, %v2075_v53  ;;  %v1226_v48 = vadd.f32 %v1225_v43, %v1195_v42  ;;  %v1200_v53 = vmul.f32 %v2089_v62, %v2089_v62 }
 0x16c   : > { %v1227_v49 = vadd.f32 %v1226_v48, %v1196_v45  ;;  %v1158_v50 = vadd.f32 %v1157_v46, %v2083_v56  ;;  %v1201_v56 = vmul.f32 %v2097_v1, %v2097_v1 }
 0x16e   : > { %v1159_v54 = vadd.f32 %v1158_v50, %v2085_v60  ;;  %v1228_v55 = vadd.f32 %v1227_v49, %v1197_v47  ;;  %v1202_v60 = vmul.f32 %v2099_v5, %v2099_v5 }
 0x170   : > { %v1229_v57 = vadd.f32 %v1228_v55, %v1198_v51  ;;  %v1160_v58 = vadd.f32 %v1159_v54, %v2087_v61  ;;  %v1203_v61 = vmul.f32 %v2101_v6, %v2101_v6 }
 0x172   : > { %v1161_v59 = vadd.f32 %v1160_v58, %v2089_v62  ;;  %v1230_v63 = vadd.f32 %v1229_v57, %v1199_v52  ;;  %v1204_v62 = vmul.f32 %v2103_v7, %v2103_v7 }
 0x174   : > { %v1231_v0 = vadd.f32 %v1230_v63, %v1200_v53  ;;  %v1162_v2 = vadd.f32 %v1161_v59, %v2097_v1  ;;  %v1205_v1 = vmul.f32 %v2111_v10, %v2111_v10 }
 0x176   : > { %v1163_v3 = vadd.f32 %v1162_v2, %v2099_v5  ;;  %v1232_v4 = vadd.f32 %v1231_v0, %v1201_v56  ;;  %v1206_v5 = vmul.f32 %v2113_v14, %v2113_v14 }
 0x178   : > { %v1233_v8 = vadd.f32 %v1232_v4, %v1202_v60  ;;  %v1164_v9 = vadd.f32 %v1163_v3, %v2101_v6  ;;  %v1207_v6 = vmul.f32 %v2115_v15, %v2115_v15 }
 0x17a   : > { %v1165_v11 = vadd.f32 %v1164_v9, %v2103_v7  ;;  %v1234_v12 = vadd.f32 %v1233_v8, %v1203_v61  ;;  %v1208_v7 = vmul.f32 %v2117_v16, %v2117_v16 }
 0x17c   : > { %v1235_v13 = vadd.f32 %v1234_v12, %v1204_v62  ;;  %v1166_v17 = vadd.f32 %v1165_v11, %v2111_v10  ;;  %v1209_v10 = vmul.f32 %v2125_v19, %v2125_v19 }
 0x17e   : > { %v1167_v18 = vadd.f32 %v1166_v17, %v2113_v14  ;;  %v1236_v20 = vadd.f32 %v1235_v13, %v1205_v1  ;;  %v1210_v14 = vmul.f32 %v2127_v23, %v2127_v23 }
 0x180   : > { %v1237_v21 = vadd.f32 %v1236_v20, %v1206_v5  ;;  %v1168_v22 = vadd.f32 %v1167_v18, %v2115_v15  ;;  %v1211_v15 = vmul.f32 %v2129_v24, %v2129_v24 }
 0x182   : > { %v1169_v26 = vadd.f32 %v1168_v22, %v2117_v16  ;;  %v1238_v27 = vadd.f32 %v1237_v21, %v1207_v6  ;;  %v1212_v16 = vmul.f32 %v2131_v25, %v2131_v25 }
 0x184   : > { %v1239_v28 = vadd.f32 %v1238_v27, %v1208_v7  ;;  %v1170_v29 = vadd.f32 %v1169_v26, %v2125_v19  ;;  %v1213_v19 = vmul.f32 %v2141_v31, %v2141_v31 }
 0x186   : > { %v1171_v30 = vadd.f32 %v1170_v29, %v2127_v23  ;;  %v1240_v33 = vadd.f32 %v1239_v28, %v1209_v10  ;;  %v1214_v23 = vmul.f32 %v2143_v32, %v2143_v32 }
 0x188   : > { %v1241_v34 = vadd.f32 %v1240_v33, %v1210_v14  ;;  %v1172_v35 = vadd.f32 %v1171_v30, %v2129_v24 }
 0x18a   : > { %v1173_v36 = vadd.f32 %v1172_v35, %v2131_v25  ;;  %v1242_v37 = vadd.f32 %v1241_v34, %v1211_v15 }
 0x18c   : > { %v1243_v38 = vadd.f32 %v1242_v37, %v1212_v16  ;;  %v1174_v39 = vadd.f32 %v1173_v36, %v2141_v31 }
 0x18e   : > { %v1175_v40 = vadd.f32 %v1174_v39, %v2143_v32  ;;  %v1244_v24 = vadd.f32 %v1243_v38, %v1213_v19 }
 0x190   : > { %v1176_v41 = vrot.slane %v1175_v40, 4  ;;  %v1245_v42 = vadd.f32 %v1244_v24, %v1214_v23 }
 0x192   : > { %v1177_v43 = vadd.f32 %v1176_v41, %v1175_v40  ;;  %v1246_v44 = vrot.slane %v1245_v42, 4 }
 0x194   : > { %v1178_v25 = vrot.slane %v1177_v43, 2  ;;  %v1247_v45 = vadd.f32 %v1246_v44, %v1245_v42 }
 0x196   : > { %v1179_v46 = vadd.f32 %v1178_v25, %v1177_v43  ;;  %v1248_v48 = vrot.slane %v1247_v45, 2 }
 0x198   : > { %v1180_v47 = vrot.slane %v1179_v46, 1  ;;  %v1249_v49 = vadd.f32 %v1248_v48, %v1247_v45 }
 0x19a   : > { %v1181_v50 = vadd.f32 %v1180_v47, %v1179_v46  ;;  %v1250_v31 = vrot.slane %v1249_v49, 1 }
 0x19c   : > { %1182 = vst [vmem:[%s456_s9] sm:$0x1] %v1181_v50  ;;  %v1251_v32 = vadd.f32 %v1250_v31, %v1249_v49 }
 0x19e   : > { %1252 = vst [vmem:[%s462_s12] sm:$0x1] %v1251_v32 }
 0x19f PF: > { %s15_s21 = sadd.s32 1, %s1852_s21   ;;  %s2253_s15 = smov %s1832_s16 }
 0x1a0   : > { %p12_p1 = scmp.ge.s32.totalorder %s15_s21, 20   ;;  %s2254_s16 = smov %s1931_s28 }
 0x1a1   : > { %s2255_s17 = smov %s1844_s19  ;;  %s2256_s18 = smov %s1848_s20 }
 0x1a2   : > { %s2257_s19 = smov %s2260_s22  ;;  %s2258_s20 = smov %s2264_s23 }
 0x1a3   :  { %14 = sbr.rel (!%p12_p1) target bundleno = 4 (0x4), region = 139 }

</bundles_post_ra>
